<compile_context>
chip_gen: v7x
topology: tpu7x:2x2x1
jax: 0.10.0
libtpu: 0.0.40
codegen_flags: <defaults>
</compile_context>

<pallas_src>
import math
import functools

import jax
import jax.numpy as jnp
from jax.experimental import pallas as pl
from jax.experimental.pallas import tpu as pltpu


# ----------------------------------------------------------------------------
# Fused kernel: per batch-tile
#   qx = q @ WqT + bq                       (bt*q_len, n_head*hidden)   [all heads]
#   kx = k @ WkT + bk                       (bt*k_len, n_head*hidden)
#   per head h:
#     s      = qx_h @ kx_h^T                (bt, q_len, k_len)
#     attn   = softmax(s, -1)               -> score_ref[h]
#     o_h    = attn @ kx_h                  (v is None -> use kx)
#     acc   += o_h @ WpT[h]                 (fused output projection)
#   out = acc + bp
# ----------------------------------------------------------------------------
def _attn_kernel(q_ref, k_ref, wq_ref, bq_ref, wk_ref, bk_ref, wp_ref, bp_ref,
                 out_ref, score_ref, *, n_head, hidden_dim):
    bt, q_len, embed = q_ref.shape
    _, k_len, _ = k_ref.shape
    nh = n_head * hidden_dim
    out_dim = wp_ref.shape[1]

    q2 = q_ref[...].reshape(bt * q_len, embed).astype(jnp.bfloat16)
    k2 = k_ref[...].reshape(bt * k_len, embed).astype(jnp.bfloat16)

    # Fused all-head input projections (bf16 operands, f32 accumulation).
    qx = (jnp.dot(q2, wq_ref[...].astype(jnp.bfloat16),
                  preferred_element_type=jnp.float32) + bq_ref[...])
    kx = (jnp.dot(k2, wk_ref[...].astype(jnp.bfloat16),
                  preferred_element_type=jnp.float32) + bk_ref[...])
    qx = qx.reshape(bt, q_len, nh)
    kx = kx.reshape(bt, k_len, nh)

    acc = jnp.zeros((bt * q_len, out_dim), jnp.float32)
    for h in range(n_head):                       # static unroll, n_head is small
        lo = h * hidden_dim
        qxh = qx[:, :, lo:lo + hidden_dim].astype(jnp.bfloat16)   # (bt, q_len, hid)
        kxh = kx[:, :, lo:lo + hidden_dim].astype(jnp.bfloat16)   # (bt, k_len, hid)

        # dot_product score + numerically-stable softmax along last axis.
        # TODO(synk): for very long k_len (v7x 64 MiB VMEM), add k-tiled
        # online-softmax accumulation instead of materializing (q_len, k_len).
        s = jnp.einsum('bqd,bkd->bqk', qxh, kxh,
                       preferred_element_type=jnp.float32)        # (bt, q_len, k_len)
        m = jnp.max(s, axis=-1, keepdims=True)
        e = jnp.exp(s - m)
        denom = jnp.sum(e, axis=-1, keepdims=True)
        attn = e * pl.reciprocal(denom, approx=True)

        score_ref[h] = attn.astype(score_ref.dtype)

        # v is None -> attend over kx; fuse the per-head slice of the output
        # projection so no (B, q_len, n_head*hidden) activation hits HBM.
        o = jnp.einsum('bqk,bkd->bqd', attn.astype(jnp.bfloat16), kxh,
                       preferred_element_type=jnp.float32)        # (bt, q_len, hid)
        acc = acc + jnp.dot(
            o.reshape(bt * q_len, hidden_dim).astype(jnp.bfloat16),
            wp_ref[lo:lo + hidden_dim, :].astype(jnp.bfloat16),
            preferred_element_type=jnp.float32)

    y = acc + bp_ref[...]
    out_ref[...] = y.reshape(bt, q_len, out_dim).astype(out_ref.dtype)


def _pick_batch_tile(batch):
    # Batch several batch elements per grid step (fills the MXU M dim) while
    # keeping >=2 grid steps so v7x can shard across its 2 TensorCores.
    for bt in range(batch // 2, 0, -1):
        if batch % bt == 0:
            return bt
    return 1


def attention_forward(k, q, params, *, n_head, hidden_dim, batch_tile=None):
    """Pallas implementation of Attention.forward(k, q) with
    score_function='dot_product', v=None, mask=None, dropout=0."""
    if q.ndim == 2:
        q = q[:, None, :]
    if k.ndim == 2:
        k = k[:, None, :]

    B, k_len, embed_dim = k.shape
    q_len = q.shape[1]
    nh = n_head * hidden_dim

    # Pre-transpose weights to (K, N) so the kernel feeds the MXU with no
    # in-kernel transpose; keep biases as 2-D (1, N) refs.
    wq_t = params["wq"].T.astype(jnp.float32)          # (embed, n_head*hidden)
    wk_t = params["wk"].T.astype(jnp.float32)          # (embed, n_head*hidden)
    wp_t = params["wp"].T.astype(jnp.float32)          # (n_head*hidden, out_dim)
    out_dim = wp_t.shape[1]
    bq2 = params["bq"].reshape(1, nh).astype(jnp.float32)
    bk2 = params["bk"].reshape(1, nh).astype(jnp.float32)
    bp2 = params["bp"].reshape(1, out_dim).astype(jnp.float32)

    bt = batch_tile if batch_tile is not None else _pick_batch_tile(B)
    assert B % bt == 0, "batch_tile must divide batch"

    kernel = functools.partial(_attn_kernel, n_head=n_head, hidden_dim=hidden_dim)

    out, score_hb = pl.pallas_call(
        kernel,
        out_shape=(
            jax.ShapeDtypeStruct((B, q_len, out_dim), jnp.float32),
            jax.ShapeDtypeStruct((n_head, B, q_len, k_len), jnp.float32),
        ),
        grid_spec=pltpu.PrefetchScalarGridSpec(
            num_scalar_prefetch=0,
            grid=(B // bt,),
            in_specs=[
                pl.BlockSpec((bt, q_len, embed_dim), lambda b: (b, 0, 0)),   # q
                pl.BlockSpec((bt, k_len, embed_dim), lambda b: (b, 0, 0)),   # k
                pl.BlockSpec((embed_dim, nh), lambda b: (0, 0)),             # WqT
                pl.BlockSpec((1, nh), lambda b: (0, 0)),                     # bq
                pl.BlockSpec((embed_dim, nh), lambda b: (0, 0)),             # WkT
                pl.BlockSpec((1, nh), lambda b: (0, 0)),                     # bk
                pl.BlockSpec((nh, out_dim), lambda b: (0, 0)),               # WpT
                pl.BlockSpec((1, out_dim), lambda b: (0, 0)),                # bp
            ],
            out_specs=[
                pl.BlockSpec((bt, q_len, out_dim), lambda b: (b, 0, 0)),
                pl.BlockSpec((n_head, bt, q_len, k_len), lambda b: (0, b, 0, 0)),
            ],
        ),
        compiler_params=pltpu.CompilerParams(
            dimension_semantics=("parallel",)),
    )(q, k, wq_t, bq2, wk_t, bk2, wp_t, bp2)

    # Head-major flatten, matching PyTorch permute(2,0,1,3).view(-1, ...).
    score = score_hb.reshape(n_head * B, q_len, k_len)
    # dropout(p=0) is identity.
    return out, score


# ----------------------------------------------------------------------------
# Plain-JAX reference (mirrors the PyTorch forward) for correctness check.
# ----------------------------------------------------------------------------
def attention_reference(k, q, params, *, n_head, hidden_dim):
    B, k_len, _ = k.shape
    q_len = q.shape[1]
    kx = (k @ params["wk"].T + params["bk"]).reshape(B, k_len, n_head, hidden_dim)
    kx = jnp.transpose(kx, (2, 0, 1, 3)).reshape(-1, k_len, hidden_dim)
    qx = (q @ params["wq"].T + params["bq"]).reshape(B, q_len, n_head, hidden_dim)
    qx = jnp.transpose(qx, (2, 0, 1, 3)).reshape(-1, q_len, hidden_dim)
    score = jnp.einsum("bqd,bkd->bqk", qx, kx)
    score = jax.nn.softmax(score, axis=-1)
    out = jnp.einsum("bqk,bkd->bqd", score, kx)
    out = jnp.concatenate(jnp.split(out, n_head, axis=0), axis=-1)
    out = out @ params["wp"].T + params["bp"]
    return out, score


if __name__ == "__main__":
    # Small, lane-dense config: embed_dim=128, n_head=2, hidden_dim=128,
    # out_dim=embed_dim=128, seq lengths 128 (multiples of 128 -> no masked stores).
    B, q_len, k_len = 4, 128, 128
    embed_dim, n_head, hidden_dim = 128, 2, 128
    out_dim = embed_dim
    nh = n_head * hidden_dim

    key = jax.random.PRNGKey(0)
    ks = jax.random.split(key, 8)
    bound_qk = 1.0 / math.sqrt(embed_dim)
    bound_p = 1.0 / math.sqrt(nh)
    params = {
        "wq": jax.random.uniform(ks[0], (nh, embed_dim), jnp.float32, -bound_qk, bound_qk),
        "bq": jax.random.uniform(ks[1], (nh,), jnp.float32, -bound_qk, bound_qk),
        "wk": jax.random.uniform(ks[2], (nh, embed_dim), jnp.float32, -bound_qk, bound_qk),
        "bk": jax.random.uniform(ks[3], (nh,), jnp.float32, -bound_qk, bound_qk),
        "wp": jax.random.uniform(ks[4], (out_dim, nh), jnp.float32, -bound_p, bound_p),
        "bp": jax.random.uniform(ks[5], (out_dim,), jnp.float32, -bound_p, bound_p),
    }

    k_in = jax.random.normal(ks[6], (B, k_len, embed_dim), jnp.float32)
    q_in = jax.random.normal(ks[7], (B, q_len, embed_dim), jnp.float32)

    fwd = functools.partial(attention_forward, params=params,
                            n_head=n_head, hidden_dim=hidden_dim)
    output, score = jax.jit(fwd)(k_in, q_in)
    jax.block_until_ready((output, score))

    ref_out, ref_score = attention_reference(k_in, q_in, params,
                                             n_head=n_head, hidden_dim=hidden_dim)
    assert output.shape == (B, q_len, out_dim)
    assert score.shape == (n_head * B, q_len, k_len)
    # Tolerances account for bf16 MXU operands (f32 accumulation) + approx recip.
    assert jnp.allclose(output, ref_out, atol=3e-2, rtol=3e-2), \
        float(jnp.max(jnp.abs(output - ref_out)))
    assert jnp.allclose(score, ref_score, atol=2e-2, rtol=2e-2), \
        float(jnp.max(jnp.abs(score - ref_score)))

    print("KERNEL_OK")
</pallas_src>

<mosaic_0001>
module attributes {stable_mosaic.version = 11 : i64} {
  func.func @_attn_kernel(%arg0: i32, %arg1: memref<2x128x128xf32, #tpu.memory_space<vmem>>, %arg2: memref<2x128x128xf32, #tpu.memory_space<vmem>>, %arg3: memref<128x256xf32, #tpu.memory_space<vmem>>, %arg4: memref<1x256xf32, #tpu.memory_space<vmem>>, %arg5: memref<128x256xf32, #tpu.memory_space<vmem>>, %arg6: memref<1x256xf32, #tpu.memory_space<vmem>>, %arg7: memref<256x128xf32, #tpu.memory_space<vmem>>, %arg8: memref<1x128xf32, #tpu.memory_space<vmem>>, %arg9: memref<2x128x128xf32, #tpu.memory_space<vmem>>, %arg10: memref<2x2x128x128xf32, #tpu.memory_space<vmem>>) attributes {dimension_semantics = [#tpu.dimension_semantics<parallel>], iteration_bounds = array<i64: 2>, scalar_prefetch = 0 : i64, scratch_operands = 0 : i64, tpu.core_type = #tpu.core_type<tc>, window_params = [{transform_indices = @transform_0, window_bounds = array<i64: 2, 128, 128>}, {transform_indices = @transform_1, window_bounds = array<i64: 2, 128, 128>}, {pipeline_mode = #tpu.pipeline_mode<synchronous>, transform_indices = @transform_2, window_bounds = array<i64: 128, 256>}, {pipeline_mode = #tpu.pipeline_mode<synchronous>, transform_indices = @transform_3, window_bounds = array<i64: 1, 256>}, {pipeline_mode = #tpu.pipeline_mode<synchronous>, transform_indices = @transform_4, window_bounds = array<i64: 128, 256>}, {pipeline_mode = #tpu.pipeline_mode<synchronous>, transform_indices = @transform_5, window_bounds = array<i64: 1, 256>}, {pipeline_mode = #tpu.pipeline_mode<synchronous>, transform_indices = @transform_6, window_bounds = array<i64: 256, 128>}, {pipeline_mode = #tpu.pipeline_mode<synchronous>, transform_indices = @transform_7, window_bounds = array<i64: 1, 128>}, {transform_indices = @transform_8, window_bounds = array<i64: 2, 128, 128>}, {transform_indices = @transform_9, window_bounds = array<i64: 2, 2, 128, 128>}]} {
    %c0 = arith.constant 0 : index
    %c0_0 = arith.constant 0 : index
    %c0_1 = arith.constant 0 : index
    %0 = vector.load %arg1[%c0, %c0_0, %c0_1] : memref<2x128x128xf32, #tpu.memory_space<vmem>>, vector<2x128x128xf32>
    %1 = vector.shape_cast %0 : vector<2x128x128xf32> to vector<256x128xf32>
    %2 = arith.truncf %1 : vector<256x128xf32> to vector<256x128xbf16>
    %c0_2 = arith.constant 0 : index
    %c0_3 = arith.constant 0 : index
    %c0_4 = arith.constant 0 : index
    %3 = vector.load %arg2[%c0_2, %c0_3, %c0_4] : memref<2x128x128xf32, #tpu.memory_space<vmem>>, vector<2x128x128xf32>
    %4 = vector.shape_cast %3 : vector<2x128x128xf32> to vector<256x128xf32>
    %5 = arith.truncf %4 : vector<256x128xf32> to vector<256x128xbf16>
    %c0_5 = arith.constant 0 : index
    %c0_6 = arith.constant 0 : index
    %6 = vector.load %arg3[%c0_5, %c0_6] : memref<128x256xf32, #tpu.memory_space<vmem>>, vector<128x256xf32>
    %7 = arith.truncf %6 : vector<128x256xf32> to vector<128x256xbf16>
    %cst = arith.constant dense<0.000000e+00> : vector<256x256xf32>
    %8 = tpu.matmul %2, %7, %cst {dimension_numbers = #tpu.dot_dimension_numbers<[1], [0], [0], [1], [0, 0, 1, 1], [], []>} : vector<256x128xbf16>, vector<128x256xbf16>, vector<256x256xf32> -> vector<256x256xf32>
    %c0_7 = arith.constant 0 : index
    %c0_8 = arith.constant 0 : index
    %9 = vector.load %arg4[%c0_7, %c0_8] : memref<1x256xf32, #tpu.memory_space<vmem>>, vector<1x256xf32>
    %10 = vector.broadcast %9 : vector<1x256xf32> to vector<256x256xf32>
    %11 = arith.addf %8, %10 : vector<256x256xf32>
    %c0_9 = arith.constant 0 : index
    %c0_10 = arith.constant 0 : index
    %12 = vector.load %arg5[%c0_9, %c0_10] : memref<128x256xf32, #tpu.memory_space<vmem>>, vector<128x256xf32>
    %13 = arith.truncf %12 : vector<128x256xf32> to vector<128x256xbf16>
    %cst_11 = arith.constant dense<0.000000e+00> : vector<256x256xf32>
    %14 = tpu.matmul %5, %13, %cst_11 {dimension_numbers = #tpu.dot_dimension_numbers<[1], [0], [0], [1], [0, 0, 1, 1], [], []>} : vector<256x128xbf16>, vector<128x256xbf16>, vector<256x256xf32> -> vector<256x256xf32>
    %c0_12 = arith.constant 0 : index
    %c0_13 = arith.constant 0 : index
    %15 = vector.load %arg6[%c0_12, %c0_13] : memref<1x256xf32, #tpu.memory_space<vmem>>, vector<1x256xf32>
    %16 = vector.broadcast %15 : vector<1x256xf32> to vector<256x256xf32>
    %17 = arith.addf %14, %16 : vector<256x256xf32>
    %18 = vector.shape_cast %11 : vector<256x256xf32> to vector<2x128x256xf32>
    %19 = vector.shape_cast %17 : vector<256x256xf32> to vector<2x128x256xf32>
    %cst_14 = arith.constant 0.000000e+00 : f32
    %20 = vector.broadcast %cst_14 : f32 to vector<256x128xf32>
    %21 = vector.extract_strided_slice %18 {offsets = [0, 0, 0], sizes = [2, 128, 128], strides = [1, 1, 1]} : vector<2x128x256xf32> to vector<2x128x128xf32>
    %22 = arith.truncf %21 : vector<2x128x128xf32> to vector<2x128x128xbf16>
    %23 = vector.extract_strided_slice %19 {offsets = [0, 0, 0], sizes = [2, 128, 128], strides = [1, 1, 1]} : vector<2x128x256xf32> to vector<2x128x128xf32>
    %24 = arith.truncf %23 : vector<2x128x128xf32> to vector<2x128x128xbf16>
    "tpu.trace_start"() <{level = 10 : i32, message = "bqd,bkd->bqk"}> : () -> ()
    %cst_15 = arith.constant dense<0.000000e+00> : vector<2x128x128xf32>
    %25 = tpu.matmul %22, %24, %cst_15 {dimension_numbers = #tpu.dot_dimension_numbers<[2], [2], [1], [1], [0, 0, 0, 1, 1, 1], [0], [0]>} : vector<2x128x128xbf16>, vector<2x128x128xbf16>, vector<2x128x128xf32> -> vector<2x128x128xf32>
    "tpu.trace_stop"() : () -> ()
    %cst_16 = arith.constant dense<0xFF800000> : vector<2x128xf32>
    %26 = vector.multi_reduction <maximumf>, %25, %cst_16 [2] : vector<2x128x128xf32> to vector<2x128xf32>
    %27 = vector.shape_cast %26 : vector<2x128xf32> to vector<2x128x1xf32>
    %28 = vector.broadcast %27 : vector<2x128x1xf32> to vector<2x128x128xf32>
    %29 = arith.subf %25, %28 : vector<2x128x128xf32>
    %30 = math.exp %29 : vector<2x128x128xf32>
    %cst_17 = arith.constant dense<0.000000e+00> : vector<2x128xf32>
    %31 = vector.multi_reduction <add>, %30, %cst_17 [2] : vector<2x128x128xf32> to vector<2x128xf32>
    %32 = vector.shape_cast %31 : vector<2x128xf32> to vector<2x128x1xf32>
    %33 = tpu.reciprocal %32 {approx = true} : vector<2x128x1xf32> -> vector<2x128x1xf32>
    %34 = vector.broadcast %33 : vector<2x128x1xf32> to vector<2x128x128xf32>
    %35 = arith.mulf %30, %34 : vector<2x128x128xf32>
    %c0_18 = arith.constant 0 : index
    %c0_19 = arith.constant 0 : index
    %c0_20 = arith.constant 0 : index
    %c0_21 = arith.constant 0 : index
    %36 = vector.load %arg10[%c0_18, %c0_19, %c0_20, %c0_21] : memref<2x2x128x128xf32, #tpu.memory_space<vmem>>, vector<1x2x128x128xf32>
    %37 = vector.shape_cast %36 : vector<1x2x128x128xf32> to vector<2x128x128xf32>
    %38 = vector.shape_cast %35 : vector<2x128x128xf32> to vector<1x2x128x128xf32>
    tpu.vector_store %arg10[%c0_18, %c0_19, %c0_20, %c0_21], %38 {strides = array<i32>} : memref<2x2x128x128xf32, #tpu.memory_space<vmem>>, vector<1x2x128x128xf32>,
    %39 = arith.truncf %35 : vector<2x128x128xf32> to vector<2x128x128xbf16>
    "tpu.trace_start"() <{level = 10 : i32, message = "bqk,bkd->bqd"}> : () -> ()
    %cst_22 = arith.constant dense<0.000000e+00> : vector<2x128x128xf32>
    %40 = tpu.matmul %39, %24, %cst_22 {dimension_numbers = #tpu.dot_dimension_numbers<[2], [1], [1], [2], [0, 0, 0, 1, 1, 2], [0], [0]>} : vector<2x128x128xbf16>, vector<2x128x128xbf16>, vector<2x128x128xf32> -> vector<2x128x128xf32>
    "tpu.trace_stop"() : () -> ()
    %41 = vector.shape_cast %40 : vector<2x128x128xf32> to vector<256x128xf32>
    %42 = arith.truncf %41 : vector<256x128xf32> to vector<256x128xbf16>
    %c0_23 = arith.constant 0 : index
    %c0_24 = arith.constant 0 : index
    %43 = vector.load %arg7[%c0_23, %c0_24] : memref<256x128xf32, #tpu.memory_space<vmem>>, vector<128x128xf32>
    %44 = arith.truncf %43 : vector<128x128xf32> to vector<128x128xbf16>
    %cst_25 = arith.constant dense<0.000000e+00> : vector<256x128xf32>
    %45 = tpu.matmul %42, %44, %cst_25 {dimension_numbers = #tpu.dot_dimension_numbers<[1], [0], [0], [1], [0, 0, 1, 1], [], []>} : vector<256x128xbf16>, vector<128x128xbf16>, vector<256x128xf32> -> vector<256x128xf32>
    %46 = arith.addf %20, %45 : vector<256x128xf32>
    %47 = vector.extract_strided_slice %18 {offsets = [0, 0, 128], sizes = [2, 128, 128], strides = [1, 1, 1]} : vector<2x128x256xf32> to vector<2x128x128xf32>
    %48 = arith.truncf %47 : vector<2x128x128xf32> to vector<2x128x128xbf16>
    %49 = vector.extract_strided_slice %19 {offsets = [0, 0, 128], sizes = [2, 128, 128], strides = [1, 1, 1]} : vector<2x128x256xf32> to vector<2x128x128xf32>
    %50 = arith.truncf %49 : vector<2x128x128xf32> to vector<2x128x128xbf16>
    "tpu.trace_start"() <{level = 10 : i32, message = "bqd,bkd->bqk"}> : () -> ()
    %cst_26 = arith.constant dense<0.000000e+00> : vector<2x128x128xf32>
    %51 = tpu.matmul %48, %50, %cst_26 {dimension_numbers = #tpu.dot_dimension_numbers<[2], [2], [1], [1], [0, 0, 0, 1, 1, 1], [0], [0]>} : vector<2x128x128xbf16>, vector<2x128x128xbf16>, vector<2x128x128xf32> -> vector<2x128x128xf32>
    "tpu.trace_stop"() : () -> ()
    %cst_27 = arith.constant dense<0xFF800000> : vector<2x128xf32>
    %52 = vector.multi_reduction <maximumf>, %51, %cst_27 [2] : vector<2x128x128xf32> to vector<2x128xf32>
    %53 = vector.shape_cast %52 : vector<2x128xf32> to vector<2x128x1xf32>
    %54 = vector.broadcast %53 : vector<2x128x1xf32> to vector<2x128x128xf32>
    %55 = arith.subf %51, %54 : vector<2x128x128xf32>
    %56 = math.exp %55 : vector<2x128x128xf32>
    %cst_28 = arith.constant dense<0.000000e+00> : vector<2x128xf32>
    %57 = vector.multi_reduction <add>, %56, %cst_28 [2] : vector<2x128x128xf32> to vector<2x128xf32>
    %58 = vector.shape_cast %57 : vector<2x128xf32> to vector<2x128x1xf32>
    %59 = tpu.reciprocal %58 {approx = true} : vector<2x128x1xf32> -> vector<2x128x1xf32>
    %60 = vector.broadcast %59 : vector<2x128x1xf32> to vector<2x128x128xf32>
    %61 = arith.mulf %56, %60 : vector<2x128x128xf32>
    %c1 = arith.constant 1 : index
    %c0_29 = arith.constant 0 : index
    %c0_30 = arith.constant 0 : index
    %c0_31 = arith.constant 0 : index
    %62 = vector.load %arg10[%c1, %c0_29, %c0_30, %c0_31] : memref<2x2x128x128xf32, #tpu.memory_space<vmem>>, vector<1x2x128x128xf32>
    %63 = vector.shape_cast %62 : vector<1x2x128x128xf32> to vector<2x128x128xf32>
    %64 = vector.shape_cast %61 : vector<2x128x128xf32> to vector<1x2x128x128xf32>
    tpu.vector_store %arg10[%c1, %c0_29, %c0_30, %c0_31], %64 {strides = array<i32>} : memref<2x2x128x128xf32, #tpu.memory_space<vmem>>, vector<1x2x128x128xf32>,
    %65 = arith.truncf %61 : vector<2x128x128xf32> to vector<2x128x128xbf16>
    "tpu.trace_start"() <{level = 10 : i32, message = "bqk,bkd->bqd"}> : () -> ()
    %cst_32 = arith.constant dense<0.000000e+00> : vector<2x128x128xf32>
    %66 = tpu.matmul %65, %50, %cst_32 {dimension_numbers = #tpu.dot_dimension_numbers<[2], [1], [1], [2], [0, 0, 0, 1, 1, 2], [0], [0]>} : vector<2x128x128xbf16>, vector<2x128x128xbf16>, vector<2x128x128xf32> -> vector<2x128x128xf32>
    "tpu.trace_stop"() : () -> ()
    %67 = vector.shape_cast %66 : vector<2x128x128xf32> to vector<256x128xf32>
    %68 = arith.truncf %67 : vector<256x128xf32> to vector<256x128xbf16>
    %c128 = arith.constant 128 : index
    %c0_33 = arith.constant 0 : index
    %69 = vector.load %arg7[%c128, %c0_33] : memref<256x128xf32, #tpu.memory_space<vmem>>, vector<128x128xf32>
    %70 = arith.truncf %69 : vector<128x128xf32> to vector<128x128xbf16>
    %cst_34 = arith.constant dense<0.000000e+00> : vector<256x128xf32>
    %71 = tpu.matmul %68, %70, %cst_34 {dimension_numbers = #tpu.dot_dimension_numbers<[1], [0], [0], [1], [0, 0, 1, 1], [], []>} : vector<256x128xbf16>, vector<128x128xbf16>, vector<256x128xf32> -> vector<256x128xf32>
    %72 = arith.addf %46, %71 : vector<256x128xf32>
    %c0_35 = arith.constant 0 : index
    %c0_36 = arith.constant 0 : index
    %73 = vector.load %arg8[%c0_35, %c0_36] : memref<1x128xf32, #tpu.memory_space<vmem>>, vector<1x128xf32>
    %74 = vector.broadcast %73 : vector<1x128xf32> to vector<256x128xf32>
    %75 = arith.addf %72, %74 : vector<256x128xf32>
    %76 = vector.shape_cast %75 : vector<256x128xf32> to vector<2x128x128xf32>
    %c0_37 = arith.constant 0 : index
    %c0_38 = arith.constant 0 : index
    %c0_39 = arith.constant 0 : index
    %77 = vector.load %arg9[%c0_37, %c0_38, %c0_39] : memref<2x128x128xf32, #tpu.memory_space<vmem>>, vector<2x128x128xf32>
    tpu.vector_store %arg9[%c0_37, %c0_38, %c0_39], %76 {strides = array<i32>} : memref<2x128x128xf32, #tpu.memory_space<vmem>>, vector<2x128x128xf32>,
    return
  }
  func.func @transform_0(%arg0: i32) -> (i32, i32, i32) {
    %c0_i32 = arith.constant 0 : i32
    %c0_i32_0 = arith.constant 0 : i32
    %c0_i32_1 = arith.constant 0 : i32
    return %arg0, %c0_i32, %c0_i32_0 : i32, i32, i32
  }
  func.func @transform_1(%arg0: i32) -> (i32, i32, i32) {
    %c0_i32 = arith.constant 0 : i32
    %c0_i32_0 = arith.constant 0 : i32
    %c0_i32_1 = arith.constant 0 : i32
    return %arg0, %c0_i32, %c0_i32_0 : i32, i32, i32
  }
  func.func @transform_2(%arg0: i32) -> (i32, i32) {
    %c0_i32 = arith.constant 0 : i32
    %c0_i32_0 = arith.constant 0 : i32
    %c0_i32_1 = arith.constant 0 : i32
    return %c0_i32, %c0_i32_0 : i32, i32
  }
  func.func @transform_3(%arg0: i32) -> (i32, i32) {
    %c0_i32 = arith.constant 0 : i32
    %c0_i32_0 = arith.constant 0 : i32
    %c0_i32_1 = arith.constant 0 : i32
    return %c0_i32, %c0_i32_0 : i32, i32
  }
  func.func @transform_4(%arg0: i32) -> (i32, i32) {
    %c0_i32 = arith.constant 0 : i32
    %c0_i32_0 = arith.constant 0 : i32
    %c0_i32_1 = arith.constant 0 : i32
    return %c0_i32, %c0_i32_0 : i32, i32
  }
  func.func @transform_5(%arg0: i32) -> (i32, i32) {
    %c0_i32 = arith.constant 0 : i32
    %c0_i32_0 = arith.constant 0 : i32
    %c0_i32_1 = arith.constant 0 : i32
    return %c0_i32, %c0_i32_0 : i32, i32
  }
  func.func @transform_6(%arg0: i32) -> (i32, i32) {
    %c0_i32 = arith.constant 0 : i32
    %c0_i32_0 = arith.constant 0 : i32
    %c0_i32_1 = arith.constant 0 : i32
    return %c0_i32, %c0_i32_0 : i32, i32
  }
  func.func @transform_7(%arg0: i32) -> (i32, i32) {
    %c0_i32 = arith.constant 0 : i32
    %c0_i32_0 = arith.constant 0 : i32
    %c0_i32_1 = arith.constant 0 : i32
    return %c0_i32, %c0_i32_0 : i32, i32
  }
  func.func @transform_8(%arg0: i32) -> (i32, i32, i32) {
    %c0_i32 = arith.constant 0 : i32
    %c0_i32_0 = arith.constant 0 : i32
    %c0_i32_1 = arith.constant 0 : i32
    return %arg0, %c0_i32, %c0_i32_0 : i32, i32, i32
  }
  func.func @transform_9(%arg0: i32) -> (i32, i32, i32, i32) {
    %c0_i32 = arith.constant 0 : i32
    %c0_i32_0 = arith.constant 0 : i32
    %c0_i32_1 = arith.constant 0 : i32
    %c0_i32_2 = arith.constant 0 : i32
    return %c0_i32, %arg0, %c0_i32_0, %c0_i32_1 : i32, i32, i32, i32
  }
}

</mosaic_0001>

<bundles_post_ra>
// kernel: attention_forward.1
= control target key start
LH: loop header
LB: loop body
LE: loop exit
PB: predicated region body
PF: predicated region fallthrough
CT: control target
= control target key end

     0   :  { %s6402_s0 = inlined_call_operand.hbm [shape: f32[4,128,128], index: 0, kind: input, shape index: {}]   ;;  %s6403_s1 = inlined_call_operand.hbm [shape: f32[4,128,128], index: 1, kind: input, shape index: {}]   ;;  %s6404_s2 = inlined_call_operand.hbm [shape: f32[128,256], index: 2, kind: input, shape index: {}]   ;;  %s6405_s3 = inlined_call_operand.vmem [shape: f32[1,256], index: 3, kind: input, shape index: {}]   ;;  %s6406_s4 = inlined_call_operand.hbm [shape: f32[128,256], index: 4, kind: input, shape index: {}]   ;;  %s6407_s5 = inlined_call_operand.vmem [shape: f32[1,256], index: 5, kind: input, shape index: {}]   ;;  %s6408_s6 = inlined_call_operand.hbm [shape: f32[256,128], index: 6, kind: input, shape index: {}]   ;;  %s6409_s7 = inlined_call_operand.vmem [shape: f32[1,128], index: 7, kind: input, shape index: {}]   ;;  %s6410_s8 = inlined_call_operand.hbm [shape: f32[4,128,128], index: 8, kind: output, shape index: {0}]   ;;  %s6411_s9 = inlined_call_operand.hbm [shape: f32[2,4,128,128], index: 9, kind: output, shape index: {1}]  }
   0x1   :  { %6465 = sst [smem:[#allocation55_spill]] %s6402_s0 }
   0x2   :  { %6466 = sst [smem:[#allocation56_spill]] %s6404_s2 }
   0x3   :  { %6467 = sst [smem:[#allocation57_spill]] %s6406_s4 }
   0x4   :  { %6468 = sst [smem:[#allocation58_spill]] %s6408_s6 }
   0x5   :  { %6469 = sst [smem:[#allocation59_spill]] %s6411_s9 }
   0x6   :  { %15 = vsyncpa [#allocation3], 0 }
   0x7   :  { %17 = vsyncpa [#allocation3 + $0x1], 0 }
   0x8   :  { %18 = vsyncpa [#allocation6], 0 }
   0x9   :  { %20 = vsyncpa [#allocation6 + $0x1], 0 }
   0xa   :  { %21 = vsyncpa [#allocation9], 0 }
   0xb   :  { %22 = vsyncpa [#allocation4], 0 }
   0xc   :  { %24 = vsyncpa [#allocation4 + $0x1], 0 }
   0xd   :  { %25 = vsyncpa [#allocation13], 0 }
   0xe   :  { %27 = vsyncpa [#allocation13 + $0x1], 0  ;;  %s4572_s30 = smov 0   ;;  %s4574_s10 = smov 0  }
   0xf   :  { %s4576_s11 = smov 0   ;;  %s4578_s12 = smov 0  }
  0x10 LB: > { %6470 = sst [smem:[#allocation22_spill]] %s4488_s30  ;;  %s4593_s13 = sadd.s32 4294967295, %s4500_s12   ;;  %s4500_s12 = sphi %s4578_s12, %s6636_s12   ;;  %s4496_s11 = sphi %s4576_s11, %s6635_s11   ;;  %s4492_s10 = sphi %s4574_s10, %s6634_s10   ;;  %s4488_s30 = sphi %s4572_s30, %s6633_s30  }
  0x11   : > { %s3262_s14 = sadd.s32 4294967294, %s4500_s12   ;;  %p53_p0 = scmp.ne.s32.totalorder %s4492_s10, %s4488_s30 }
  0x12   : > { %p6412_p1 = scmp.eq.s32.totalorder %s4593_s13, 0  ;;  %p235_p3 = scmp.eq.s32.totalorder %s3262_s14, 1 }
  0x13   : > { %p3263_p5 = scmp.ge.s32.totalorder %s4500_s12, 1  ;;  %p268_p7 = scmp.lt.s32.totalorder %s4500_s12, 3 }
  0x14   : > { %p4602_p4 = por %p6412_p1, %p53_p0  ;;  %p4607_p6 = por %p235_p3, %p53_p0 }
  0x15   : > { %p4612_p8 = pnand %p3263_p5, %p268_p7  ;;  %s4502_s18 = smov [#allocation7]  }
  0x16   : > { %s6471_s15 = scalar_select %p4602_p4, 1, 0 }
  0x17   : > { %s6472_s16 = scalar_select %p4607_p6, 1, 0 }
  0x18   : > { %s6474_s17 = scalar_select %p4612_p8, 1, 0 }
  0x19   : > { %6473 = sst [smem:[#allocation23_spill]] %s6472_s16  ;;  %s280_s19 = sshll.u32 %s4502_s18, 4  ;;  %s4616_s19 = int_to_ptr.vmem [resolvable:$true] %s280_s19 }
  0x1a   : > { %p3937_p9 = pneg %p4612_p8  ;;  %s4503_s21 = smov [#allocation8]  }
  0x1b   : > { %s296_s22 = sshll.u32 %s4503_s21, 4  ;;  %s4504_s23 = smov [#allocation10]   ;;  %s4627_s22 = int_to_ptr.vmem [resolvable:$true] %s296_s22 }
  0x1c   : > { %p4623_p11 = pnand %p3937_p9, %p6412_p1  ;;  %s4629_s24 = sshll.u32 %s4504_s23, 4  ;;  %s313_s24 = int_to_ptr.vmem [resolvable:$true] %s4629_s24 }
  0x1d   : > { %s6476_s2 = sld [smem:[#allocation56_spill]] }
  0x1e   : > { %p4639_p13 = pneg %p4623_p11 }
  0x23   : > { %s4274_s27 = scalar_lea.hbm %s6476_s2, 4096 }
  0x24   : > { %p4275_p12 = scmp.ne.s32.totalorder %s6476_s2, %s4274_s27  ;;  %p4281_p5 = scmp.lt.u32.totalorder %s4274_s27, %s6476_s2 }
  0x26   : > { %p4277_p0 = pnand %p4639_p13, %p4275_p12 }
  0x28   : > { %p4278_p3 = pneg %p4277_p0 }
  0x2a   : > { %p4283_p7 = pnand %p4281_p5, %p4278_p3 }
  0x2c   : > { %4286 = shalt.err (!%p4283_p7)
}
  0x2d   : > { %s4287_s23 = scalar_lea.vmem %s4616_s19, 4096  ;;  %p4295_p2 = scmp.lt.s32.totalorder %s4616_s19, %s4616_s19 }
  0x2e   : > { %p4288_p9 = scmp.ne.s32.totalorder %s4616_s19, %s4287_s23  ;;  %p4296_p6 = scmp.lt.s32.totalorder %s4287_s23, %s4287_s23 }
  0x30   : > { %p4290_p10 = pnand %p4288_p9, %p4639_p13  ;;  %p4297_p12 = por %p4296_p6, %p4295_p2 }
  0x32   : > { %p4291_p1 = pneg %p4290_p10 }
  0x34   : > { %p4298_p0 = pnand %p4297_p12, %p4291_p1 }
  0x36   : > { %4301 = shalt.err (!%p4298_p0)
}
  0x37   : > { %s4505_s25 = smov 256   ;;  %s4506_s26 = smov 16  }
  0x38   : > { %3940 = dma.hbm_to_vmem [thread:$0]  (!%p4623_p11), %s6476_s2, 4096, %s4616_s19, [#allocation6], %s4505_s25, %s4505_s25, %s4506_s26  }
  0x39   : > { %s6478_s4 = sld [smem:[#allocation57_spill]] }
  0x3f   : > { %s4302_s21 = scalar_lea.hbm %s6478_s4, 4096 }
  0x40   : > { %p4303_p2 = scmp.ne.s32.totalorder %s6478_s4, %s4302_s21  ;;  %p4309_p10 = scmp.lt.u32.totalorder %s4302_s21, %s6478_s4 }
  0x42   : > { %p4305_p1 = pnand %p4303_p2, %p4639_p13 }
  0x44   : > { %p4306_p6 = pneg %p4305_p1 }
  0x46   : > { %p4311_p3 = pnand %p4309_p10, %p4306_p6 }
  0x48   : > { %4314 = shalt.err (!%p4311_p3)
}
  0x49   : > { %s4315_s19 = scalar_lea.vmem %s4627_s22, 4096  ;;  %p4323_p12 = scmp.lt.s32.totalorder %s4627_s22, %s4627_s22 }
  0x4a   : > { %p4316_p5 = scmp.ne.s32.totalorder %s4627_s22, %s4315_s19  ;;  %p4324_p0 = scmp.lt.s32.totalorder %s4315_s19, %s4315_s19 }
  0x4c   : > { %p4318_p7 = pnand %p4316_p5, %p4639_p13  ;;  %p4325_p2 = por %p4324_p0, %p4323_p12 }
  0x4e   : > { %p4319_p9 = pneg %p4318_p7 }
  0x50   : > { %p4326_p1 = pnand %p4325_p2, %p4319_p9 }
  0x52   : > { %4329 = shalt.err (!%p4326_p1)
}
  0x53   : > { %3943 = dma.hbm_to_vmem [thread:$0]  (!%p4623_p11), %s6478_s4, 4096, %s4627_s22, [#allocation9], %s4505_s25, %s4505_s25, %s4506_s26  }
  0x54   : > { %s6479_s6 = sld [smem:[#allocation58_spill]] }
  0x5a   : > { %s4330_s28 = scalar_lea.hbm %s6479_s6, 4096 }
  0x5b   : > { %p4331_p6 = scmp.ne.s32.totalorder %s6479_s6, %s4330_s28  ;;  %p4337_p5 = scmp.lt.u32.totalorder %s4330_s28, %s6479_s6 }
  0x5d   : > { %p4333_p10 = pnand %p4331_p6, %p4639_p13 }
  0x5f   : > { %p4334_p3 = pneg %p4333_p10 }
  0x61   : > { %p4339_p7 = pnand %p4337_p5, %p4334_p3 }
  0x63   : > { %4342 = shalt.err (!%p4339_p7)
}
  0x64   : > { %s4343_s19 = scalar_lea.vmem %s313_s24, 4096  ;;  %p4351_p2 = scmp.lt.s32.totalorder %s313_s24, %s313_s24 }
  0x65   : > { %p4344_p9 = scmp.ne.s32.totalorder %s313_s24, %s4343_s19  ;;  %p4352_p1 = scmp.lt.s32.totalorder %s4343_s19, %s4343_s19 }
  0x67   : > { %p4346_p12 = pnand %p4344_p9, %p4639_p13  ;;  %p4353_p4 = por %p4352_p1, %p4351_p2 }
  0x69   : > { %p4347_p0 = pneg %p4346_p12 }
  0x6b   : > { %p4354_p8 = pnand %p4353_p4, %p4347_p0 }
  0x6d   : > { %4357 = shalt.err (!%p4354_p8)
}
  0x6e   : > { %s6417_s22 = smov 128   ;;  %s6419_s14 = smov 8  }
  0x6f   : > { %3946 = dma.hbm_to_vmem [thread:$0]  (!%p4623_p11), %s6479_s6, 4096, %s313_s24, [#allocation9], %s6417_s22, %s6417_s22, %s6419_s14  }
  0x70   : > { %s4706_s9 = sadd.s32 1, %s4500_s12   ;;  %s40_s16 = sadd.s32 1, %s4496_s11 }
  0x71   : > { %s37_s30 = ssub.s32 %s4500_s12, %s4706_s9  ;;  %p47_p8 = scmp.ne.s32.totalorder %s4496_s11, %s4492_s10 }
  0x72   : > { %p38_p4 = scmp.eq.s32.totalorder %s37_s30, 0  ;;  %p48_p13 = scmp.eq.s32.totalorder %s4500_s12, 0 }
  0x73   : > { %p3964_p6 = scmp.lt.s32.totalorder %s4500_s12, 2  ;;  %p6481_p3 = scmp.eq.s32.totalorder %s4593_s13, 1 }
  0x74   : > { %s4716_s27 = scalar_select %p38_p4, %s4496_s11, %s40_s16  }
  0x75   : > { %p49_p10 = por %p48_p13, %p47_p8  ;;  %p4720_p5 = por %p6481_p3, %p47_p8 }
  0x76   : > { %6480 = sst [smem:[#allocation24_spill]] %s4716_s27  ;;  %s329_s28 = sand.u32 1, %s4496_s11  }
  0x77   : > { %s3328_s29 = sshll.u32 %s4500_s12, 12  ;;  %s4726_s24 = sshll.u32 %s329_s28, 8 }
  0x78   : > { %s6483_s0 = sld [smem:[#allocation55_spill]]  ;;  %s333_s19 = scalar_lea.vmem [#allocation2], %s4726_s24 }
  0x79   : > { %s341_s25 = sshll.u32 %s333_s19, 4  ;;  %p4734_p11 = pnand %p3964_p6, %p49_p10  ;;  %s4738_s25 = int_to_ptr.vmem [resolvable:$true] %s341_s25 }
  0x7a   : > { %s4743_s18 = scalar_lea.hbm %s6403_s1, %s3328_s29  ;;  %s4745_s21 = scalar_lea.sflag [#allocation3], %s329_s28 }
  0x7b   : > { %p4360_p9 = pneg %p4734_p11 }
  0x7e   : > { %s4731_s23 = scalar_lea.hbm %s6483_s0, %s3328_s29  ;;  %s4363_s2 = scalar_lea.hbm %s6483_s0, 8192 }
  0x7f   : > { %s4358_s22 = scalar_lea.hbm %s4731_s23, 4096  ;;  %p4364_p2 = scmp.lt.u32.totalorder %s4731_s23, %s6483_s0 }
  0x80   : > { %p4359_p7 = scmp.ne.s32.totalorder %s4731_s23, %s4358_s22  ;;  %p4365_p1 = scmp.lt.u32.totalorder %s4363_s2, %s4358_s22 }
  0x81   : > { %p4367_p8 = scmp.lt.u32.totalorder %s4358_s22, %s4731_s23 }
  0x82   : > { %p4361_p12 = pnand %p4360_p9, %p4359_p7  ;;  %p4366_p4 = por %p4365_p1, %p4364_p2 }
  0x84   : > { %p4362_p0 = pneg %p4361_p12  ;;  %p4368_p13 = por %p4367_p8, %p4366_p4 }
  0x86   : > { %p4369_p6 = pnand %p4368_p13, %p4362_p0 }
  0x88   : > { %4372 = shalt.err (!%p4369_p6)
}
  0x89   : > { %s4373_s28 = scalar_lea.vmem %s4738_s25, 4096  ;;  %s4509_s14 = smov [#allocation2]  }
  0x8a   : > { %p4374_p10 = scmp.ne.s32.totalorder %s4738_s25, %s4373_s28  ;;  %s4378_s29 = sshll.u32 %s4509_s14, 4  ;;  %s4379_s29 = int_to_ptr.vmem [resolvable:$false] %s4378_s29 }
  0x8b   : > { %s4380_s4 = scalar_lea.vmem %s4379_s29, 8192  ;;  %p4381_p12 = scmp.lt.s32.totalorder %s4738_s25, %s4379_s29 }
  0x8c   : > { %p4376_p3 = pnand %p4374_p10, %p4360_p9  ;;  %p4382_p2 = scmp.lt.s32.totalorder %s4380_s4, %s4373_s28 }
  0x8e   : > { %p4377_p7 = pneg %p4376_p3  ;;  %p4383_p1 = por %p4382_p2, %p4381_p12 }
  0x90   : > { %p4384_p4 = pnand %p4383_p1, %p4377_p7 }
  0x92   : > { %4387 = shalt.err (!%p4384_p4)
}
  0x93   : > { %s6485_s2 = smov 8   ;;  %s6486_s6 = smov 128  }
  0x94   : > { %3950 = dma.hbm_to_vmem [thread:$0]  (!%p4734_p11), %s4731_s23, 4096, %s4738_s25, %s4745_s21, %s6486_s6, %s6486_s6, %s6485_s2  }
  0x95   : > { %s355_s22 = scalar_lea.vmem [#allocation5], %s4726_s24  ;;  %s351_s16 = sand.u32 1, %s4500_s12  }
  0x96   : > { %s363_s30 = sshll.u32 %s355_s22, 4  ;;  %s4780_s19 = scalar_lea.sflag [#allocation6], %s351_s16  ;;  %s4778_s30 = int_to_ptr.vmem [resolvable:$true] %s363_s30 }
  0x97   : > { %s4388_s28 = scalar_lea.hbm %s4743_s18, 4096  ;;  %s4393_s4 = scalar_lea.hbm %s6403_s1, 8192 }
  0x98   : > { %p4389_p0 = scmp.ne.s32.totalorder %s4743_s18, %s4388_s28  ;;  %p4394_p6 = scmp.lt.u32.totalorder %s4743_s18, %s6403_s1 }
  0x99   : > { %p4395_p10 = scmp.lt.u32.totalorder %s4393_s4, %s4388_s28  ;;  %p4397_p7 = scmp.lt.u32.totalorder %s4388_s28, %s4743_s18 }
  0x9a   : > { %p4391_p8 = pnand %p4389_p0, %p4360_p9 }
  0x9b   : > { %p4396_p3 = por %p4395_p10, %p4394_p6 }
  0x9c   : > { %p4392_p13 = pneg %p4391_p8 }
  0x9d   : > { %p4398_p12 = por %p4397_p7, %p4396_p3 }
  0x9f   : > { %p4399_p2 = pnand %p4398_p12, %p4392_p13 }
  0xa1   : > { %4402 = shalt.err (!%p4399_p2)
}
  0xa2   : > { %s4403_s24 = scalar_lea.vmem %s4778_s30, 4096  ;;  %s4510_s23 = smov [#allocation5]  }
  0xa3   : > { %p4404_p1 = scmp.ne.s32.totalorder %s4778_s30, %s4403_s24  ;;  %s4408_s25 = sshll.u32 %s4510_s23, 4  ;;  %s4409_s25 = int_to_ptr.vmem [resolvable:$false] %s4408_s25 }
  0xa4   : > { %s4410_s0 = scalar_lea.vmem %s4409_s25, 8192  ;;  %p4411_p8 = scmp.lt.s32.totalorder %s4778_s30, %s4409_s25 }
  0xa5   : > { %p4406_p4 = pnand %p4404_p1, %p4360_p9  ;;  %p4412_p6 = scmp.lt.s32.totalorder %s4410_s0, %s4403_s24 }
  0xa7   : > { %p4407_p0 = pneg %p4406_p4  ;;  %p4413_p10 = por %p4412_p6, %p4411_p8 }
  0xa9   : > { %p4414_p3 = pnand %p4413_p10, %p4407_p0 }
  0xab   : > { %4417 = shalt.err (!%p4414_p3)
}
  0xac   : > { %3953 = dma.hbm_to_vmem [thread:$0]  (!%p4734_p11), %s4743_s18, 4096, %s4778_s30, %s4780_s19, %s6486_s6, %s6486_s6, %s6485_s2  }
  0xad   : > { %p6487_p9 = scmp.ne.s32.totalorder %s6474_s17, 0 }
  0xaf   : > { %375 = sbr.rel (%p6487_p9) target bundleno = 2319 (0x90f), region = 52 }
  0xb6   : > { %s4812_s27 = sand.u32 1, %s4492_s10   ;;  %p6488_p13 = scmp.ne.s32.totalorder %s6471_s15, 0 }
  0xb7   : > { %s4815_s21 = sshll.u32 %s4812_s27, 8  ;;  %s378_s26 = scalar_lea.sflag [#allocation3], %s4812_s27 }
  0xb8   : > { %s4819_s22 = scalar_lea.vmem [#allocation2], %s4815_s21 }
  0xb9   : > { %4463 = dma.done.wait (%p6488_p13), %s378_s26, 4096  }
  0xba   : > { %4465 = vsyncadd (%p6488_p13), %s378_s26, 4294963200  ;;  %s386_s17 = sand.u32 1, %s4593_s13   ;;  %s4827_s2 = scalar_lea.vmem [#allocation5], %s4815_s21 }
  0xbb   : > { %s387_s18 = scalar_lea.sflag [#allocation6], %s386_s17 }
  0xbc   : > { %4467 = dma.done.wait (%p6488_p13), %s387_s18, 4096  }
  0xbd   : > { %4469 = vsyncadd (%p6488_p13), %s387_s18, 4294963200  ;;  %p6489_p11 = scmp.eq.s32.totalorder %s4593_s13, 0 }
  0xbf   : > { %4471 = dma.done.wait (%p6489_p11), [#allocation6], 4096   ;;  %p6490_p7 = pmov %p6489_p11 }
  0xc1   : > { %4473 = vsyncadd (%p6490_p7), [#allocation6], 4294963200  ;;  %p6491_p12 = pmov %p6490_p7 }
  0xc2   : > { %p6492_p2 = pmov %p6490_p7 }
  0xc3   : > { %4475 = dma.done.wait (%p6491_p12), [#allocation9], 8192  }
  0xc4   : > { %4477 = vsyncadd (%p6492_p2), [#allocation9], 4294959104  ;;  %v4511_v0 = vmov 0   ;;  %v549_v1 = vld [vmem:[#allocation7 + $0x8] sm:$0xff]  ;;  %v551_v2 = vld [vmem:[#allocation7 + $0x18] sm:$0xff]  ;;  %s3283_s19 = sshll.u32 %s4812_s27, 9 }
  0xc5   : > { %720 = vmatprep.mubr.bf16.mxu1 %v4511_v0  ;;  %640 = vmatprep.mubr.bf16.mxu0 %v4511_v0  ;;  %v548_v3 = vld [vmem:[#allocation7] sm:$0xff]  ;;  %v581_v4 = vpack.c.bf16 %v551_v2, %v549_v1  ;;  %v550_v5 = vld [vmem:[#allocation7 + $0x10] sm:$0xff]  ;;  %v553_v6 = vld [vmem:[#allocation7 + $0x28] sm:$0xff]  ;;  %s5649_s28 = scalar_lea.vmem [#allocation12], %s3283_s19  ;;  %s6264_s4 = scalar_lea.vmem [#allocation11], %s4815_s21 }
  0xc6   : > { %v555_v7 = vld [vmem:[#allocation7 + $0x38] sm:$0xff]  ;;  %v580_v8 = vpack.c.bf16 %v550_v5, %v548_v3  ;;  %v552_v10 = vld [vmem:[#allocation7 + $0x20] sm:$0xff]  ;;  %v554_v11 = vld [vmem:[#allocation7 + $0x30] sm:$0xff]  ;;  %s3332_s24 = sshll.u32 %s4593_s13, 12  ;;  %s3060_s23 = sshll.u32 %s6264_s4, 4  ;;  %s6333_s23 = int_to_ptr.vmem [resolvable:$true] %s3060_s23 }
  0xc7   : > { %v583_v9 = vpack.c.bf16 %v555_v7, %v553_v6  ;;  %v557_v12 = vld [vmem:[#allocation7 + $0x48] sm:$0xff]  ;;  %3863 = vmatprep.subr.bf16.mxu1 %v581_v4  ;;  %v559_v13 = vld [vmem:[#allocation7 + $0x58] sm:$0xff]  ;;  %608 = vmatprep.subr.bf16.mxu0 %v581_v4  ;;  %v582_v14 = vpack.c.bf16 %v554_v11, %v552_v10  ;;  %v556_v16 = vld [vmem:[#allocation7 + $0x40] sm:$0xff]  ;;  %s6331_s21 = scalar_lea.hbm %s6410_s8, %s3332_s24  ;;  %s3041_s26 = scalar_lea.sflag [#allocation4], %s4812_s27 }
  0xc8   : > { %3871 = vmatpush1.bf16.msra.mxu1 %v580_v8  ;;  %609 = vmatpush1.bf16.msra.mxu0 %v580_v8  ;;  %v585_v15 = vpack.c.bf16 %v559_v13, %v557_v12  ;;  %v558_v17 = vld [vmem:[#allocation7 + $0x50] sm:$0xff]  ;;  %v561_v18 = vld [vmem:[#allocation7 + $0x68] sm:$0xff]  ;;  %v563_v19 = vld [vmem:[#allocation7 + $0x78] sm:$0xff]  ;;  %s4512_s17 = smov [#allocation11]  }
  0xc9   : > { %3864 = vmatprep.subr.bf16.mxu1 %v583_v9  ;;  %610 = vmatprep.subr.bf16.mxu0 %v583_v9  ;;  %v584_v20 = vpack.c.bf16 %v558_v17, %v556_v16  ;;  %v587_v21 = vpack.c.bf16 %v563_v19, %v561_v18  ;;  %v560_v22 = vld [vmem:[#allocation7 + $0x60] sm:$0xff]  ;;  %v562_v23 = vld [vmem:[#allocation7 + $0x70] sm:$0xff]  ;;  %v565_v24 = vld [vmem:[#allocation7 + $0x88] sm:$0xff]  ;;  %s4422_s18 = sshll.u32 %s4512_s17, 4  ;;  %s4423_s18 = int_to_ptr.vmem [resolvable:$false] %s4422_s18 }
  0xca   : > { %v567_v25 = vld [vmem:[#allocation7 + $0x98] sm:$0xff]  ;;  %v586_v26 = vpack.c.bf16 %v562_v23, %v560_v22  ;;  %v564_v28 = vld [vmem:[#allocation7 + $0x80] sm:$0xff]  ;;  %v566_v29 = vld [vmem:[#allocation7 + $0x90] sm:$0xff]  ;;  %p4425_p8 = scmp.lt.s32.totalorder %s6333_s23, %s4423_s18 }
  0xcb   : > { %v589_v27 = vpack.c.bf16 %v567_v25, %v565_v24  ;;  %v569_v30 = vld [vmem:[#allocation7 + $0xa8] sm:$0xff]  ;;  %v571_v31 = vld [vmem:[#allocation7 + $0xb8] sm:$0xff]  ;;  %v588_v32 = vpack.c.bf16 %v566_v29, %v564_v28  ;;  %v568_v34 = vld [vmem:[#allocation7 + $0xa0] sm:$0xff] }
  0xcc   : > { %3872 = vmatpush1.bf16.msra.mxu1 %v582_v14  ;;  %611 = vmatpush1.bf16.msra.mxu0 %v582_v14  ;;  %v591_v33 = vpack.c.bf16 %v571_v31, %v569_v30  ;;  %v570_v35 = vld [vmem:[#allocation7 + $0xb0] sm:$0xff]  ;;  %v573_v36 = vld [vmem:[#allocation7 + $0xc8] sm:$0xff]  ;;  %v575_v37 = vld [vmem:[#allocation7 + $0xd8] sm:$0xff] }
  0xcd   : > { %3865 = vmatprep.subr.bf16.mxu1 %v585_v15  ;;  %612 = vmatprep.subr.bf16.mxu0 %v585_v15  ;;  %v590_v38 = vpack.c.bf16 %v570_v35, %v568_v34  ;;  %v593_v39 = vpack.c.bf16 %v575_v37, %v573_v36  ;;  %v572_v40 = vld [vmem:[#allocation7 + $0xc0] sm:$0xff]  ;;  %v574_v41 = vld [vmem:[#allocation7 + $0xd0] sm:$0xff]  ;;  %v577_v42 = vld [vmem:[#allocation7 + $0xe8] sm:$0xff] }
  0xce   : > { %v579_v43 = vld [vmem:[#allocation7 + $0xf8] sm:$0xff]  ;;  %v592_v44 = vpack.c.bf16 %v574_v41, %v572_v40  ;;  %v576_v46 = vld [vmem:[#allocation7 + $0xe0] sm:$0xff]  ;;  %v578_v47 = vld [vmem:[#allocation7 + $0xf0] sm:$0xff] }
  0xcf   : > { %v595_v45 = vpack.c.bf16 %v579_v43, %v577_v42  ;;  %v802_v48 = vld [vmem:[#allocation8 + $0x8] sm:$0xff]  ;;  %v804_v49 = vld [vmem:[#allocation8 + $0x18] sm:$0xff]  ;;  %v594_v50 = vpack.c.bf16 %v578_v47, %v576_v46  ;;  %v468_v51 = vld [vmem:[%s4819_s22 + $0x80] sm:$0xff] }
  0xd0   : > { %3873 = vmatpush1.bf16.msra.mxu1 %v584_v20  ;;  %613 = vmatpush1.bf16.msra.mxu0 %v584_v20  ;;  %v469_v52 = vld [vmem:[%s4819_s22 + $0x88] sm:$0xff]  ;;  %v834_v53 = vpack.c.bf16 %v804_v49, %v802_v48  ;;  %v801_v54 = vld [vmem:[#allocation8] sm:$0xff]  ;;  %v803_v55 = vld [vmem:[#allocation8 + $0x10] sm:$0xff] }
  0xd1   : > { %3866 = vmatprep.subr.bf16.mxu1 %v587_v21  ;;  %614 = vmatprep.subr.bf16.mxu0 %v587_v21  ;;  %v806_v56 = vld [vmem:[#allocation8 + $0x28] sm:$0xff]  ;;  %v808_v57 = vld [vmem:[#allocation8 + $0x38] sm:$0xff]  ;;  %v492_v58 = vpack.c.bf16 %v469_v52, %v468_v51  ;;  %v452_v59 = vld [vmem:[%s4819_s22] sm:$0xff]  ;;  %v833_v61 = vpack.c.bf16 %v803_v55, %v801_v54 }
  0xd2   : > { %v453_v60 = vld [vmem:[%s4819_s22 + $0x8] sm:$0xff]  ;;  %v836_v63 = vpack.c.bf16 %v808_v57, %v806_v56  ;;  %v805_v1 = vld [vmem:[#allocation8 + $0x20] sm:$0xff]  ;;  %v807_v2 = vld [vmem:[#allocation8 + $0x30] sm:$0xff] }
  0xd3   : > { %v484_v62 = vpack.c.bf16 %v453_v60, %v452_v59  ;;  %v810_v3 = vld [vmem:[#allocation8 + $0x48] sm:$0xff]  ;;  %v812_v4 = vld [vmem:[#allocation8 + $0x58] sm:$0xff]  ;;  %v470_v5 = vld [vmem:[%s4819_s22 + $0x90] sm:$0xff]  ;;  %v835_v7 = vpack.c.bf16 %v807_v2, %v805_v1 }
  0xd4   : > { %3874 = vmatpush1.bf16.msra.mxu1 %v586_v26  ;;  %615 = vmatpush1.bf16.msra.mxu0 %v586_v26  ;;  %v471_v6 = vld [vmem:[%s4819_s22 + $0x98] sm:$0xff]  ;;  %v454_v8 = vld [vmem:[%s4819_s22 + $0x10] sm:$0xff]  ;;  %v838_v10 = vpack.c.bf16 %v812_v4, %v810_v3  ;;  %v809_v11 = vld [vmem:[#allocation8 + $0x40] sm:$0xff] }
  0xd5   : > { %3867 = vmatprep.subr.bf16.mxu1 %v589_v27  ;;  %616 = vmatprep.subr.bf16.mxu0 %v589_v27  ;;  %v455_v9 = vld [vmem:[%s4819_s22 + $0x18] sm:$0xff]  ;;  %v811_v12 = vld [vmem:[#allocation8 + $0x50] sm:$0xff]  ;;  %v814_v13 = vld [vmem:[#allocation8 + $0x68] sm:$0xff]  ;;  %v493_v15 = vpack.c.bf16 %v471_v6, %v470_v5 }
  0xd6   : > { %v816_v14 = vld [vmem:[#allocation8 + $0x78] sm:$0xff]  ;;  %v485_v16 = vpack.c.bf16 %v455_v9, %v454_v8  ;;  %v837_v17 = vpack.c.bf16 %v811_v12, %v809_v11  ;;  %v813_v19 = vld [vmem:[#allocation8 + $0x60] sm:$0xff]  ;;  %v815_v20 = vld [vmem:[#allocation8 + $0x70] sm:$0xff] }
  0xd7   : > { %v840_v18 = vpack.c.bf16 %v816_v14, %v814_v13  ;;  %v818_v21 = vld [vmem:[#allocation8 + $0x88] sm:$0xff]  ;;  %v820_v22 = vld [vmem:[#allocation8 + $0x98] sm:$0xff]  ;;  %v472_v23 = vld [vmem:[%s4819_s22 + $0xa0] sm:$0xff]  ;;  %v839_v25 = vpack.c.bf16 %v815_v20, %v813_v19 }
  0xd8   : > { %3875 = vmatpush1.bf16.msra.mxu1 %v588_v32  ;;  %617 = vmatpush1.bf16.msra.mxu0 %v588_v32  ;;  %v473_v24 = vld [vmem:[%s4819_s22 + $0xa8] sm:$0xff]  ;;  %v842_v26 = vpack.c.bf16 %v820_v22, %v818_v21  ;;  %v817_v27 = vld [vmem:[#allocation8 + $0x80] sm:$0xff]  ;;  %v819_v28 = vld [vmem:[#allocation8 + $0x90] sm:$0xff] }
  0xd9   : > { %3868 = vmatprep.subr.bf16.mxu1 %v591_v33  ;;  %618 = vmatprep.subr.bf16.mxu0 %v591_v33  ;;  %v822_v29 = vld [vmem:[#allocation8 + $0xa8] sm:$0xff]  ;;  %v824_v30 = vld [vmem:[#allocation8 + $0xb8] sm:$0xff]  ;;  %v494_v31 = vpack.c.bf16 %v473_v24, %v472_v23  ;;  %v841_v32 = vpack.c.bf16 %v819_v28, %v817_v27  ;;  %v821_v34 = vld [vmem:[#allocation8 + $0xa0] sm:$0xff]  ;;  %v598_v24 = vlaneseq }
  0xda   : > { %v844_v33 = vpack.c.bf16 %v824_v30, %v822_v29  ;;  %v823_v35 = vld [vmem:[#allocation8 + $0xb0] sm:$0xff]  ;;  %v826_v36 = vld [vmem:[#allocation8 + $0xc8] sm:$0xff]  ;;  %v828_v37 = vld [vmem:[#allocation8 + $0xd8] sm:$0xff] }
  0xdb   : > { %v843_v40 = vpack.c.bf16 %v823_v35, %v821_v34  ;;  %v846_v41 = vpack.c.bf16 %v828_v37, %v826_v36  ;;  %v825_v42 = vld [vmem:[#allocation8 + $0xc0] sm:$0xff]  ;;  %v827_v43 = vld [vmem:[#allocation8 + $0xd0] sm:$0xff]  ;;  %v477_v52 = vld [vmem:[%s4819_s22 + $0xc8] sm:$0xff] }
  0xdc   : > { %3876 = vmatpush1.bf16.msra.mxu1 %v590_v38  ;;  %619 = vmatpush1.bf16.msra.mxu0 %v590_v38  ;;  %v474_v38 = vld [vmem:[%s4819_s22 + $0xb0] sm:$0xff]  ;;  %v845_v47 = vpack.c.bf16 %v827_v43, %v825_v42  ;;  %v829_v49 = vld [vmem:[#allocation8 + $0xe0] sm:$0xff]  ;;  %v479_v56 = vld [vmem:[%s4819_s22 + $0xd8] sm:$0xff] }
  0xdd   : > { %3869 = vmatprep.subr.bf16.mxu1 %v593_v39  ;;  %620 = vmatprep.subr.bf16.mxu0 %v593_v39  ;;  %v475_v39 = vld [vmem:[%s4819_s22 + $0xb8] sm:$0xff]  ;;  %v476_v51 = vld [vmem:[%s4819_s22 + $0xc0] sm:$0xff]  ;;  %v478_v55 = vld [vmem:[%s4819_s22 + $0xd0] sm:$0xff] }
  0xde   : > { %v495_v46 = vpack.c.bf16 %v475_v39, %v474_v38  ;;  %v496_v54 = vpack.c.bf16 %v477_v52, %v476_v51  ;;  %v497_v57 = vpack.c.bf16 %v479_v56, %v478_v55  ;;  %v457_v59 = vld [vmem:[%s4819_s22 + $0x28] sm:$0xff]  ;;  %v458_v1 = vld [vmem:[%s4819_s22 + $0x30] sm:$0xff]  ;;  %v459_v2 = vld [vmem:[%s4819_s22 + $0x38] sm:$0xff] }
  0xdf   : > { %v487_v3 = vpack.c.bf16 %v459_v2, %v458_v1  ;;  %v482_v4 = vld [vmem:[%s4819_s22 + $0xf0] sm:$0xff]  ;;  %v483_v5 = vld [vmem:[%s4819_s22 + $0xf8] sm:$0xff]  ;;  %v461_v8 = vld [vmem:[%s4819_s22 + $0x48] sm:$0xff] }
  0xe0   : > { %3877 = vmatpush1.bf16.msra.mxu1 %v592_v44  ;;  %621 = vmatpush1.bf16.msra.mxu0 %v592_v44  ;;  %v830_v44 = vld [vmem:[#allocation8 + $0xe8] sm:$0xff]  ;;  %v499_v6 = vpack.c.bf16 %v483_v5, %v482_v4  ;;  %v462_v12 = vld [vmem:[%s4819_s22 + $0x50] sm:$0xff]  ;;  %v463_v13 = vld [vmem:[%s4819_s22 + $0x58] sm:$0xff] }
  0xe1   : > { %3870 = vmatprep.subr.bf16.mxu1 %v595_v45  ;;  %622 = vmatprep.subr.bf16.mxu0 %v595_v45  ;;  %v832_v45 = vld [vmem:[#allocation8 + $0xf8] sm:$0xff]  ;;  %v501_v11 = vld [vmem:[%s4827_s2 + $0x8] sm:$0xff]  ;;  %v504_v22 = vld [vmem:[%s4827_s2 + $0x20] sm:$0xff] }
  0xe2   : > { %v848_v48 = vpack.c.bf16 %v832_v45, %v830_v44  ;;  %v465_v19 = vld [vmem:[%s4819_s22 + $0x68] sm:$0xff]  ;;  %v466_v27 = vld [vmem:[%s4819_s22 + $0x70] sm:$0xff]  ;;  %v467_v28 = vld [vmem:[%s4819_s22 + $0x78] sm:$0xff] }
  0xe3   : > { %v505_v23 = vld [vmem:[%s4827_s2 + $0x28] sm:$0xff]  ;;  %v4903_v29 = vld [vmem:[%s6405_s3] sm:$0x3]  ;;  %v491_v30 = vpack.c.bf16 %v467_v28, %v466_v27  ;;  %v510_v39 = vld [vmem:[%s4827_s2 + $0x50] sm:$0xff] }
  0xe4   : > { %3878 = vmatpush1.bf16.msra.mxu1 %v594_v50  ;;  %623 = vmatpush1.bf16.msra.mxu0 %v594_v50  ;;  %v831_v50 = vld [vmem:[#allocation8 + $0xf0] sm:$0xff]  ;;  %v508_v36 = vld [vmem:[%s4827_s2 + $0x40] sm:$0xff]  ;;  %v509_v37 = vld [vmem:[%s4827_s2 + $0x48] sm:$0xff] }
  0xe5   : > { %861 = vmatprep.subr.bf16.mxu1 %v834_v53  ;;  %v847_v53 = vpack.c.bf16 %v831_v50, %v829_v49  ;;  %v536_v38 = vpack.c.bf16 %v509_v37, %v508_v36  ;;  %v512_v42 = vld [vmem:[%s4827_s2 + $0x60] sm:$0xff]  ;;  %v513_v43 = vld [vmem:[%s4827_s2 + $0x68] sm:$0xff]  ;;  %v514_v45 = vld [vmem:[%s4827_s2 + $0x70] sm:$0xff] }
  0xe6   : > { %v538_v44 = vpack.c.bf16 %v513_v43, %v512_v42  ;;  %v517_v49 = vld [vmem:[%s4827_s2 + $0x88] sm:$0xff]  ;;  %v518_v51 = vld [vmem:[%s4827_s2 + $0x90] sm:$0xff]  ;;  %v519_v52 = vld [vmem:[%s4827_s2 + $0x98] sm:$0xff] }
  0xe7   : > { %721 = vmatmul.mubr.bf16.vlgmr.msra.gmra.mrb[0].mxu1 %v492_v58  ;;  %641 = vmatmul.mubr.bf16.vlgmr.msra.gmra.mrb[0].mxu0 %v484_v62  ;;  %v456_v58 = vld [vmem:[%s4819_s22 + $0x20] sm:$0xff]  ;;  %v481_v62 = vld [vmem:[%s4819_s22 + $0xe8] sm:$0xff]  ;;  %v526_v2 = vld [vmem:[%s4827_s2 + $0xd0] sm:$0xff] }
  0xe8   : > { %730 = vmatprep.mubr.bf16.mxu1 %v4511_v0  ;;  %862 = vmatpush1.bf16.msra.mxu1 %v833_v61  ;;  %v486_v60 = vpack.c.bf16 %v457_v59, %v456_v58  ;;  %v480_v61 = vld [vmem:[%s4819_s22 + $0xe0] sm:$0xff]  ;;  %v521_v55 = vld [vmem:[%s4827_s2 + $0xa8] sm:$0xff]  ;;  %v523_v58 = vld [vmem:[%s4827_s2 + $0xb8] sm:$0xff] }
  0xe9   : > { %863 = vmatprep.subr.bf16.mxu1 %v836_v63  ;;  %650 = vmatprep.mubr.bf16.mxu0 %v4511_v0  ;;  %v498_v63 = vpack.c.bf16 %v481_v62, %v480_v61  ;;  %v4939_v59 = vld [vmem:[%s6407_s5] sm:$0x3] }
  0xea   : > { %v524_v62 = vld [vmem:[%s4827_s2 + $0xc0] sm:$0xff] }
  0xeb   : > { %v528_v5 = vld [vmem:[%s4827_s2 + $0xe0] sm:$0xff] }
  0xec   : > { %864 = vmatpush1.bf16.msra.mxu1 %v835_v7  ;;  %v460_v7 = vld [vmem:[%s4819_s22 + $0x40] sm:$0xff] }
  0xed   : > { %865 = vmatprep.subr.bf16.mxu1 %v838_v10  ;;  %v488_v9 = vpack.c.bf16 %v461_v8, %v460_v7  ;;  %v500_v10 = vld [vmem:[%s4827_s2] sm:$0xff]  ;;  %v530_v8 = vld [vmem:[%s4827_s2 + $0xf0] sm:$0xff] }
  0xee   : > { %v532_v14 = vpack.c.bf16 %v501_v11, %v500_v10 }
  0xef   : > { %731 = vmatmul.mubr.bf16.gmra.mrb[4].mxu1 %v493_v15  ;;  %651 = vmatmul.mubr.bf16.gmra.mrb[4].mxu0 %v485_v16  ;;  %v489_v15 = vpack.c.bf16 %v463_v13, %v462_v12  ;;  %v502_v16 = vld [vmem:[%s4827_s2 + $0x10] sm:$0xff] }
  0xf0   : > { %740 = vmatprep.mubr.bf16.mxu1 %v4511_v0  ;;  %866 = vmatpush1.bf16.msra.mxu1 %v837_v17  ;;  %v503_v17 = vld [vmem:[%s4827_s2 + $0x18] sm:$0xff] }
  0xf1   : > { %867 = vmatprep.subr.bf16.mxu1 %v840_v18  ;;  %660 = vmatprep.mubr.bf16.mxu0 %v4511_v0  ;;  %v464_v18 = vld [vmem:[%s4819_s22 + $0x60] sm:$0xff]  ;;  %v533_v20 = vpack.c.bf16 %v503_v17, %v502_v16  ;;  %s4418_s22 = scalar_lea.vmem %s6333_s23, 4096 }
  0xf2   : > { %v490_v21 = vpack.c.bf16 %v465_v19, %v464_v18  ;;  %p4419_p1 = scmp.ne.s32.totalorder %s6333_s23, %s4418_s22 }
  0xf4   : > { %868 = vmatpush1.bf16.msra.mxu1 %v839_v25  ;;  %v534_v25 = vpack.c.bf16 %v505_v23, %v504_v22  ;;  %p4420_p4 = pnand %p4419_p1, %p4720_p5 }
  0xf5   : > { %869 = vmatprep.subr.bf16.mxu1 %v842_v26  ;;  %v4896_v26 = vshrl.u32 %v598_v24, 7 }
  0xf6   : > { %p4421_p0 = pneg %p4420_p4 }
  0xf7   : > { %741 = vmatmul.mubr.bf16.gmra.mrb[8].mxu1 %v494_v31  ;;  %661 = vmatmul.mubr.bf16.gmra.mrb[8].mxu0 %v486_v60  ;;  %v506_v31 = vld [vmem:[%s4827_s2 + $0x30] sm:$0xff]  ;;  %v600_v11 = vsub.s32 0, %v4896_v26 }
  0xf8   : > { %750 = vmatprep.mubr.bf16.mxu1 %v4511_v0  ;;  %870 = vmatpush1.bf16.msra.mxu1 %v841_v32  ;;  %v507_v32 = vld [vmem:[%s4827_s2 + $0x38] sm:$0xff] }
  0xf9   : > { %871 = vmatprep.subr.bf16.mxu1 %v844_v33  ;;  %670 = vmatprep.mubr.bf16.mxu0 %v4511_v0  ;;  %v604_v33 = vsub.s32 1, %v4896_v26  ;;  %v535_v35 = vpack.c.bf16 %v507_v32, %v506_v31  ;;  %v4960_v12 = vrot.slane %v4903_v29, %v600_v11 }
  0xfb   : > { %v4910_v34 = vrot.slane %v4903_v29, %v604_v33  ;;  %v4942_v60 = vrot.slane %v4939_v59, %v604_v33 }
  0xfc   : > { %872 = vmatpush1.bf16.msra.mxu1 %v843_v40  ;;  %v511_v40 = vld [vmem:[%s4827_s2 + $0x58] sm:$0xff] }
  0xfd   : > { %873 = vmatprep.subr.bf16.mxu1 %v846_v41  ;;  %v537_v41 = vpack.c.bf16 %v511_v40, %v510_v39 }
  0xff   : > { %751 = vmatmul.mubr.bf16.gmra.mrb[12].mxu1 %v495_v46  ;;  %671 = vmatmul.mubr.bf16.gmra.mrb[12].mxu0 %v487_v3  ;;  %v515_v46 = vld [vmem:[%s4827_s2 + $0x78] sm:$0xff] }
 0x100   : > { %760 = vmatprep.mubr.bf16.mxu1 %v4511_v0  ;;  %874 = vmatpush1.bf16.msra.mxu1 %v845_v47  ;;  %v539_v47 = vpack.c.bf16 %v515_v46, %v514_v45  ;;  %v527_v3 = vld [vmem:[%s4827_s2 + $0xd8] sm:$0xff] }
 0x101   : > { %875 = vmatprep.subr.bf16.mxu1 %v848_v48  ;;  %680 = vmatprep.mubr.bf16.mxu0 %v4511_v0  ;;  %v516_v48 = vld [vmem:[%s4827_s2 + $0x80] sm:$0xff]  ;;  %v545_v4 = vpack.c.bf16 %v527_v3, %v526_v2 }
 0x102   : > { %v540_v50 = vpack.c.bf16 %v517_v49, %v516_v48 }
 0x104   : > { %876 = vmatpush1.bf16.msra.mxu1 %v847_v53  ;;  %v541_v53 = vpack.c.bf16 %v519_v52, %v518_v51 }
 0x107   : > { %761 = vmatmul.mubr.bf16.gmra.mrb[16].mxu1 %v496_v54  ;;  %681 = vmatmul.mubr.bf16.gmra.mrb[16].mxu0 %v488_v9  ;;  %v520_v54 = vld [vmem:[%s4827_s2 + $0xa0] sm:$0xff]  ;;  %v531_v9 = vld [vmem:[%s4827_s2 + $0xf8] sm:$0xff] }
 0x108   : > { %770 = vmatprep.mubr.bf16.mxu1 %v4511_v0  ;;  %690 = vmatprep.mubr.bf16.mxu0 %v4511_v0  ;;  %v542_v56 = vpack.c.bf16 %v521_v55, %v520_v54  ;;  %v547_v10 = vpack.c.bf16 %v531_v9, %v530_v8 }
 0x10f   : > { %771 = vmatmul.mubr.bf16.gmra.mrb[20].mxu1 %v497_v57  ;;  %691 = vmatmul.mubr.bf16.gmra.mrb[20].mxu0 %v489_v15  ;;  %v522_v57 = vld [vmem:[%s4827_s2 + $0xb0] sm:$0xff] }
 0x110   : > { %780 = vmatprep.mubr.bf16.mxu1 %v4511_v0  ;;  %700 = vmatprep.mubr.bf16.mxu0 %v4511_v0  ;;  %v543_v61 = vpack.c.bf16 %v523_v58, %v522_v57 }
 0x117   : > { %781 = vmatmul.mubr.bf16.gmra.mrb[24].mxu1 %v498_v63  ;;  %701 = vmatmul.mubr.bf16.gmra.mrb[24].mxu0 %v490_v21  ;;  %v525_v63 = vld [vmem:[%s4827_s2 + $0xc8] sm:$0xff] }
 0x118   : > { %790 = vmatprep.mubr.bf16.mxu1 %v4511_v0  ;;  %710 = vmatprep.mubr.bf16.mxu0 %v4511_v0  ;;  %v544_v1 = vpack.c.bf16 %v525_v63, %v524_v62 }
 0x11f   : > { %791 = vmatmul.mubr.bf16.gmra.mrb[28].mxu1 %v499_v6  ;;  %711 = vmatmul.mubr.bf16.gmra.mrb[28].mxu0 %v491_v30  ;;  %v529_v6 = vld [vmem:[%s4827_s2 + $0xe8] sm:$0xff]  ;;  %s4424_s2 = scalar_lea.vmem %s4423_s18, 8192 }
 0x120   : > { %893 = vmatprep.mubr.bf16.mxu1 %v4511_v0  ;;  %v546_v7 = vpack.c.bf16 %v529_v6, %v528_v5  ;;  %p4426_p6 = scmp.lt.s32.totalorder %s4424_s2, %s4418_s22 }
 0x122   : > { %p4427_p10 = por %p4426_p6, %p4425_p8 }
 0x124   : > { %p4428_p3 = pnand %p4427_p10, %p4421_p0 }
 0x127   : > { %894 = vmatmul.mubr.bf16.vlgmr.msra.gmra.mrb[32].mxu1 %v532_v14 }
 0x128   : > { %903 = vmatprep.mubr.bf16.mxu1 %v4511_v0 }
 0x12f   : > { %904 = vmatmul.mubr.bf16.gmra.mrb[36].mxu1 %v533_v20 }
 0x130   : > { %913 = vmatprep.mubr.bf16.mxu1 %v4511_v0 }
 0x137   : > { %914 = vmatmul.mubr.bf16.gmra.mrb[40].mxu1 %v534_v25 }
 0x138   : > { %923 = vmatprep.mubr.bf16.mxu1 %v4511_v0 }
 0x13f   : > { %924 = vmatmul.mubr.bf16.gmra.mrb[44].mxu1 %v535_v35 }
 0x140   : > { %933 = vmatprep.mubr.bf16.mxu1 %v4511_v0 }
 0x147   : > { %934 = vmatmul.mubr.bf16.gmra.mrb[48].mxu1 %v536_v38 }
 0x148   : > { %943 = vmatprep.mubr.bf16.mxu1 %v4511_v0 }
 0x14f   : > { %944 = vmatmul.mubr.bf16.gmra.mrb[52].mxu1 %v537_v41 }
 0x150   : > { %953 = vmatprep.mubr.bf16.mxu1 %v4511_v0 }
 0x157   : > { %954 = vmatmul.mubr.bf16.gmra.mrb[56].mxu1 %v538_v44 }
 0x158   : > { %963 = vmatprep.mubr.bf16.mxu1 %v4511_v0 }
 0x15f   : > { %964 = vmatmul.mubr.bf16.gmra.mrb[60].mxu1 %v539_v47 }
 0x160   : > { %973 = vmatprep.mubr.bf16.mxu1 %v4511_v0 }
 0x167   : > { %974 = vmatmul.mubr.bf16.gmra.mrb[64].mxu1 %v540_v50 }
 0x168   : > { %983 = vmatprep.mubr.bf16.mxu1 %v4511_v0 }
 0x16f   : > { %984 = vmatmul.mubr.bf16.gmra.mrb[68].mxu1 %v541_v53 }
 0x170   : > { %993 = vmatprep.mubr.bf16.mxu1 %v4511_v0 }
 0x177   : > { %994 = vmatmul.mubr.bf16.gmra.mrb[72].mxu1 %v542_v56 }
 0x178   : > { %1003 = vmatprep.mubr.bf16.mxu1 %v4511_v0 }
 0x17f   : > { %1004 = vmatmul.mubr.bf16.gmra.mrb[76].mxu1 %v543_v61 }
 0x180   : > { %1013 = vmatprep.mubr.bf16.mxu1 %v4511_v0 }
 0x187   : > { %1014 = vmatmul.mubr.bf16.gmra.mrb[80].mxu1 %v544_v1 }
 0x188   : > { %1023 = vmatprep.mubr.bf16.mxu1 %v4511_v0 }
 0x18f   : > { %1024 = vmatmul.mubr.bf16.gmra.mrb[84].mxu1 %v545_v4 }
 0x190   : > { %1033 = vmatprep.mubr.bf16.mxu1 %v4511_v0 }
 0x197   : > { %1034 = vmatmul.mubr.bf16.gmra.mrb[88].mxu1 %v546_v7 }
 0x198   : > { %1043 = vmatprep.mubr.bf16.mxu1 %v4511_v0 }
 0x19f   : > { %1044 = vmatmul.mubr.bf16.gmra.mrb[92].mxu1 %v547_v10 }
 0x1ba   : > { %v722_v13 = vpop.f32.mrb[0].mxu1  ;;  %v642_v14 = vpop.f32.mrb[0].mxu0 }
 0x1bb   : > { %v724_v15 = vpop.f32.mrb[1].mxu1  ;;  %v643_v16 = vadd.f32 %v642_v14, %v4960_v12  ;;  %v644_v17 = vpop.f32.mrb[1].mxu0  ;;  %v723_v21 = vadd.f32 %v722_v13, %v4960_v12 }
 0x1bc   : > { %v4964_v18 = vadd.f32 %v724_v15, %v4910_v34  ;;  %v726_v0 = vpop.f32.mrb[2].mxu1  ;;  %v4967_v19 = vadd.f32 %v644_v17, %v4910_v34  ;;  %v646_v20 = vpop.f32.mrb[2].mxu0 }
 0x1bd   : > { %v727_v22 = vadd.f32 %v726_v0, %v4960_v12  ;;  %v728_v23 = vpop.f32.mrb[3].mxu1  ;;  %v647_v24 = vadd.f32 %v646_v20, %v4960_v12  ;;  %v648_v25 = vpop.f32.mrb[3].mxu0 }
 0x1be   : > { %6493 = vst [vmem:[#allocation25_spill] sm:$0xff] %v4964_v18  ;;  %v4973_v27 = vadd.f32 %v728_v23, %v4910_v34  ;;  %v4976_v28 = vadd.f32 %v648_v25, %v4910_v34 }
 0x1bf   : > { %v1062_v29 = vpack.c.bf16 %v727_v22, %v723_v21  ;;  %v1054_v30 = vpack.c.bf16 %v647_v24, %v643_v16 }
 0x1c0   : > { %6494 = vst [vmem:[#allocation26_spill] sm:$0xff] %v4973_v27 }
 0x1c1   : > { %3559 = vmatprep.mubr.bf16.mxu1 %v1062_v29  ;;  %3527 = vmatprep.mubr.bf16.mxu0 %v1054_v30 }
 0x1c2   : > { %v732_v33 = vpop.f32.mrb[4].mxu1  ;;  %v652_v35 = vpop.f32.mrb[4].mxu0 }
 0x1c3   : > { %v734_v36 = vpop.f32.mrb[5].mxu1  ;;  %v4983_v37 = vadd.f32 %v652_v35, %v4960_v12  ;;  %v654_v38 = vpop.f32.mrb[5].mxu0  ;;  %v4992_v43 = vadd.f32 %v732_v33, %v4960_v12 }
 0x1c4   : > { %v4986_v39 = vadd.f32 %v734_v36, %v4910_v34  ;;  %v736_v40 = vpop.f32.mrb[6].mxu1  ;;  %v4989_v41 = vadd.f32 %v654_v38, %v4910_v34  ;;  %v656_v42 = vpop.f32.mrb[6].mxu0 }
 0x1c5   : > { %v4995_v44 = vadd.f32 %v736_v40, %v4960_v12  ;;  %v738_v45 = vpop.f32.mrb[7].mxu1  ;;  %v4998_v46 = vadd.f32 %v656_v42, %v4960_v12  ;;  %v658_v10 = vpop.f32.mrb[7].mxu0 }
 0x1c6   : > { %6495 = vst [vmem:[#allocation27_spill] sm:$0xff] %v4986_v39  ;;  %v5001_v47 = vadd.f32 %v738_v45, %v4910_v34  ;;  %v5042_v13 = vadd.f32 %v658_v10, %v4910_v34 }
 0x1c8   : > { %6496 = vst [vmem:[#allocation28_spill] sm:$0xff] %v5001_v47 }
 0x1ca   : > { %v742_v51 = vpop.f32.mrb[8].mxu1  ;;  %v662_v45 = vpop.f32.mrb[8].mxu0 }
 0x1cb   : > { %v744_v52 = vpop.f32.mrb[9].mxu1  ;;  %v5013_v55 = vadd.f32 %v742_v51, %v4960_v12 }
 0x1cc   : > { %v5010_v53 = vadd.f32 %v744_v52, %v4910_v34  ;;  %v746_v54 = vpop.f32.mrb[10].mxu1  ;;  %v664_v52 = vpop.f32.mrb[9].mxu0 }
 0x1cd   : > { %v5016_v56 = vadd.f32 %v746_v54, %v4960_v12  ;;  %v748_v57 = vpop.f32.mrb[11].mxu1 }
 0x1ce   : > { %6497 = vst [vmem:[#allocation29_spill] sm:$0xff] %v5010_v53  ;;  %v5019_v58 = vadd.f32 %v748_v57, %v4910_v34  ;;  %v666_v57 = vpop.f32.mrb[10].mxu0 }
 0x1cf   : > { %v5085_v10 = vadd.f32 %v666_v57, %v4960_v12 }
 0x1d0   : > { %6498 = vst [vmem:[#allocation30_spill] sm:$0xff] %v5019_v58 }
 0x1d2   : > { %v752_v63 = vpop.f32.mrb[12].mxu1 }
 0x1d3   : > { %v754_v1 = vpop.f32.mrb[13].mxu1  ;;  %v5029_v4 = vadd.f32 %v752_v63, %v4960_v12  ;;  %v668_v63 = vpop.f32.mrb[11].mxu0 }
 0x1d4   : > { %v5026_v2 = vadd.f32 %v754_v1, %v4910_v34  ;;  %v756_v3 = vpop.f32.mrb[14].mxu1 }
 0x1d5   : > { %v5032_v5 = vadd.f32 %v756_v3, %v4960_v12  ;;  %v758_v6 = vpop.f32.mrb[15].mxu1  ;;  %v5079_v3 = vadd.f32 %v662_v45, %v4960_v12 }
 0x1d6   : > { %6499 = vst [vmem:[#allocation31_spill] sm:$0xff] %v5026_v2  ;;  %v5035_v7 = vadd.f32 %v758_v6, %v4910_v34  ;;  %v5082_v6 = vadd.f32 %v664_v52, %v4910_v34 }
 0x1d8   : > { %6500 = vst [vmem:[#allocation32_spill] sm:$0xff] %v5035_v7  ;;  %6505 = vst [vmem:[#allocation37_spill] sm:$0xff] %v5082_v6 }
 0x1da   : > { %v762_v14 = vpop.f32.mrb[16].mxu1 }
 0x1db   : > { %v764_v15 = vpop.f32.mrb[17].mxu1  ;;  %v5050_v20 = vadd.f32 %v762_v14, %v4960_v12  ;;  %v5088_v14 = vadd.f32 %v668_v63, %v4910_v34 }
 0x1dc   : > { %v5047_v17 = vadd.f32 %v764_v15, %v4910_v34  ;;  %v766_v0 = vpop.f32.mrb[18].mxu1 }
 0x1dd   : > { %v5053_v21 = vadd.f32 %v766_v0, %v4960_v12  ;;  %v768_v22 = vpop.f32.mrb[19].mxu1 }
 0x1de   : > { %6501 = vst [vmem:[#allocation33_spill] sm:$0xff] %v5047_v17  ;;  %v5056_v23 = vadd.f32 %v768_v22, %v4910_v34 }
 0x1e0   : > { %6502 = vst [vmem:[#allocation34_spill] sm:$0xff] %v5056_v23 }
 0x1e2   : > { %v772_v29 = vpop.f32.mrb[20].mxu1 }
 0x1e3   : > { %v774_v30 = vpop.f32.mrb[21].mxu1  ;;  %v5066_v36 = vadd.f32 %v772_v29, %v4960_v12 }
 0x1e4   : > { %v5063_v33 = vadd.f32 %v774_v30, %v4910_v34  ;;  %v776_v35 = vpop.f32.mrb[22].mxu1 }
 0x1e5   : > { %v5069_v38 = vadd.f32 %v776_v35, %v4960_v12  ;;  %v778_v40 = vpop.f32.mrb[23].mxu1  ;;  %v672_v35 = vpop.f32.mrb[12].mxu0 }
 0x1e6   : > { %6503 = vst [vmem:[#allocation35_spill] sm:$0xff] %v5063_v33  ;;  %v5072_v42 = vadd.f32 %v778_v40, %v4910_v34  ;;  %v674_v57 = vpop.f32.mrb[13].mxu0  ;;  %v5109_v25 = vadd.f32 %v672_v35, %v4960_v12 }
 0x1e8   : > { %6504 = vst [vmem:[#allocation36_spill] sm:$0xff] %v5072_v42 }
 0x1ea   : > { %v782_v1 = vpop.f32.mrb[24].mxu1 }
 0x1eb   : > { %v784_v15 = vpop.f32.mrb[25].mxu1  ;;  %v5098_v40 = vadd.f32 %v782_v1, %v4960_v12 }
 0x1ec   : > { %v5091_v0 = vadd.f32 %v784_v15, %v4910_v34  ;;  %v786_v22 = vpop.f32.mrb[26].mxu1  ;;  %v676_v15 = vpop.f32.mrb[14].mxu0 }
 0x1ed   : > { %v5101_v45 = vadd.f32 %v786_v22, %v4960_v12  ;;  %v788_v52 = vpop.f32.mrb[27].mxu1  ;;  %v5112_v9 = vadd.f32 %v676_v15, %v4960_v12  ;;  %v678_v62 = vpop.f32.mrb[15].mxu0 }
 0x1ee   : > { %6506 = vst [vmem:[#allocation38_spill] sm:$0xff] %v5091_v0  ;;  %v5104_v63 = vadd.f32 %v788_v52, %v4910_v34  ;;  %v5119_v52 = vadd.f32 %v674_v57, %v4910_v34  ;;  %v5122_v31 = vadd.f32 %v678_v62, %v4910_v34  ;;  %v682_v62 = vpop.f32.mrb[16].mxu0 }
 0x1ef   : > { %v5148_v61 = vadd.f32 %v682_v62, %v4960_v12 }
 0x1f0   : > { %6507 = vst [vmem:[#allocation39_spill] sm:$0xff] %v5104_v63  ;;  %6508 = vst [vmem:[#allocation40_spill] sm:$0xff] %v5119_v52 }
 0x1f1   : > { %6509 = vst [vmem:[#allocation41_spill] sm:$0xff] %v5122_v31 }
 0x1f2   : > { %v792_v50 = vpop.f32.mrb[28].mxu1 }
 0x1f3   : > { %v794_v30 = vpop.f32.mrb[29].mxu1  ;;  %v5130_v1 = vadd.f32 %v792_v50, %v4960_v12  ;;  %v5145_v50 = vrot.slane %v4939_v59, %v600_v11 }
 0x1f4   : > { %v5125_v35 = vadd.f32 %v794_v30, %v4910_v34  ;;  %v796_v15 = vpop.f32.mrb[30].mxu1  ;;  %v684_v30 = vpop.f32.mrb[17].mxu0 }
 0x1f5   : > { %v5133_v32 = vadd.f32 %v796_v15, %v4960_v12  ;;  %v798_v54 = vpop.f32.mrb[31].mxu1  ;;  %v686_v8 = vpop.f32.mrb[18].mxu0 }
 0x1f6   : > { %6510 = vst [vmem:[#allocation42_spill] sm:$0xff] %v5125_v35  ;;  %v5136_v57 = vadd.f32 %v798_v54, %v4910_v34  ;;  %v688_v15 = vpop.f32.mrb[19].mxu0  ;;  %v5151_v54 = vadd.f32 %v684_v30, %v4910_v34  ;;  %v5154_v51 = vadd.f32 %v686_v8, %v4960_v12 }
 0x1f7   : > { %v5157_v48 = vadd.f32 %v688_v15, %v4910_v34  ;;  %v692_v11 = vpop.f32.mrb[20].mxu0 }
 0x1f8   : > { %6511 = vst [vmem:[#allocation43_spill] sm:$0xff] %v5136_v57  ;;  %6512 = vst [vmem:[#allocation44_spill] sm:$0xff] %v5151_v54  ;;  %v694_v49 = vpop.f32.mrb[21].mxu0  ;;  %v5170_v0 = vadd.f32 %v692_v11, %v4960_v12 }
 0x1f9   : > { %6513 = vst [vmem:[#allocation45_spill] sm:$0xff] %v5157_v48  ;;  %v696_v35 = vpop.f32.mrb[22].mxu0 }
 0x1fa   : > { %v895_v16 = vpop.f32.mrb[32].mxu1  ;;  %v5173_v26 = vadd.f32 %v696_v35, %v4960_v12 }
 0x1fb   : > { %v897_v24 = vpop.f32.mrb[33].mxu1  ;;  %v896_v62 = vadd.f32 %v895_v16, %v5145_v50 }
 0x1fc   : > { %v899_v22 = vpop.f32.mrb[34].mxu1  ;;  %v898_v8 = vadd.f32 %v897_v24, %v4942_v60 }
 0x1fd   : > { %v900_v30 = vadd.f32 %v899_v22, %v5145_v50  ;;  %v901_v29 = vpop.f32.mrb[35].mxu1  ;;  %v698_v22 = vpop.f32.mrb[23].mxu0 }
 0x1fe   : > { %v902_v15 = vadd.f32 %v901_v29, %v4942_v60  ;;  %v5182_v29 = vadd.f32 %v694_v49, %v4910_v34  ;;  %v5185_v11 = vadd.f32 %v698_v22, %v4910_v34  ;;  %v702_v42 = vpop.f32.mrb[24].mxu0 }
 0x1ff   : > { %v5167_v57 = vpack.c.bf16 %v900_v30, %v896_v62  ;;  %v704_v17 = vpop.f32.mrb[25].mxu0 }
 0x200   : > { %v5175_v59 = vpack.c.bf16 %v902_v15, %v898_v8  ;;  %6514 = vst [vmem:[#allocation46_spill] sm:$0xff] %v5182_v29  ;;  %6515 = vst [vmem:[#allocation47_spill] sm:$0xff] %v5185_v11  ;;  %v706_v23 = vpop.f32.mrb[26].mxu0 }
 0x201   : > { %3511 = vmatprep.subr.bf16.mxu0 %v5167_v57  ;;  %v708_v2 = vpop.f32.mrb[27].mxu0 }
 0x202   : > { %v905_v24 = vpop.f32.mrb[36].mxu1  ;;  %3512 = vmatpush3.bf16.xpose.msra.mxu0 %v5167_v57  ;;  %v712_v7 = vpop.f32.mrb[28].mxu0 }
 0x203   : > { %v907_v62 = vpop.f32.mrb[37].mxu1  ;;  %v906_v8 = vadd.f32 %v905_v24, %v5145_v50  ;;  %v5200_v24 = vadd.f32 %v702_v42, %v4960_v12  ;;  %v714_v58 = vpop.f32.mrb[29].mxu0  ;;  %v5222_v18 = vadd.f32 %v712_v7, %v4960_v12 }
 0x204   : > { %v909_v35 = vpop.f32.mrb[38].mxu1  ;;  %v908_v63 = vadd.f32 %v907_v62, %v4942_v60  ;;  %v5203_v62 = vadd.f32 %v704_v17, %v4910_v34  ;;  %v716_v39 = vpop.f32.mrb[30].mxu0 }
 0x205   : > { %v910_v15 = vadd.f32 %v909_v35, %v5145_v50  ;;  %v911_v16 = vpop.f32.mrb[39].mxu1  ;;  %v5209_v35 = vadd.f32 %v708_v2, %v4910_v34 }
 0x206   : > { %v912_v33 = vadd.f32 %v911_v16, %v4942_v60  ;;  %6516 = vst [vmem:[#allocation48_spill] sm:$0xff] %v5203_v62  ;;  %v5206_v16 = vadd.f32 %v706_v23, %v4960_v12 }
 0x207   : > { %v5193_v49 = vpack.c.bf16 %v910_v15, %v906_v8  ;;  %6517 = vst [vmem:[#allocation49_spill] sm:$0xff] %v5209_v35  ;;  %v5225_v8 = vadd.f32 %v716_v39, %v4960_v12 }
 0x208   : > { %v5195_v22 = vpack.c.bf16 %v912_v33, %v908_v63 }
 0x209   : > { %3513 = vmatprep.subr.bf16.mxu0 %v5193_v49 }
 0x20a   : > { %v915_v30 = vpop.f32.mrb[40].mxu1  ;;  %3514 = vmatpush3.bf16.xpose.msra.mxu0 %v5193_v49 }
 0x20b   : > { %v917_v33 = vpop.f32.mrb[41].mxu1  ;;  %v916_v42 = vadd.f32 %v915_v30, %v5145_v50  ;;  %v5231_v30 = vadd.f32 %v714_v58, %v4910_v34 }
 0x20c   : > { %v919_v63 = vpop.f32.mrb[42].mxu1  ;;  %v918_v23 = vadd.f32 %v917_v33, %v4942_v60 }
 0x20d   : > { %v920_v17 = vadd.f32 %v919_v63, %v5145_v50  ;;  %v921_v53 = vpop.f32.mrb[43].mxu1  ;;  %6518 = vst [vmem:[#allocation50_spill] sm:$0xff] %v5231_v30 }
 0x20e   : > { %v922_v2 = vadd.f32 %v921_v53, %v4942_v60  ;;  %v718_v53 = vpop.f32.mrb[31].mxu0 }
 0x20f   : > { %v5219_v47 = vpack.c.bf16 %v920_v17, %v916_v42  ;;  %v5237_v7 = vadd.f32 %v718_v53, %v4910_v34 }
 0x210   : > { %v5227_v15 = vpack.c.bf16 %v922_v2, %v918_v23 }
 0x211   : > { %3515 = vmatprep.subr.bf16.mxu0 %v5219_v47  ;;  %6519 = vst [vmem:[#allocation51_spill] sm:$0xff] %v5237_v7 }
 0x212   : > { %v925_v63 = vpop.f32.mrb[44].mxu1  ;;  %3516 = vmatpush3.bf16.xpose.msra.mxu0 %v5219_v47 }
 0x213   : > { %v927_v42 = vpop.f32.mrb[45].mxu1  ;;  %v926_v17 = vadd.f32 %v925_v63, %v5145_v50 }
 0x214   : > { %v929_v12 = vpop.f32.mrb[46].mxu1  ;;  %v928_v2 = vadd.f32 %v927_v42, %v4942_v60 }
 0x215   : > { %v930_v58 = vadd.f32 %v929_v12, %v5145_v50  ;;  %v931_v23 = vpop.f32.mrb[47].mxu1 }
 0x216   : > { %v932_v33 = vadd.f32 %v931_v23, %v4942_v60 }
 0x217   : > { %v5245_v27 = vpack.c.bf16 %v930_v58, %v926_v17 }
 0x218   : > { %v5247_v62 = vpack.c.bf16 %v932_v33, %v928_v2 }
 0x219   : > { %3517 = vmatprep.subr.bf16.mxu0 %v5245_v27 }
 0x21a   : > { %v935_v34 = vpop.f32.mrb[48].mxu1  ;;  %3518 = vmatpush3.bf16.xpose.msra.mxu0 %v5245_v27 }
 0x21b   : > { %v937_v53 = vpop.f32.mrb[49].mxu1  ;;  %v936_v63 = vadd.f32 %v935_v34, %v5145_v50 }
 0x21c   : > { %v939_v39 = vpop.f32.mrb[50].mxu1  ;;  %v938_v42 = vadd.f32 %v937_v53, %v4942_v60 }
 0x21d   : > { %v940_v12 = vadd.f32 %v939_v39, %v5145_v50  ;;  %v941_v30 = vpop.f32.mrb[51].mxu1 }
 0x21e   : > { %v942_v23 = vadd.f32 %v941_v30, %v4942_v60 }
 0x21f   : > { %v5255_v17 = vpack.c.bf16 %v940_v12, %v936_v63 }
 0x220   : > { %v5257_v33 = vpack.c.bf16 %v942_v23, %v938_v42 }
 0x221   : > { %3519 = vmatprep.subr.bf16.mxu0 %v5255_v17 }
 0x222   : > { %v945_v58 = vpop.f32.mrb[52].mxu1  ;;  %3520 = vmatpush3.bf16.xpose.msra.mxu0 %v5255_v17 }
 0x223   : > { %v947_v2 = vpop.f32.mrb[53].mxu1  ;;  %v946_v34 = vadd.f32 %v945_v58, %v5145_v50 }
 0x224   : > { %v949_v7 = vpop.f32.mrb[54].mxu1  ;;  %v948_v53 = vadd.f32 %v947_v2, %v4942_v60 }
 0x225   : > { %v950_v39 = vadd.f32 %v949_v7, %v5145_v50  ;;  %v951_v35 = vpop.f32.mrb[55].mxu1 }
 0x226   : > { %v952_v30 = vadd.f32 %v951_v35, %v4942_v60 }
 0x227   : > { %v5265_v63 = vpack.c.bf16 %v950_v39, %v946_v34 }
 0x228   : > { %v5267_v12 = vpack.c.bf16 %v952_v30, %v948_v53 }
 0x229   : > { %3521 = vmatprep.subr.bf16.mxu0 %v5265_v63 }
 0x22a   : > { %v955_v42 = vpop.f32.mrb[56].mxu1  ;;  %3522 = vmatpush3.bf16.xpose.msra.mxu0 %v5265_v63 }
 0x22b   : > { %v957_v23 = vpop.f32.mrb[57].mxu1  ;;  %v956_v58 = vadd.f32 %v955_v42, %v5145_v50 }
 0x22c   : > { %v959_v29 = vpop.f32.mrb[58].mxu1  ;;  %v958_v2 = vadd.f32 %v957_v23, %v4942_v60 }
 0x22d   : > { %v960_v7 = vadd.f32 %v959_v29, %v5145_v50  ;;  %v961_v11 = vpop.f32.mrb[59].mxu1 }
 0x22e   : > { %v962_v35 = vadd.f32 %v961_v11, %v4942_v60 }
 0x22f   : > { %v5275_v34 = vpack.c.bf16 %v960_v7, %v956_v58 }
 0x230   : > { %v5277_v39 = vpack.c.bf16 %v962_v35, %v958_v2 }
 0x231   : > { %3523 = vmatprep.subr.bf16.mxu0 %v5275_v34 }
 0x232   : > { %v965_v53 = vpop.f32.mrb[60].mxu1  ;;  %3524 = vmatpush3.bf16.xpose.msra.mxu0 %v5275_v34 }
 0x233   : > { %v967_v30 = vpop.f32.mrb[61].mxu1  ;;  %v966_v42 = vadd.f32 %v965_v53, %v5145_v50 }
 0x234   : > { %v969_v54 = vpop.f32.mrb[62].mxu1  ;;  %v968_v23 = vadd.f32 %v967_v30, %v4942_v60 }
 0x235   : > { %v970_v29 = vadd.f32 %v969_v54, %v5145_v50  ;;  %v971_v48 = vpop.f32.mrb[63].mxu1 }
 0x236   : > { %v972_v11 = vadd.f32 %v971_v48, %v4942_v60 }
 0x237   : > { %v5285_v58 = vpack.c.bf16 %v970_v29, %v966_v42 }
 0x238   : > { %v5287_v7 = vpack.c.bf16 %v972_v11, %v968_v23  ;;  %v6520_v11 = vpack.c.bf16 %v4998_v46, %v4983_v37 }
 0x239   : > { %3525 = vmatprep.subr.bf16.mxu0 %v5285_v58 }
 0x23a   : > { %v975_v2 = vpop.f32.mrb[64].mxu1  ;;  %3526 = vmatpush3.bf16.xpose.msra.mxu0 %v5285_v58 }
 0x23b   : > { %v977_v35 = vpop.f32.mrb[65].mxu1  ;;  %3575 = vmatprep.subr.bf16.mxu0 %v5167_v57  ;;  %v976_v54 = vadd.f32 %v975_v2, %v5145_v50 }
 0x23c   : > { %v979_v53 = vpop.f32.mrb[66].mxu1  ;;  %v978_v48 = vadd.f32 %v977_v35, %v4942_v60 }
 0x23d   : > { %v980_v52 = vadd.f32 %v979_v53, %v5145_v50  ;;  %v981_v30 = vpop.f32.mrb[67].mxu1 }
 0x23e   : > { %v982_v42 = vadd.f32 %v981_v30, %v4942_v60 }
 0x23f   : > { %v5296_v29 = vpack.c.bf16 %v980_v52, %v976_v54  ;;  %v6521_v52 = vpack.c.bf16 %v5085_v10, %v5079_v3 }
 0x240   : > { %v5298_v23 = vpack.c.bf16 %v982_v42, %v978_v48 }
 0x241   : > { %3528 = vmatmul.mubr.bf16.vlgmr.msra.gmra.mrb[32].mxu0 %v6520_v11  ;;  %3543 = vmatprep.subr.bf16.mxu1 %v5296_v29 }
 0x242   : > { %v985_v31 = vpop.f32.mrb[68].mxu1  ;;  %3544 = vmatpush3.bf16.xpose.msra.mxu1 %v5296_v29  ;;  %3576 = vmatpush3.bf16.msra.mxu0 %v5167_v57 }
 0x243   : > { %v987_v2 = vpop.f32.mrb[69].mxu1  ;;  %3577 = vmatprep.subr.bf16.mxu0 %v5193_v49  ;;  %3531 = vmatprep.mubr.bf16.mxu0 %v6521_v52  ;;  %v986_v53 = vadd.f32 %v985_v31, %v5145_v50  ;;  %v6522_v31 = vpack.c.bf16 %v5112_v9, %v5109_v25 }
 0x244   : > { %v989_v35 = vpop.f32.mrb[70].mxu1  ;;  %v988_v54 = vadd.f32 %v987_v2, %v4942_v60 }
 0x245   : > { %v990_v37 = vadd.f32 %v989_v35, %v5145_v50  ;;  %v991_v46 = vpop.f32.mrb[71].mxu1 }
 0x246   : > { %3578 = vmatpush3.bf16.msra.mxu0 %v5193_v49  ;;  %v992_v30 = vadd.f32 %v991_v46, %v4942_v60  ;;  %v6523_v49 = vpack.c.bf16 %v5154_v51, %v5148_v61  ;;  %v6524_v61 = vpack.c.bf16 %v5173_v26, %v5170_v0 }
 0x247   : > { %v5315_v57 = vpack.c.bf16 %v990_v37, %v986_v53  ;;  %3579 = vmatprep.subr.bf16.mxu0 %v5219_v47  ;;  %v6525_v53 = vpack.c.bf16 %v5206_v16, %v5200_v24  ;;  %v6526_v24 = vpack.c.bf16 %v5225_v8, %v5222_v18 }
 0x248   : > { %v5318_v48 = vpack.c.bf16 %v992_v30, %v988_v54 }
 0x249   : > { %3545 = vmatprep.subr.bf16.mxu1 %v5315_v57  ;;  %3532 = vmatmul.mubr.bf16.gmra.mrb[36].mxu0 %v6522_v31 }
 0x24a   : > { %v995_v3 = vpop.f32.mrb[72].mxu1  ;;  %3546 = vmatpush3.bf16.xpose.msra.mxu1 %v5315_v57  ;;  %3580 = vmatpush3.bf16.msra.mxu0 %v5219_v47 }
 0x24b   : > { %v997_v10 = vpop.f32.mrb[73].mxu1  ;;  %3581 = vmatprep.subr.bf16.mxu0 %v5245_v27  ;;  %3535 = vmatprep.mubr.bf16.mxu0 %v6523_v49  ;;  %v996_v11 = vadd.f32 %v995_v3, %v5145_v50 }
 0x24c   : > { %v999_v42 = vpop.f32.mrb[74].mxu1  ;;  %v998_v9 = vadd.f32 %v997_v10, %v4942_v60 }
 0x24d   : > { %v1000_v2 = vadd.f32 %v999_v42, %v5145_v50  ;;  %v1001_v52 = vpop.f32.mrb[75].mxu1 }
 0x24e   : > { %3582 = vmatpush3.bf16.msra.mxu0 %v5245_v27  ;;  %v1002_v25 = vadd.f32 %v1001_v52, %v4942_v60 }
 0x24f   : > { %v5335_v47 = vpack.c.bf16 %v1000_v2, %v996_v11  ;;  %3583 = vmatprep.subr.bf16.mxu0 %v5255_v17 }
 0x250   : > { %v5338_v35 = vpack.c.bf16 %v1002_v25, %v998_v9 }
 0x251   : > { %3547 = vmatprep.subr.bf16.mxu1 %v5335_v47  ;;  %3536 = vmatmul.mubr.bf16.gmra.mrb[40].mxu0 %v6524_v61 }
 0x252   : > { %v1005_v51 = vpop.f32.mrb[76].mxu1  ;;  %3548 = vmatpush3.bf16.xpose.msra.mxu1 %v5335_v47  ;;  %3584 = vmatpush3.bf16.msra.mxu0 %v5255_v17 }
 0x253   : > { %v1007_v27 = vpop.f32.mrb[77].mxu1  ;;  %3585 = vmatprep.subr.bf16.mxu0 %v5265_v63  ;;  %3539 = vmatprep.mubr.bf16.mxu0 %v6525_v53  ;;  %v1006_v46 = vadd.f32 %v1005_v51, %v5145_v50 }
 0x254   : > { %v1009_v37 = vpop.f32.mrb[78].mxu1  ;;  %v1008_v0 = vadd.f32 %v1007_v27, %v4942_v60 }
 0x255   : > { %v1010_v54 = vadd.f32 %v1009_v37, %v5145_v50  ;;  %v1011_v30 = vpop.f32.mrb[79].mxu1 }
 0x256   : > { %3586 = vmatpush3.bf16.msra.mxu0 %v5265_v63  ;;  %v1012_v26 = vadd.f32 %v1011_v30, %v4942_v60 }
 0x257   : > { %v5355_v17 = vpack.c.bf16 %v1010_v54, %v1006_v46  ;;  %3587 = vmatprep.subr.bf16.mxu0 %v5275_v34 }
 0x258   : > { %v5358_v31 = vpack.c.bf16 %v1012_v26, %v1008_v0 }
 0x259   : > { %3549 = vmatprep.subr.bf16.mxu1 %v5355_v17  ;;  %3540 = vmatmul.mubr.bf16.gmra.mrb[44].mxu0 %v6526_v24 }
 0x25a   : > { %v1015_v16 = vpop.f32.mrb[80].mxu1  ;;  %3550 = vmatpush3.bf16.xpose.msra.mxu1 %v5355_v17  ;;  %3588 = vmatpush3.bf16.msra.mxu0 %v5275_v34 }
 0x25b   : > { %v1017_v63 = vpop.f32.mrb[81].mxu1  ;;  %3589 = vmatprep.subr.bf16.mxu0 %v5285_v58  ;;  %v1016_v10 = vadd.f32 %v1015_v16, %v5145_v50 }
 0x25c   : > { %v1019_v3 = vpop.f32.mrb[82].mxu1  ;;  %v1018_v11 = vadd.f32 %v1017_v63, %v4942_v60 }
 0x25d   : > { %v1020_v49 = vadd.f32 %v1019_v3, %v5145_v50  ;;  %v1021_v42 = vpop.f32.mrb[83].mxu1 }
 0x25e   : > { %3590 = vmatpush3.bf16.msra.mxu0 %v5285_v58  ;;  %v1022_v18 = vadd.f32 %v1021_v42, %v4942_v60 }
 0x25f   : > { %v1082_v8 = vpack.c.bf16 %v1020_v49, %v1016_v10  ;;  %3639 = vmatprep.subr.bf16.mxu0 %v5175_v59 }
 0x260   : > { %v5373_v2 = vpack.c.bf16 %v1022_v18, %v1018_v11 }
 0x261   : > { %3551 = vmatprep.subr.bf16.mxu1 %v1082_v8 }
 0x262   : > { %v1025_v34 = vpop.f32.mrb[84].mxu1  ;;  %3552 = vmatpush3.bf16.xpose.msra.mxu1 %v1082_v8 }
 0x263   : > { %v1027_v52 = vpop.f32.mrb[85].mxu1  ;;  %v1026_v25 = vadd.f32 %v1025_v34, %v5145_v50 }
 0x264   : > { %v1029_v9 = vpop.f32.mrb[86].mxu1  ;;  %v1028_v27 = vadd.f32 %v1027_v52, %v4942_v60 }
 0x265   : > { %v1030_v61 = vadd.f32 %v1029_v9, %v5145_v50  ;;  %v1031_v51 = vpop.f32.mrb[87].mxu1 }
 0x266   : > { %v1032_v58 = vadd.f32 %v1031_v51, %v4942_v60 }
 0x267   : > { %v1083_v53 = vpack.c.bf16 %v1030_v61, %v1026_v25 }
 0x268   : > { %v5379_v37 = vpack.c.bf16 %v1032_v58, %v1028_v27  ;;  %v6530_v27 = vpack.c.bf16 %v4995_v44, %v4992_v43  ;;  %v6531_v58 = vpack.c.bf16 %v5016_v56, %v5013_v55  ;;  %v6533_v43 = vpack.c.bf16 %v5053_v21, %v5050_v20 }
 0x269   : > { %3553 = vmatprep.subr.bf16.mxu1 %v1083_v53  ;;  %v6534_v44 = vpack.c.bf16 %v5069_v38, %v5066_v36  ;;  %v6535_v55 = vpack.c.bf16 %v5101_v45, %v5098_v40  ;;  %v6536_v56 = vpack.c.bf16 %v5133_v32, %v5130_v1 }
 0x26a   : > { %6527 = vst [vmem:[#allocation52_spill] sm:$0xff] %v5379_v37  ;;  %v1035_v46 = vpop.f32.mrb[88].mxu1  ;;  %3554 = vmatpush3.bf16.xpose.msra.mxu1 %v1083_v53 }
 0x26b   : > { %v1037_v54 = vpop.f32.mrb[89].mxu1  ;;  %v1036_v0 = vadd.f32 %v1035_v46, %v5145_v50 }
 0x26c   : > { %v1039_v30 = vpop.f32.mrb[90].mxu1  ;;  %v1038_v16 = vadd.f32 %v1037_v54, %v4942_v60 }
 0x26d   : > { %v1040_v26 = vadd.f32 %v1039_v30, %v5145_v50  ;;  %v1041_v24 = vpop.f32.mrb[91].mxu1 }
 0x26e   : > { %v1042_v63 = vadd.f32 %v1041_v24, %v4942_v60 }
 0x26f   : > { %v1084_v3 = vpack.c.bf16 %v1040_v26, %v1036_v0 }
 0x270   : > { %v5385_v10 = vpack.c.bf16 %v1042_v63, %v1038_v16 }
 0x271   : > { %3555 = vmatprep.subr.bf16.mxu1 %v1084_v3 }
 0x272   : > { %6528 = vst [vmem:[#allocation53_spill] sm:$0xff] %v5385_v10  ;;  %v1045_v49 = vpop.f32.mrb[92].mxu1  ;;  %3556 = vmatpush3.bf16.xpose.msra.mxu1 %v1084_v3 }
 0x273   : > { %v1047_v42 = vpop.f32.mrb[93].mxu1  ;;  %v1046_v18 = vadd.f32 %v1045_v49, %v5145_v50 }
 0x274   : > { %v1049_v11 = vpop.f32.mrb[94].mxu1  ;;  %v1048_v9 = vadd.f32 %v1047_v42, %v4942_v60 }
 0x275   : > { %v1050_v34 = vadd.f32 %v1049_v11, %v5145_v50  ;;  %v1051_v52 = vpop.f32.mrb[95].mxu1 }
 0x276   : > { %v1052_v25 = vadd.f32 %v1051_v52, %v4942_v60  ;;  %v6532_v60 = vpack.c.bf16 %v5032_v5, %v5029_v4 }
 0x277   : > { %v1085_v61 = vpack.c.bf16 %v1050_v34, %v1046_v18 }
 0x278   : > { %v5391_v51 = vpack.c.bf16 %v1052_v25, %v1048_v9 }
 0x279   : > { %3557 = vmatprep.subr.bf16.mxu1 %v1085_v61 }
 0x27a   : > { %6529 = vst [vmem:[#allocation54_spill] sm:$0xff] %v5391_v51  ;;  %3558 = vmatpush3.bf16.xpose.msra.mxu1 %v1085_v61 }
 0x27b   : > { %3607 = vmatprep.subr.bf16.mxu1 %v5296_v29 }
 0x281   : > { %3560 = vmatmul.mubr.bf16.vlgmr.msra.gmra.mrb[96].mxu1 %v6530_v27 }
 0x282   : > { %3563 = vmatprep.mubr.bf16.mxu1 %v6531_v58  ;;  %3608 = vmatpush3.bf16.msra.mxu1 %v5296_v29 }
 0x283   : > { %3609 = vmatprep.subr.bf16.mxu1 %v5315_v57 }
 0x286   : > { %3610 = vmatpush3.bf16.msra.mxu1 %v5315_v57 }
 0x287   : > { %3611 = vmatprep.subr.bf16.mxu1 %v5335_v47 }
 0x289   : > { %3564 = vmatmul.mubr.bf16.gmra.mrb[100].mxu1 %v6532_v60 }
 0x28a   : > { %3567 = vmatprep.mubr.bf16.mxu1 %v6533_v43  ;;  %3612 = vmatpush3.bf16.msra.mxu1 %v5335_v47 }
 0x28b   : > { %3613 = vmatprep.subr.bf16.mxu1 %v5355_v17 }
 0x28e   : > { %3614 = vmatpush3.bf16.msra.mxu1 %v5355_v17 }
 0x28f   : > { %3615 = vmatprep.subr.bf16.mxu1 %v1082_v8 }
 0x291   : > { %3568 = vmatmul.mubr.bf16.gmra.mrb[104].mxu1 %v6534_v44 }
 0x292   : > { %3571 = vmatprep.mubr.bf16.mxu1 %v6535_v55  ;;  %3616 = vmatpush3.bf16.msra.mxu1 %v1082_v8 }
 0x293   : > { %3617 = vmatprep.subr.bf16.mxu1 %v1083_v53 }
 0x296   : > { %3618 = vmatpush3.bf16.msra.mxu1 %v1083_v53 }
 0x297   : > { %3619 = vmatprep.subr.bf16.mxu1 %v1084_v3 }
 0x299   : > { %3572 = vmatmul.mubr.bf16.gmra.mrb[108].mxu1 %v6536_v56 }
 0x29a   : > { %3620 = vmatpush3.bf16.msra.mxu1 %v1084_v3 }
 0x29b   : > { %3621 = vmatprep.subr.bf16.mxu1 %v1085_v61 }
 0x29e   : > { %3622 = vmatpush3.bf16.msra.mxu1 %v1085_v61 }
 0x29f   : > { %3671 = vmatprep.subr.bf16.mxu1 %v5298_v23 }
 0x314   : > { %v5423_v4 = vpop.f32.mrb[32].mxu0 }
 0x315   : > { %1284 = vmax.xlane.f32.xlu1 %v5423_v4  ;;  %v5426_v5 = vpop.f32.mrb[33].mxu0 }
 0x316   : > { %1280 = vmax.xlane.f32.xlu0 %v5426_v5  ;;  %v5429_v20 = vpop.f32.mrb[34].mxu0 }
 0x317   : > { %v5431_v21 = vpop.f32.mrb[35].mxu0 }
 0x319   : > { %1286 = vmax.xlane.f32.xlu1 %v5429_v20 }
 0x31a   : > { %1282 = vmax.xlane.f32.xlu0 %v5431_v21 }
 0x31c   : > { %v5435_v32 = vpop.f32.mrb[36].mxu0 }
 0x31d   : > { %v5437_v36 = vpop.f32.mrb[37].mxu0 }
 0x31e   : > { %v5439_v38 = vpop.f32.mrb[38].mxu0 }
 0x31f   : > { %v5441_v40 = vpop.f32.mrb[39].mxu0 }
 0x324   : > { %v5443_v45 = vpop.f32.mrb[40].mxu0 }
 0x325   : > { %v5445_v1 = vpop.f32.mrb[41].mxu0 }
 0x326   : > { %v5447_v50 = vpop.f32.mrb[42].mxu0 }
 0x327   : > { %v5449_v29 = vpop.f32.mrb[43].mxu0 }
 0x32c   : > { %v5451_v57 = vpop.f32.mrb[44].mxu0 }
 0x32d   : > { %v5453_v47 = vpop.f32.mrb[45].mxu0 }
 0x32e   : > { %v5455_v17 = vpop.f32.mrb[46].mxu0 }
 0x32f   : > { %v5457_v8 = vpop.f32.mrb[47].mxu0 }
 0x354   : > { %v5459_v53 = vpop.f32.mrb[96].mxu1 }
 0x355   : > { %v5461_v46 = vpop.f32.mrb[97].mxu1  ;;  %1316 = vmax.xlane.f32.xlu0 %v5459_v53 }
 0x356   : > { %v5464_v54 = vpop.f32.mrb[98].mxu1 }
 0x357   : > { %v5466_v30 = vpop.f32.mrb[99].mxu1  ;;  %1318 = vmax.xlane.f32.xlu1 %v5464_v54 }
 0x359   : > { %1312 = vmax.xlane.f32.xlu0 %v5461_v46 }
 0x35b   : > { %1314 = vmax.xlane.f32.xlu1 %v5466_v30 }
 0x35c   : > { %v5471_v0 = vpop.f32.mrb[100].mxu1 }
 0x35d   : > { %v5473_v26 = vpop.f32.mrb[101].mxu1  ;;  %1288 = vmax.xlane.f32.xlu0 %v5437_v36 }
 0x35e   : > { %v5476_v24 = vpop.f32.mrb[102].mxu1 }
 0x35f   : > { %v5478_v16 = vpop.f32.mrb[103].mxu1  ;;  %1290 = vmax.xlane.f32.xlu1 %v5441_v40 }
 0x361   : > { %1292 = vmax.xlane.f32.xlu0 %v5435_v32 }
 0x363   : > { %1294 = vmax.xlane.f32.xlu1 %v5439_v38 }
 0x364   : > { %v5483_v63 = vpop.f32.mrb[104].mxu1 }
 0x365   : > { %v5485_v3 = vpop.f32.mrb[105].mxu1  ;;  %1296 = vmax.xlane.f32.xlu0 %v5445_v1 }
 0x366   : > { %v5488_v49 = vpop.f32.mrb[106].mxu1 }
 0x367   : > { %v5490_v42 = vpop.f32.mrb[107].mxu1  ;;  %1298 = vmax.xlane.f32.xlu1 %v5449_v29 }
 0x369   : > { %1300 = vmax.xlane.f32.xlu0 %v5443_v45 }
 0x36b   : > { %1302 = vmax.xlane.f32.xlu1 %v5447_v50 }
 0x36c   : > { %v5495_v11 = vpop.f32.mrb[108].mxu1 }
 0x36d   : > { %v5497_v18 = vpop.f32.mrb[109].mxu1  ;;  %1304 = vmax.xlane.f32.xlu0 %v5453_v47 }
 0x36e   : > { %v5500_v34 = vpop.f32.mrb[110].mxu1 }
 0x36f   : > { %v5502_v52 = vpop.f32.mrb[111].mxu1  ;;  %1306 = vmax.xlane.f32.xlu1 %v5457_v8 }
 0x371   : > { %1308 = vmax.xlane.f32.xlu0 %v5451_v57 }
 0x373   : > { %1310 = vmax.xlane.f32.xlu1 %v5455_v17 }
 0x375   : > { %1324 = vmax.xlane.f32.xlu0 %v5471_v0 }
 0x377   : > { %1326 = vmax.xlane.f32.xlu1 %v5476_v24 }
 0x379   : > { %1320 = vmax.xlane.f32.xlu0 %v5473_v26 }
 0x37b   : > { %1322 = vmax.xlane.f32.xlu1 %v5478_v16 }
 0x37d   : > { %1332 = vmax.xlane.f32.xlu0 %v5483_v63 }
 0x37f   : > { %1334 = vmax.xlane.f32.xlu1 %v5488_v49 }
 0x381   : > { %1328 = vmax.xlane.f32.xlu0 %v5485_v3 }
 0x383   : > { %1330 = vmax.xlane.f32.xlu1 %v5490_v42 }
 0x385   : > { %1340 = vmax.xlane.f32.xlu0 %v5495_v11 }
 0x387   : > { %1342 = vmax.xlane.f32.xlu1 %v5500_v34 }
 0x389   : > { %1336 = vmax.xlane.f32.xlu0 %v5497_v18 }
 0x38b   : > { %1338 = vmax.xlane.f32.xlu1 %v5502_v52 }
 0x3a2   : > { %v1285_v9 = vpop.xlane.xlu1 %1284 }
 0x3a3   : > { %v1346_v25 = vsub.f32 %v5423_v4, %v1285_v9  ;;  %v1281_v61 = vpop.xlane.xlu0 %1280 }
 0x3a4   : > { %v1344_v27 = vsub.f32 %v5426_v5, %v1281_v61 }
 0x3a5   : > { %v1380_v43 = vmul.f32 1.442695, %v1346_v25 }
 0x3a6   : > { %v1376_v58 = vmul.f32 1.442695, %v1344_v27  ;;  %v1287_v60 = vpop.xlane.xlu1 %1286 }
 0x3a7   : > { %v1283_v44 = vpop.xlane.xlu0 %1282  ;;  %v1347_v55 = vsub.f32 %v5429_v20, %v1287_v60 }
 0x3a8   : > { %4018 = vpow2.f32 %v1376_v58  ;;  %v1345_v56 = vsub.f32 %v5431_v21, %v1283_v44 }
 0x3a9   : > { %4020 = vpow2.f32 %v1380_v43  ;;  %v1382_v10 = vmul.f32 1.442695, %v1347_v55 }
 0x3aa   : > { %v1378_v51 = vmul.f32 1.442695, %v1345_v56 }
 0x3ac   : > { %4022 = vpow2.f32 %v1378_v51 }
 0x3ad   : > { %4024 = vpow2.f32 %v1382_v10 }
 0x3b2   : > { %v5523_v37 = vpop.eup %4018 }
 0x3b3   : > { %1440 = vadd.xlane.f32.xlu0 %v5523_v37  ;;  %v5526_v4 = vpop.eup %4020 }
 0x3b6   : > { %v5528_v5 = vpop.eup %4022 }
 0x3b7   : > { %1444 = vadd.xlane.f32.xlu0 %v5526_v4  ;;  %1442 = vadd.xlane.f32.xlu1 %v5528_v5  ;;  %v5532_v20 = vpop.eup %4024 }
 0x3bb   : > { %1446 = vadd.xlane.f32.xlu1 %v5532_v20 }
 0x3e2   : > { %v1317_v21 = vpop.xlane.xlu0 %1316 }
 0x3e3   : > { %v1362_v51 = vsub.f32 %v5459_v53, %v1317_v21 }
 0x3e4   : > { %v1319_v10 = vpop.xlane.xlu1 %1318 }
 0x3e5   : > { %v1412_v9 = vmul.f32 1.442695, %v1362_v51  ;;  %v1363_v25 = vsub.f32 %v5464_v54, %v1319_v10 }
 0x3e6   : > { %v1313_v61 = vpop.xlane.xlu0 %1312 }
 0x3e7   : > { %4026 = vpow2.f32 %v1412_v9  ;;  %v1414_v27 = vmul.f32 1.442695, %v1363_v25  ;;  %v1360_v58 = vsub.f32 %v5461_v46, %v1313_v61 }
 0x3e8   : > { %v1315_v60 = vpop.xlane.xlu1 %1314 }
 0x3e9   : > { %4028 = vpow2.f32 %v1414_v27  ;;  %v1408_v43 = vmul.f32 1.442695, %v1360_v58  ;;  %v1361_v44 = vsub.f32 %v5466_v30, %v1315_v60 }
 0x3ea   : > { %v1289_v55 = vpop.xlane.xlu0 %1288 }
 0x3eb   : > { %4030 = vpow2.f32 %v1408_v43  ;;  %v1410_v56 = vmul.f32 1.442695, %v1361_v44  ;;  %v1348_v6 = vsub.f32 %v5437_v36, %v1289_v55 }
 0x3ec   : > { %v1291_v53 = vpop.xlane.xlu1 %1290 }
 0x3ed   : > { %4032 = vpow2.f32 %v1410_v56  ;;  %v1384_v21 = vmul.f32 1.442695, %v1348_v6  ;;  %v1349_v54 = vsub.f32 %v5441_v40, %v1291_v53 }
 0x3ee   : > { %v1293_v51 = vpop.xlane.xlu0 %1292 }
 0x3ef   : > { %4034 = vpow2.f32 %v1384_v21  ;;  %v1386_v10 = vmul.f32 1.442695, %v1349_v54  ;;  %v1350_v46 = vsub.f32 %v5435_v32, %v1293_v51 }
 0x3f0   : > { %v1295_v9 = vpop.xlane.xlu1 %1294 }
 0x3f1   : > { %v5542_v25 = vpop.eup %4026  ;;  %4036 = vpow2.f32 %v1386_v10  ;;  %v1388_v30 = vmul.f32 1.442695, %v1350_v46  ;;  %v1351_v61 = vsub.f32 %v5439_v38, %v1295_v9 }
 0x3f2   : > { %v1297_v27 = vpop.xlane.xlu0 %1296  ;;  %1476 = vadd.xlane.f32.xlu0 %v5542_v25 }
 0x3f3   : > { %v5546_v36 = vpop.eup %4028  ;;  %4038 = vpow2.f32 %v1388_v30  ;;  %v1390_v6 = vmul.f32 1.442695, %v1351_v61  ;;  %v1352_v40 = vsub.f32 %v5445_v1, %v1297_v27 }
 0x3f4   : > { %v1299_v58 = vpop.xlane.xlu1 %1298  ;;  %1478 = vadd.xlane.f32.xlu1 %v5546_v36 }
 0x3f5   : > { %v5550_v32 = vpop.eup %4030  ;;  %4040 = vpow2.f32 %v1390_v6  ;;  %v1392_v60 = vmul.f32 1.442695, %v1352_v40  ;;  %v1353_v43 = vsub.f32 %v5449_v29, %v1299_v58 }
 0x3f6   : > { %v1301_v44 = vpop.xlane.xlu0 %1300  ;;  %1472 = vadd.xlane.f32.xlu0 %v5550_v32 }
 0x3f7   : > { %v5554_v38 = vpop.eup %4032  ;;  %4042 = vpow2.f32 %v1392_v60  ;;  %v1394_v55 = vmul.f32 1.442695, %v1353_v43  ;;  %v1354_v56 = vsub.f32 %v5443_v45, %v1301_v44 }
 0x3f8   : > { %v1303_v53 = vpop.xlane.xlu1 %1302  ;;  %1474 = vadd.xlane.f32.xlu1 %v5554_v38 }
 0x3f9   : > { %v5558_v1 = vpop.eup %4034  ;;  %4044 = vpow2.f32 %v1394_v55  ;;  %v1396_v21 = vmul.f32 1.442695, %v1354_v56  ;;  %v1355_v54 = vsub.f32 %v5447_v50, %v1303_v53 }
 0x3fa   : > { %1448 = vadd.xlane.f32.xlu0 %v5558_v1  ;;  %v1305_v29 = vpop.xlane.xlu0 %1304 }
 0x3fb   : > { %v5562_v51 = vpop.eup %4036  ;;  %4046 = vpow2.f32 %v1396_v21  ;;  %v1398_v10 = vmul.f32 1.442695, %v1355_v54  ;;  %v1356_v46 = vsub.f32 %v5453_v47, %v1305_v29 }
 0x3fc   : > { %1450 = vadd.xlane.f32.xlu1 %v5562_v51  ;;  %v1307_v45 = vpop.xlane.xlu1 %1306 }
 0x3fd   : > { %v5566_v9 = vpop.eup %4038  ;;  %4048 = vpow2.f32 %v1398_v10  ;;  %v1400_v30 = vmul.f32 1.442695, %v1356_v46  ;;  %v1357_v61 = vsub.f32 %v5457_v8, %v1307_v45 }
 0x3fe   : > { %1452 = vadd.xlane.f32.xlu0 %v5566_v9  ;;  %v1309_v50 = vpop.xlane.xlu0 %1308 }
 0x3ff   : > { %v5570_v27 = vpop.eup %4040  ;;  %4050 = vpow2.f32 %v1400_v30  ;;  %v1402_v6 = vmul.f32 1.442695, %v1357_v61  ;;  %v1358_v40 = vsub.f32 %v5451_v57, %v1309_v50 }
 0x400   : > { %1454 = vadd.xlane.f32.xlu1 %v5570_v27  ;;  %v1311_v47 = vpop.xlane.xlu1 %1310 }
 0x401   : > { %v5574_v58 = vpop.eup %4042  ;;  %4052 = vpow2.f32 %v1402_v6  ;;  %v1404_v60 = vmul.f32 1.442695, %v1358_v40  ;;  %v1359_v43 = vsub.f32 %v5455_v17, %v1311_v47 }
 0x402   : > { %1456 = vadd.xlane.f32.xlu0 %v5574_v58  ;;  %v1325_v8 = vpop.xlane.xlu0 %1324 }
 0x403   : > { %v5578_v44 = vpop.eup %4044  ;;  %4054 = vpow2.f32 %v1404_v60  ;;  %v1406_v55 = vmul.f32 1.442695, %v1359_v43  ;;  %v1366_v17 = vsub.f32 %v5471_v0, %v1325_v8 }
 0x404   : > { %1458 = vadd.xlane.f32.xlu1 %v5578_v44  ;;  %v1327_v56 = vpop.xlane.xlu1 %1326 }
 0x405   : > { %v5581_v57 = vpop.eup %4046  ;;  %4056 = vpow2.f32 %v1406_v55  ;;  %v1367_v46 = vsub.f32 %v5476_v24, %v1327_v56  ;;  %v1420_v6 = vmul.f32 1.442695, %v1366_v17 }
 0x406   : > { %1460 = vadd.xlane.f32.xlu0 %v5581_v57  ;;  %v1321_v53 = vpop.xlane.xlu0 %1320 }
 0x407   : > { %v5584_v21 = vpop.eup %4048  ;;  %v1364_v54 = vsub.f32 %v5473_v26, %v1321_v53  ;;  %v1422_v47 = vmul.f32 1.442695, %v1367_v46 }
 0x408   : > { %1462 = vadd.xlane.f32.xlu1 %v5584_v21  ;;  %v1323_v29 = vpop.xlane.xlu1 %1322 }
 0x409   : > { %v5589_v10 = vpop.eup %4050  ;;  %v1416_v45 = vmul.f32 1.442695, %v1364_v54  ;;  %v1365_v30 = vsub.f32 %v5478_v16, %v1323_v29 }
 0x40a   : > { %1464 = vadd.xlane.f32.xlu0 %v5589_v10  ;;  %v1333_v61 = vpop.xlane.xlu0 %1332 }
 0x40b   : > { %v5594_v50 = vpop.eup %4052  ;;  %4058 = vpow2.f32 %v1416_v45  ;;  %v1418_v0 = vmul.f32 1.442695, %v1365_v30  ;;  %v1370_v16 = vsub.f32 %v5483_v63, %v1333_v61 }
 0x40c   : > { %1466 = vadd.xlane.f32.xlu1 %v5594_v50  ;;  %v1335_v26 = vpop.xlane.xlu1 %1334 }
 0x40d   : > { %v5597_v40 = vpop.eup %4054  ;;  %4060 = vpow2.f32 %v1418_v0  ;;  %v1371_v55 = vsub.f32 %v5488_v49, %v1335_v26  ;;  %v1428_v54 = vmul.f32 1.442695, %v1370_v16 }
 0x40e   : > { %1468 = vadd.xlane.f32.xlu0 %v5597_v40  ;;  %v1329_v24 = vpop.xlane.xlu0 %1328  ;;  %4062 = vpow2.f32 %v1420_v6 }
 0x40f   : > { %v5600_v60 = vpop.eup %4056  ;;  %v1368_v43 = vsub.f32 %v5485_v3, %v1329_v24  ;;  %4064 = vpow2.f32 %v1422_v47  ;;  %v1430_v30 = vmul.f32 1.442695, %v1371_v55 }
 0x410   : > { %1470 = vadd.xlane.f32.xlu1 %v5600_v60  ;;  %v1331_v8 = vpop.xlane.xlu1 %1330 }
 0x411   : > { %v1424_v56 = vmul.f32 1.442695, %v1368_v43  ;;  %v1369_v53 = vsub.f32 %v5490_v42, %v1331_v8 }
 0x412   : > { %v1341_v17 = vpop.xlane.xlu0 %1340 }
 0x413   : > { %4066 = vpow2.f32 %v1424_v56  ;;  %v1426_v29 = vmul.f32 1.442695, %v1369_v53  ;;  %v1374_v49 = vsub.f32 %v5495_v11, %v1341_v17 }
 0x414   : > { %v1343_v46 = vpop.xlane.xlu1 %1342 }
 0x415   : > { %v5607_v45 = vpop.eup %4058  ;;  %4068 = vpow2.f32 %v1426_v29  ;;  %v1375_v0 = vsub.f32 %v5500_v34, %v1343_v46  ;;  %v1436_v16 = vmul.f32 1.442695, %v1374_v49 }
 0x416   : > { %1480 = vadd.xlane.f32.xlu0 %v5607_v45  ;;  %v1337_v63 = vpop.xlane.xlu0 %1336  ;;  %4070 = vpow2.f32 %v1428_v54 }
 0x417   : > { %v5610_v3 = vpop.eup %4060  ;;  %v1372_v61 = vsub.f32 %v5497_v18, %v1337_v63  ;;  %4072 = vpow2.f32 %v1430_v30  ;;  %v1438_v43 = vmul.f32 1.442695, %v1375_v0 }
 0x418   : > { %1482 = vadd.xlane.f32.xlu1 %v5610_v3  ;;  %v1339_v42 = vpop.xlane.xlu1 %1338  ;;  %v5615_v6 = vpop.eup %4062 }
 0x419   : > { %v1432_v26 = vmul.f32 1.442695, %v1372_v61  ;;  %v1373_v47 = vsub.f32 %v5502_v52, %v1339_v42  ;;  %v5620_v24 = vpop.eup %4064 }
 0x41a   : > { %1484 = vadd.xlane.f32.xlu0 %v5615_v6 }
 0x41b   : > { %4074 = vpow2.f32 %v1432_v26  ;;  %v1434_v11 = vmul.f32 1.442695, %v1373_v47 }
 0x41c   : > { %1486 = vadd.xlane.f32.xlu1 %v5620_v24 }
 0x41d   : > { %v5623_v18 = vpop.eup %4066  ;;  %4076 = vpow2.f32 %v1434_v11 }
 0x41e   : > { %1488 = vadd.xlane.f32.xlu0 %v5623_v18  ;;  %4078 = vpow2.f32 %v1436_v16 }
 0x41f   : > { %v5626_v8 = vpop.eup %4068  ;;  %4080 = vpow2.f32 %v1438_v43 }
 0x420   : > { %1490 = vadd.xlane.f32.xlu1 %v5626_v8  ;;  %v5629_v34 = vpop.eup %4070 }
 0x421   : > { %v5632_v52 = vpop.eup %4072 }
 0x422   : > { %1492 = vadd.xlane.f32.xlu0 %v5629_v34 }
 0x424   : > { %1494 = vadd.xlane.f32.xlu1 %v5632_v52 }
 0x425   : > { %v5635_v55 = vpop.eup %4074 }
 0x426   : > { %1496 = vadd.xlane.f32.xlu0 %v5635_v55 }
 0x427   : > { %v5638_v56 = vpop.eup %4076 }
 0x428   : > { %1498 = vadd.xlane.f32.xlu1 %v5638_v56  ;;  %v5641_v53 = vpop.eup %4078 }
 0x429   : > { %v5644_v17 = vpop.eup %4080 }
 0x42a   : > { %1500 = vadd.xlane.f32.xlu0 %v5641_v53 }
 0x42c   : > { %1502 = vadd.xlane.f32.xlu1 %v5644_v17 }
 0x440   : > { %v1441_v54 = vpop.xlane.xlu0 %1440 }
 0x441   : > { %4082 = vrcp.f32 %v1441_v54 }
 0x444   : > { %v1445_v29 = vpop.xlane.xlu0 %1444  ;;  %v1443_v46 = vpop.xlane.xlu1 %1442 }
 0x445   : > { %4084 = vrcp.f32 %v1445_v29 }
 0x446   : > { %4086 = vrcp.f32 %v1443_v46 }
 0x448   : > { %v1447_v30 = vpop.xlane.xlu1 %1446 }
 0x449   : > { %4088 = vrcp.f32 %v1447_v30 }
 0x44b   : > { %v4083_v63 = vpop.eup %4082 }
 0x44c   : > { %v1536_v49 = vmul.f32 %v4083_v63, %v5523_v37 }
 0x44e   : > { %1568 = vst [vmem:[%s5649_s28] sm:$0xff] %v1536_v49 }
 0x44f   : > { %v4085_v61 = vpop.eup %4084 }
 0x450   : > { %v4087_v42 = vpop.eup %4086  ;;  %v1538_v0 = vmul.f32 %v4085_v61, %v5526_v4 }
 0x451   : > { %v1537_v26 = vmul.f32 %v4087_v42, %v5528_v5 }
 0x452   : > { %1570 = vst [vmem:[%s5649_s28 + $0x10] sm:$0xff] %v1538_v0 }
 0x453   : > { %v4089_v47 = vpop.eup %4088  ;;  %1569 = vst [vmem:[%s5649_s28 + $0x8] sm:$0xff] %v1537_v26  ;;  %v1600_v16 = vpack.c.bf16 %v1537_v26, %v1536_v49 }
 0x454   : > { %v1539_v11 = vmul.f32 %v4089_v47, %v5532_v20 }
 0x455   : > { %3591 = vmatprep.mubr.bf16.mxu0 %v1600_v16 }
 0x456   : > { %1571 = vst [vmem:[%s5649_s28 + $0x18] sm:$0xff] %v1539_v11  ;;  %v1601_v37 = vpack.c.bf16 %v1539_v11, %v1538_v0 }
 0x458   : > { %3592 = vmatmul.mubr.bf16.vlgmr.msra.gmra.mrb[48].mxu0 %v1601_v37 }
 0x459   : > { %3640 = vmatpush3.bf16.xpose.msra.mxu0 %v5175_v59 }
 0x45a   : > { %3641 = vmatprep.subr.bf16.mxu0 %v5195_v22 }
 0x461   : > { %3642 = vmatpush3.bf16.xpose.msra.mxu0 %v5195_v22 }
 0x462   : > { %3643 = vmatprep.subr.bf16.mxu0 %v5227_v15 }
 0x469   : > { %3644 = vmatpush3.bf16.xpose.msra.mxu0 %v5227_v15 }
 0x46a   : > { %3645 = vmatprep.subr.bf16.mxu0 %v5247_v62 }
 0x471   : > { %3646 = vmatpush3.bf16.xpose.msra.mxu0 %v5247_v62 }
 0x472   : > { %3647 = vmatprep.subr.bf16.mxu0 %v5257_v33 }
 0x479   : > { %3648 = vmatpush3.bf16.xpose.msra.mxu0 %v5257_v33 }
 0x47a   : > { %3649 = vmatprep.subr.bf16.mxu0 %v5267_v12 }
 0x47f   : > { %v1477_v4 = vpop.xlane.xlu0 %1476 }
 0x480   : > { %4090 = vrcp.f32 %v1477_v4 }
 0x481   : > { %3650 = vmatpush3.bf16.xpose.msra.mxu0 %v5267_v12  ;;  %v1479_v5 = vpop.xlane.xlu1 %1478 }
 0x482   : > { %3651 = vmatprep.subr.bf16.mxu0 %v5277_v39  ;;  %4092 = vrcp.f32 %v1479_v5 }
 0x483   : > { %v1473_v20 = vpop.xlane.xlu0 %1472 }
 0x484   : > { %4094 = vrcp.f32 %v1473_v20 }
 0x485   : > { %v1475_v43 = vpop.xlane.xlu1 %1474 }
 0x486   : > { %4096 = vrcp.f32 %v1475_v43 }
 0x487   : > { %v1449_v54 = vpop.xlane.xlu0 %1448 }
 0x488   : > { %4098 = vrcp.f32 %v1449_v54 }
 0x489   : > { %3652 = vmatpush3.bf16.xpose.msra.mxu0 %v5277_v39  ;;  %v1451_v29 = vpop.xlane.xlu1 %1450 }
 0x48a   : > { %v4091_v46 = vpop.eup %4090  ;;  %3653 = vmatprep.subr.bf16.mxu0 %v5287_v7  ;;  %4100 = vrcp.f32 %v1451_v29 }
 0x48b   : > { %v1554_v30 = vmul.f32 %v4091_v46, %v5542_v25  ;;  %v1453_v63 = vpop.xlane.xlu0 %1452 }
 0x48c   : > { %v4093_v49 = vpop.eup %4092  ;;  %4102 = vrcp.f32 %v1453_v63 }
 0x48d   : > { %1586 = vst [vmem:[%s5649_s28 + $0x90] sm:$0xff] %v1554_v30  ;;  %v1555_v61 = vmul.f32 %v4093_v49, %v5546_v36  ;;  %v1455_v42 = vpop.xlane.xlu1 %1454 }
 0x48e   : > { %v4095_v0 = vpop.eup %4094  ;;  %4104 = vrcp.f32 %v1455_v42 }
 0x48f   : > { %1587 = vst [vmem:[%s5649_s28 + $0x98] sm:$0xff] %v1555_v61  ;;  %v1457_v26 = vpop.xlane.xlu0 %1456  ;;  %v1552_v47 = vmul.f32 %v4095_v0, %v5550_v32  ;;  %v1609_v20 = vpack.c.bf16 %v1555_v61, %v1554_v30 }
 0x490   : > { %v4097_v16 = vpop.eup %4096  ;;  %4106 = vrcp.f32 %v1457_v26 }
 0x491   : > { %3654 = vmatpush3.bf16.xpose.msra.mxu0 %v5287_v7  ;;  %v1459_v25 = vpop.xlane.xlu1 %1458  ;;  %v1553_v11 = vmul.f32 %v4097_v16, %v5554_v38  ;;  %1584 = vst [vmem:[%s5649_s28 + $0x80] sm:$0xff] %v1552_v47 }
 0x492   : > { %v4099_v37 = vpop.eup %4098  ;;  %3703 = vmatprep.subr.bf16.mxu0 %v5175_v59  ;;  %4108 = vrcp.f32 %v1459_v25 }
 0x493   : > { %v1461_v36 = vpop.xlane.xlu0 %1460  ;;  %1585 = vst [vmem:[%s5649_s28 + $0x88] sm:$0xff] %v1553_v11  ;;  %v1608_v4 = vpack.c.bf16 %v1553_v11, %v1552_v47  ;;  %v1540_v5 = vmul.f32 %v4099_v37, %v5558_v1 }
 0x494   : > { %v4101_v32 = vpop.eup %4100  ;;  %4110 = vrcp.f32 %v1461_v36 }
 0x495   : > { %3623 = vmatprep.mubr.bf16.mxu1 %v1608_v4  ;;  %v1463_v43 = vpop.xlane.xlu1 %1462  ;;  %v1541_v54 = vmul.f32 %v4101_v32, %v5562_v51  ;;  %1572 = vst [vmem:[%s5649_s28 + $0x20] sm:$0xff] %v1540_v5 }
 0x496   : > { %v4103_v38 = vpop.eup %4102  ;;  %4112 = vrcp.f32 %v1463_v43  ;;  %3624 = vmatmul.mubr.bf16.vlgmr.msra.gmra.mrb[112].mxu1 %v1609_v20 }
 0x497   : > { %3672 = vmatpush3.bf16.xpose.msra.mxu1 %v5298_v23  ;;  %v1465_v29 = vpop.xlane.xlu0 %1464  ;;  %1573 = vst [vmem:[%s5649_s28 + $0x28] sm:$0xff] %v1541_v54  ;;  %v1602_v46 = vpack.c.bf16 %v1541_v54, %v1540_v5  ;;  %v1542_v1 = vmul.f32 %v4103_v38, %v5566_v9 }
 0x498   : > { %v4105_v63 = vpop.eup %4104  ;;  %4114 = vrcp.f32 %v1465_v29  ;;  %3673 = vmatprep.subr.bf16.mxu1 %v5318_v48 }
 0x499   : > { %3595 = vmatprep.mubr.bf16.mxu0 %v1602_v46  ;;  %v1467_v51 = vpop.xlane.xlu1 %1466  ;;  %v1543_v30 = vmul.f32 %v4105_v63, %v5570_v27  ;;  %1574 = vst [vmem:[%s5649_s28 + $0x30] sm:$0xff] %v1542_v1 }
 0x49a   : > { %v4107_v49 = vpop.eup %4106  ;;  %4116 = vrcp.f32 %v1467_v51 }
 0x49b   : > { %v1469_v61 = vpop.xlane.xlu0 %1468  ;;  %1575 = vst [vmem:[%s5649_s28 + $0x38] sm:$0xff] %v1543_v30  ;;  %v1603_v42 = vpack.c.bf16 %v1543_v30, %v1542_v1  ;;  %v1544_v0 = vmul.f32 %v4107_v49, %v5574_v58 }
 0x49c   : > { %v4109_v26 = vpop.eup %4108  ;;  %4118 = vrcp.f32 %v1469_v61 }
 0x49d   : > { %3596 = vmatmul.mubr.bf16.gmra.mrb[52].mxu0 %v1603_v42  ;;  %v1471_v9 = vpop.xlane.xlu1 %1470  ;;  %v1545_v47 = vmul.f32 %v4109_v26, %v5578_v44  ;;  %1576 = vst [vmem:[%s5649_s28 + $0x40] sm:$0xff] %v1544_v0 }
 0x49e   : > { %v4111_v16 = vpop.eup %4110  ;;  %4120 = vrcp.f32 %v1471_v9 }
 0x49f   : > { %3674 = vmatpush3.bf16.xpose.msra.mxu1 %v5318_v48  ;;  %1577 = vst [vmem:[%s5649_s28 + $0x48] sm:$0xff] %v1545_v47  ;;  %v1604_v27 = vpack.c.bf16 %v1545_v47, %v1544_v0  ;;  %v1546_v25 = vmul.f32 %v4111_v16, %v5581_v57  ;;  %v6539_v16 = vld [vmem:[#allocation37_spill] sm:$0xff] }
 0x4a0   : > { %v4113_v11 = vpop.eup %4112  ;;  %3675 = vmatprep.subr.bf16.mxu1 %v5338_v35 }
 0x4a1   : > { %3599 = vmatprep.mubr.bf16.mxu0 %v1604_v27  ;;  %v1547_v58 = vmul.f32 %v4113_v11, %v5584_v21  ;;  %1578 = vst [vmem:[%s5649_s28 + $0x50] sm:$0xff] %v1546_v25  ;;  %v6540_v27 = vpack.c.bf16 %v5088_v14, %v6539_v16  ;;  %v6578_v16 = vld [vmem:[#allocation38_spill] sm:$0xff] }
 0x4a2   : > { %v4115_v37 = vpop.eup %4114 }
 0x4a3   : > { %v1481_v44 = vpop.xlane.xlu0 %1480  ;;  %1579 = vst [vmem:[%s5649_s28 + $0x58] sm:$0xff] %v1547_v58  ;;  %v1605_v36 = vpack.c.bf16 %v1547_v58, %v1546_v25  ;;  %v1548_v4 = vmul.f32 %v4115_v37, %v5589_v10  ;;  %v6541_v25 = vld [vmem:[#allocation52_spill] sm:$0xff] }
 0x4a4   : > { %v4117_v5 = vpop.eup %4116  ;;  %4122 = vrcp.f32 %v1481_v44  ;;  %v6542_v44 = vld [vmem:[#allocation41_spill] sm:$0xff] }
 0x4a5   : > { %3600 = vmatmul.mubr.bf16.gmra.mrb[56].mxu0 %v1605_v36  ;;  %v1483_v32 = vpop.xlane.xlu1 %1482  ;;  %v1549_v57 = vmul.f32 %v4117_v5, %v5594_v50  ;;  %1580 = vst [vmem:[%s5649_s28 + $0x60] sm:$0xff] %v1548_v4  ;;  %v6543_v36 = vld [vmem:[#allocation40_spill] sm:$0xff] }
 0x4a6   : > { %v4119_v20 = vpop.eup %4118  ;;  %4124 = vrcp.f32 %v1483_v32  ;;  %v6546_v32 = vld [vmem:[#allocation44_spill] sm:$0xff] }
 0x4a7   : > { %3676 = vmatpush3.bf16.xpose.msra.mxu1 %v5338_v35  ;;  %v1485_v21 = vpop.xlane.xlu0 %1484  ;;  %1581 = vst [vmem:[%s5649_s28 + $0x68] sm:$0xff] %v1549_v57  ;;  %v1606_v43 = vpack.c.bf16 %v1549_v57, %v1548_v4  ;;  %v1550_v54 = vmul.f32 %v4119_v20, %v5597_v40  ;;  %v6537_v40 = vpack.c.bf16 %v4976_v28, %v4967_v19 }
 0x4a8   : > { %v4121_v38 = vpop.eup %4120  ;;  %4126 = vrcp.f32 %v1485_v21  ;;  %3677 = vmatprep.subr.bf16.mxu1 %v5358_v31  ;;  %v6544_v4 = vpack.c.bf16 %v6542_v44, %v6543_v36 }
 0x4a9   : > { %3603 = vmatprep.mubr.bf16.mxu0 %v1606_v43  ;;  %v1487_v10 = vpop.xlane.xlu1 %1486  ;;  %v1551_v29 = vmul.f32 %v4121_v38, %v5600_v60  ;;  %1582 = vst [vmem:[%s5649_s28 + $0x70] sm:$0xff] %v1550_v54 }
 0x4aa   : > { %4128 = vrcp.f32 %v1487_v10 }
 0x4ab   : > { %v1489_v50 = vpop.xlane.xlu0 %1488  ;;  %1583 = vst [vmem:[%s5649_s28 + $0x78] sm:$0xff] %v1551_v29  ;;  %v1607_v46 = vpack.c.bf16 %v1551_v29, %v1550_v54  ;;  %v6550_v29 = vld [vmem:[#allocation46_spill] sm:$0xff] }
 0x4ac   : > { %4130 = vrcp.f32 %v1489_v50 }
 0x4ad   : > { %3604 = vmatmul.mubr.bf16.gmra.mrb[60].mxu0 %v1607_v46  ;;  %v1491_v1 = vpop.xlane.xlu1 %1490 }
 0x4ae   : > { %v4123_v63 = vpop.eup %4122  ;;  %4132 = vrcp.f32 %v1491_v1  ;;  %3655 = vmatprep.mubr.bf16.mxu0 %v6537_v40  ;;  %v6553_v1 = vld [vmem:[#allocation48_spill] sm:$0xff]  ;;  %v6556_v40 = vld [vmem:[#allocation26_spill] sm:$0xff] }
 0x4af   : > { %3678 = vmatpush3.bf16.xpose.msra.mxu1 %v5358_v31  ;;  %v1493_v51 = vpop.xlane.xlu0 %1492  ;;  %v1556_v60 = vmul.f32 %v4123_v63, %v5607_v45  ;;  %v6538_v45 = vpack.c.bf16 %v5042_v13, %v4989_v41  ;;  %v6555_v63 = vld [vmem:[#allocation54_spill] sm:$0xff] }
 0x4b0   : > { %v4125_v30 = vpop.eup %4124  ;;  %4134 = vrcp.f32 %v1493_v51  ;;  %3679 = vmatprep.subr.bf16.mxu1 %v5373_v2 }
 0x4b1   : > { %v1495_v49 = vpop.xlane.xlu1 %1494  ;;  %v1557_v61 = vmul.f32 %v4125_v30, %v5610_v3  ;;  %1588 = vst [vmem:[%s5649_s28 + $0xa0] sm:$0xff] %v1556_v60 }
 0x4b2   : > { %v4127_v42 = vpop.eup %4126  ;;  %4136 = vrcp.f32 %v1495_v49  ;;  %v6563_v49 = vld [vmem:[#allocation27_spill] sm:$0xff] }
 0x4b3   : > { %v1497_v0 = vpop.xlane.xlu0 %1496  ;;  %1589 = vst [vmem:[%s5649_s28 + $0xa8] sm:$0xff] %v1557_v61  ;;  %v1610_v19 = vpack.c.bf16 %v1557_v61, %v1556_v60  ;;  %v1558_v28 = vmul.f32 %v4127_v42, %v5615_v6  ;;  %v6560_v60 = vld [vmem:[#allocation50_spill] sm:$0xff] }
 0x4b4   : > { %v4129_v26 = vpop.eup %4128  ;;  %4138 = vrcp.f32 %v1497_v0  ;;  %v6565_v42 = vld [vmem:[#allocation30_spill] sm:$0xff]  ;;  %v6566_v0 = vld [vmem:[#allocation29_spill] sm:$0xff] }
 0x4b5   : > { %3627 = vmatprep.mubr.bf16.mxu1 %v1610_v19  ;;  %3656 = vmatmul.mubr.bf16.vlgmr.msra.gmra.mrb[64].mxu0 %v6538_v45  ;;  %v1499_v9 = vpop.xlane.xlu1 %1498  ;;  %v1559_v47 = vmul.f32 %v4129_v26, %v5620_v24  ;;  %1590 = vst [vmem:[%s5649_s28 + $0xb0] sm:$0xff] %v1558_v28  ;;  %v6567_v19 = vpack.c.bf16 %v6565_v42, %v6566_v0  ;;  %v6572_v45 = vld [vmem:[#allocation33_spill] sm:$0xff] }
 0x4b6   : > { %v4131_v3 = vpop.eup %4130  ;;  %3704 = vmatpush3.bf16.msra.mxu0 %v5175_v59  ;;  %4140 = vrcp.f32 %v1499_v9  ;;  %3659 = vmatprep.mubr.bf16.mxu0 %v6540_v27 }
 0x4b7   : > { %3680 = vmatpush3.bf16.xpose.msra.mxu1 %v5373_v2  ;;  %3705 = vmatprep.subr.bf16.mxu0 %v5195_v22  ;;  %v1501_v41 = vpop.xlane.xlu0 %1500  ;;  %1591 = vst [vmem:[%s5649_s28 + $0xb8] sm:$0xff] %v1559_v47  ;;  %v1611_v13 = vpack.c.bf16 %v1559_v47, %v1558_v28  ;;  %v1560_v6 = vmul.f32 %v4131_v3, %v5623_v18  ;;  %v6569_v28 = vld [vmem:[#allocation31_spill] sm:$0xff] }
 0x4b8   : > { %v4133_v24 = vpop.eup %4132  ;;  %4142 = vrcp.f32 %v1501_v41  ;;  %3681 = vmatprep.subr.bf16.mxu1 %v6541_v25  ;;  %v6577_v3 = vld [vmem:[#allocation39_spill] sm:$0xff] }
 0x4b9   : > { %3628 = vmatmul.mubr.bf16.gmra.mrb[116].mxu1 %v1611_v13  ;;  %v1503_v59 = vpop.xlane.xlu1 %1502  ;;  %v1561_v14 = vmul.f32 %v4133_v24, %v5626_v8  ;;  %1592 = vst [vmem:[%s5649_s28 + $0xc0] sm:$0xff] %v1560_v6  ;;  %v6579_v27 = vpack.c.bf16 %v6577_v3, %v6578_v16 }
 0x4ba   : > { %v4135_v11 = vpop.eup %4134  ;;  %3706 = vmatpush3.bf16.msra.mxu0 %v5195_v22  ;;  %4144 = vrcp.f32 %v1503_v59  ;;  %v6545_v22 = vld [vmem:[#allocation45_spill] sm:$0xff] }
 0x4bb   : > { %3707 = vmatprep.subr.bf16.mxu0 %v5227_v15  ;;  %1593 = vst [vmem:[%s5649_s28 + $0xc8] sm:$0xff] %v1561_v14  ;;  %v1612_v58 = vpack.c.bf16 %v1561_v14, %v1560_v6  ;;  %v1562_v18 = vmul.f32 %v4135_v11, %v5629_v34  ;;  %v6547_v57 = vpack.c.bf16 %v6545_v22, %v6546_v32 }
 0x4bc   : > { %v4137_v37 = vpop.eup %4136 }
 0x4bd   : > { %3631 = vmatprep.mubr.bf16.mxu1 %v1612_v58  ;;  %3660 = vmatmul.mubr.bf16.gmra.mrb[68].mxu0 %v6544_v4  ;;  %v1563_v8 = vmul.f32 %v4137_v37, %v5632_v52  ;;  %1594 = vst [vmem:[%s5649_s28 + $0xd0] sm:$0xff] %v1562_v18  ;;  %v6548_v52 = vld [vmem:[#allocation53_spill] sm:$0xff] }
 0x4be   : > { %v4139_v5 = vpop.eup %4138  ;;  %3708 = vmatpush3.bf16.msra.mxu0 %v5227_v15  ;;  %3663 = vmatprep.mubr.bf16.mxu0 %v6547_v57 }
 0x4bf   : > { %3682 = vmatpush3.bf16.xpose.msra.mxu1 %v6541_v25  ;;  %3709 = vmatprep.subr.bf16.mxu0 %v5247_v62  ;;  %1595 = vst [vmem:[%s5649_s28 + $0xd8] sm:$0xff] %v1563_v8  ;;  %v1613_v34 = vpack.c.bf16 %v1563_v8, %v1562_v18  ;;  %v1564_v20 = vmul.f32 %v4139_v5, %v5635_v55  ;;  %v6549_v55 = vld [vmem:[#allocation47_spill] sm:$0xff] }
 0x4c0   : > { %v4141_v21 = vpop.eup %4140  ;;  %3683 = vmatprep.subr.bf16.mxu1 %v6548_v52  ;;  %v6551_v50 = vpack.c.bf16 %v6549_v55, %v6550_v29 }
 0x4c1   : > { %3632 = vmatmul.mubr.bf16.gmra.mrb[120].mxu1 %v1613_v34  ;;  %v1565_v43 = vmul.f32 %v4141_v21, %v5638_v56  ;;  %1596 = vst [vmem:[%s5649_s28 + $0xe0] sm:$0xff] %v1564_v20  ;;  %v6552_v56 = vld [vmem:[#allocation49_spill] sm:$0xff] }
 0x4c2   : > { %v4143_v15 = vpop.eup %4142  ;;  %3710 = vmatpush3.bf16.msra.mxu0 %v5247_v62  ;;  %v6554_v62 = vpack.c.bf16 %v6552_v56, %v6553_v1 }
 0x4c3   : > { %3711 = vmatprep.subr.bf16.mxu0 %v5257_v33  ;;  %1597 = vst [vmem:[%s5649_s28 + $0xe8] sm:$0xff] %v1565_v43  ;;  %v1614_v54 = vpack.c.bf16 %v1565_v43, %v1564_v20  ;;  %v1566_v38 = vmul.f32 %v4143_v15, %v5641_v53 }
 0x4c4   : > { %v4145_v10 = vpop.eup %4144 }
 0x4c5   : > { %3635 = vmatprep.mubr.bf16.mxu1 %v1614_v54  ;;  %3664 = vmatmul.mubr.bf16.gmra.mrb[72].mxu0 %v6551_v50  ;;  %v1567_v46 = vmul.f32 %v4145_v10, %v5644_v17  ;;  %1598 = vst [vmem:[%s5649_s28 + $0xf0] sm:$0xff] %v1566_v38  ;;  %v6557_v17 = vld [vmem:[#allocation25_spill] sm:$0xff] }
 0x4c6   : > { %3712 = vmatpush3.bf16.msra.mxu0 %v5257_v33  ;;  %3667 = vmatprep.mubr.bf16.mxu0 %v6554_v62  ;;  %v6558_v51 = vpack.c.bf16 %v6556_v40, %v6557_v17  ;;  %v6559_v33 = vld [vmem:[#allocation51_spill] sm:$0xff] }
 0x4c7   : > { %3684 = vmatpush3.bf16.xpose.msra.mxu1 %v6548_v52  ;;  %3713 = vmatprep.subr.bf16.mxu0 %v5267_v12  ;;  %1599 = vst [vmem:[%s5649_s28 + $0xf8] sm:$0xff] %v1567_v46  ;;  %v1615_v53 = vpack.c.bf16 %v1567_v46, %v1566_v38  ;;  %v6561_v30 = vpack.c.bf16 %v6559_v33, %v6560_v60 }
 0x4c8   : > { %3685 = vmatprep.subr.bf16.mxu1 %v6555_v63 }
 0x4c9   : > { %3636 = vmatmul.mubr.bf16.gmra.mrb[124].mxu1 %v1615_v53 }
 0x4ca   : > { %3714 = vmatpush3.bf16.msra.mxu0 %v5267_v12  ;;  %3687 = vmatprep.mubr.bf16.mxu1 %v6558_v51  ;;  %v6562_v12 = vld [vmem:[#allocation28_spill] sm:$0xff] }
 0x4cb   : > { %3715 = vmatprep.subr.bf16.mxu0 %v5277_v39  ;;  %v6564_v61 = vpack.c.bf16 %v6562_v12, %v6563_v49 }
 0x4cd   : > { %3668 = vmatmul.mubr.bf16.gmra.mrb[76].mxu0 %v6561_v30 }
 0x4ce   : > { %3716 = vmatpush3.bf16.msra.mxu0 %v5277_v39  ;;  %v6568_v39 = vld [vmem:[#allocation32_spill] sm:$0xff] }
 0x4cf   : > { %3686 = vmatpush3.bf16.xpose.msra.mxu1 %v6555_v63  ;;  %3717 = vmatprep.subr.bf16.mxu0 %v5287_v7  ;;  %v6570_v26 = vpack.c.bf16 %v6568_v39, %v6569_v28 }
 0x4d0   : > { %3735 = vmatprep.subr.bf16.mxu1 %v5298_v23 }
 0x4d2   : > { %3718 = vmatpush3.bf16.msra.mxu0 %v5287_v7  ;;  %v6571_v7 = vld [vmem:[#allocation34_spill] sm:$0xff] }
 0x4d3   : > { %v6573_v9 = vpack.c.bf16 %v6571_v7, %v6572_v45 }
 0x4d6   : > { %3688 = vmatmul.mubr.bf16.vlgmr.msra.gmra.mrb[128].mxu1 %v6564_v61 }
 0x4d7   : > { %3691 = vmatprep.mubr.bf16.mxu1 %v6567_v19  ;;  %3736 = vmatpush3.bf16.msra.mxu1 %v5298_v23  ;;  %v6574_v23 = vld [vmem:[#allocation36_spill] sm:$0xff] }
 0x4d8   : > { %3737 = vmatprep.subr.bf16.mxu1 %v5318_v48 }
 0x4db   : > { %3738 = vmatpush3.bf16.msra.mxu1 %v5318_v48  ;;  %v6575_v48 = vld [vmem:[#allocation35_spill] sm:$0xff] }
 0x4dc   : > { %3739 = vmatprep.subr.bf16.mxu1 %v5338_v35  ;;  %v6576_v47 = vpack.c.bf16 %v6574_v23, %v6575_v48 }
 0x4de   : > { %3692 = vmatmul.mubr.bf16.gmra.mrb[132].mxu1 %v6570_v26 }
 0x4df   : > { %3695 = vmatprep.mubr.bf16.mxu1 %v6573_v9  ;;  %3740 = vmatpush3.bf16.msra.mxu1 %v5338_v35  ;;  %v6580_v35 = vld [vmem:[#allocation43_spill] sm:$0xff] }
 0x4e0   : > { %3741 = vmatprep.subr.bf16.mxu1 %v5358_v31 }
 0x4e3   : > { %3742 = vmatpush3.bf16.msra.mxu1 %v5358_v31  ;;  %v6581_v31 = vld [vmem:[#allocation42_spill] sm:$0xff] }
 0x4e4   : > { %3743 = vmatprep.subr.bf16.mxu1 %v5373_v2  ;;  %v6582_v41 = vpack.c.bf16 %v6580_v35, %v6581_v31 }
 0x4e6   : > { %3696 = vmatmul.mubr.bf16.gmra.mrb[136].mxu1 %v6576_v47 }
 0x4e7   : > { %3699 = vmatprep.mubr.bf16.mxu1 %v6579_v27  ;;  %3744 = vmatpush3.bf16.msra.mxu1 %v5373_v2 }
 0x4e8   : > { %3745 = vmatprep.subr.bf16.mxu1 %v6541_v25 }
 0x4eb   : > { %3746 = vmatpush3.bf16.msra.mxu1 %v6541_v25 }
 0x4ec   : > { %3747 = vmatprep.subr.bf16.mxu1 %v6548_v52 }
 0x4ee   : > { %3700 = vmatmul.mubr.bf16.gmra.mrb[140].mxu1 %v6582_v41 }
 0x4ef   : > { %3748 = vmatpush3.bf16.msra.mxu1 %v6548_v52 }
 0x4f0   : > { %3749 = vmatprep.subr.bf16.mxu1 %v6555_v63 }
 0x4f3   : > { %3750 = vmatpush3.bf16.msra.mxu1 %v6555_v63 }
 0x52b   : > { %v5824_v13 = vpop.f32.mrb[48].mxu0 }
 0x52c   : > { %v5826_v6 = vpop.f32.mrb[49].mxu0 }
 0x52d   : > { %v5828_v2 = vpop.f32.mrb[50].mxu0 }
 0x52e   : > { %v5832_v25 = vpop.f32.mrb[51].mxu0 }
 0x569   : > { %v5836_v14 = vpop.f32.mrb[112].mxu1 }
 0x56a   : > { %6583 = vst [vmem:[#allocation37_spill] sm:$0xff] %v5836_v14  ;;  %v5838_v11 = vpop.f32.mrb[113].mxu1 }
 0x56b   : > { %v5840_v58 = vpop.f32.mrb[114].mxu1 }
 0x56c   : > { %6584 = vst [vmem:[#allocation52_spill] sm:$0xff] %v5840_v58  ;;  %v5844_v37 = vpop.f32.mrb[115].mxu1 }
 0x570   : > { %v5848_v36 = vpop.f32.mrb[52].mxu0 }
 0x571   : > { %v5850_v4 = vpop.f32.mrb[53].mxu0 }
 0x572   : > { %v5852_v8 = vpop.f32.mrb[54].mxu0 }
 0x573   : > { %v5856_v22 = vpop.f32.mrb[55].mxu0 }
 0x578   : > { %v5860_v57 = vpop.f32.mrb[56].mxu0 }
 0x579   : > { %v5862_v34 = vpop.f32.mrb[57].mxu0 }
 0x57a   : > { %v5864_v20 = vpop.f32.mrb[58].mxu0 }
 0x57b   : > { %v5868_v52 = vpop.f32.mrb[59].mxu0 }
 0x580   : > { %v5872_v15 = vpop.f32.mrb[60].mxu0 }
 0x581   : > { %v5874_v54 = vpop.f32.mrb[61].mxu0 }
 0x582   : > { %v5876_v38 = vpop.f32.mrb[62].mxu0 }
 0x583   : > { %v5880_v55 = vpop.f32.mrb[63].mxu0 }
 0x588   : > { %v5884_v50 = vpop.f32.mrb[64].mxu0 }
 0x589   : > { %v5886_v46 = vpop.f32.mrb[65].mxu0 }
 0x58a   : > { %2076 = vmax.xlane.f32.xlu0 %v5886_v46  ;;  %v5889_v56 = vpop.f32.mrb[66].mxu0 }
 0x58b   : > { %v5891_v1 = vpop.f32.mrb[67].mxu0 }
 0x58c   : > { %2078 = vmax.xlane.f32.xlu1 %v5891_v1  ;;  %v5894_v62 = vpop.f32.mrb[116].mxu1 }
 0x58d   : > { %6585 = vst [vmem:[#allocation41_spill] sm:$0xff] %v5894_v62  ;;  %v5896_v53 = vpop.f32.mrb[117].mxu1 }
 0x58e   : > { %6586 = vst [vmem:[#allocation40_spill] sm:$0xff] %v5896_v53  ;;  %2080 = vmax.xlane.f32.xlu0 %v5884_v50  ;;  %v5899_v63 = vpop.f32.mrb[118].mxu1 }
 0x58f   : > { %6587 = vst [vmem:[#allocation45_spill] sm:$0xff] %v5899_v63  ;;  %v5903_v17 = vpop.f32.mrb[119].mxu1 }
 0x590   : > { %6588 = vst [vmem:[#allocation44_spill] sm:$0xff] %v5903_v17  ;;  %2082 = vmax.xlane.f32.xlu1 %v5889_v56  ;;  %v5908_v33 = vpop.f32.mrb[68].mxu0 }
 0x591   : > { %v5910_v60 = vpop.f32.mrb[69].mxu0 }
 0x592   : > { %2084 = vmax.xlane.f32.xlu0 %v5910_v60  ;;  %v5913_v30 = vpop.f32.mrb[70].mxu0 }
 0x593   : > { %v5915_v12 = vpop.f32.mrb[71].mxu0 }
 0x594   : > { %2086 = vmax.xlane.f32.xlu1 %v5915_v12  ;;  %v5918_v49 = vpop.f32.mrb[120].mxu1 }
 0x595   : > { %6589 = vst [vmem:[#allocation53_spill] sm:$0xff] %v5918_v49  ;;  %v5920_v61 = vpop.f32.mrb[121].mxu1 }
 0x596   : > { %6590 = vst [vmem:[#allocation47_spill] sm:$0xff] %v5920_v61  ;;  %2088 = vmax.xlane.f32.xlu0 %v5908_v33  ;;  %v5923_v42 = vpop.f32.mrb[122].mxu1 }
 0x597   : > { %6591 = vst [vmem:[#allocation46_spill] sm:$0xff] %v5923_v42  ;;  %v5927_v19 = vpop.f32.mrb[123].mxu1 }
 0x598   : > { %6592 = vst [vmem:[#allocation49_spill] sm:$0xff] %v5927_v19  ;;  %2090 = vmax.xlane.f32.xlu1 %v5913_v30  ;;  %v5932_v28 = vpop.f32.mrb[72].mxu0 }
 0x599   : > { %v5934_v26 = vpop.f32.mrb[73].mxu0 }
 0x59a   : > { %2092 = vmax.xlane.f32.xlu0 %v5934_v26  ;;  %v5937_v7 = vpop.f32.mrb[74].mxu0 }
 0x59b   : > { %v5939_v45 = vpop.f32.mrb[75].mxu0 }
 0x59c   : > { %2094 = vmax.xlane.f32.xlu1 %v5939_v45  ;;  %v5942_v9 = vpop.f32.mrb[124].mxu1 }
 0x59d   : > { %6593 = vst [vmem:[#allocation48_spill] sm:$0xff] %v5942_v9  ;;  %v5944_v23 = vpop.f32.mrb[125].mxu1 }
 0x59e   : > { %6594 = vst [vmem:[#allocation54_spill] sm:$0xff] %v5944_v23  ;;  %2096 = vmax.xlane.f32.xlu0 %v5932_v28  ;;  %v5947_v48 = vpop.f32.mrb[126].mxu1 }
 0x59f   : > { %6595 = vst [vmem:[#allocation26_spill] sm:$0xff] %v5947_v48  ;;  %v5951_v3 = vpop.f32.mrb[127].mxu1 }
 0x5a0   : > { %6596 = vst [vmem:[#allocation25_spill] sm:$0xff] %v5951_v3  ;;  %2098 = vmax.xlane.f32.xlu1 %v5937_v7  ;;  %v5956_v27 = vpop.f32.mrb[76].mxu0 }
 0x5a1   : > { %v5958_v35 = vpop.f32.mrb[77].mxu0 }
 0x5a2   : > { %2100 = vmax.xlane.f32.xlu0 %v5958_v35  ;;  %v5961_v31 = vpop.f32.mrb[78].mxu0 }
 0x5a3   : > { %v5963_v41 = vpop.f32.mrb[79].mxu0 }
 0x5a4   : > { %2102 = vmax.xlane.f32.xlu1 %v5963_v41 }
 0x5a6   : > { %2104 = vmax.xlane.f32.xlu0 %v5956_v27 }
 0x5a8   : > { %2106 = vmax.xlane.f32.xlu1 %v5961_v31 }
 0x5a9   : > { %v5968_v47 = vpop.f32.mrb[128].mxu1 }
 0x5aa   : > { %v5970_v16 = vpop.f32.mrb[129].mxu1 }
 0x5ab   : > { %2108 = vmax.xlane.f32.xlu0 %v5970_v16  ;;  %v5973_v0 = vpop.f32.mrb[130].mxu1 }
 0x5ac   : > { %v5975_v39 = vpop.f32.mrb[131].mxu1 }
 0x5ad   : > { %2110 = vmax.xlane.f32.xlu1 %v5975_v39 }
 0x5af   : > { %2112 = vmax.xlane.f32.xlu0 %v5968_v47 }
 0x5b1   : > { %2114 = vmax.xlane.f32.xlu1 %v5973_v0  ;;  %v5980_v40 = vpop.f32.mrb[132].mxu1 }
 0x5b2   : > { %v5982_v51 = vpop.f32.mrb[133].mxu1 }
 0x5b3   : > { %2116 = vmax.xlane.f32.xlu0 %v5982_v51  ;;  %v5985_v18 = vpop.f32.mrb[134].mxu1 }
 0x5b4   : > { %v5987_v44 = vpop.f32.mrb[135].mxu1 }
 0x5b5   : > { %2118 = vmax.xlane.f32.xlu1 %v5987_v44 }
 0x5b7   : > { %2120 = vmax.xlane.f32.xlu0 %v5980_v40 }
 0x5b9   : > { %2122 = vmax.xlane.f32.xlu1 %v5985_v18  ;;  %v5992_v10 = vpop.f32.mrb[136].mxu1 }
 0x5ba   : > { %v5994_v29 = vpop.f32.mrb[137].mxu1 }
 0x5bb   : > { %2124 = vmax.xlane.f32.xlu0 %v5994_v29  ;;  %v5997_v21 = vpop.f32.mrb[138].mxu1 }
 0x5bc   : > { %v5999_v43 = vpop.f32.mrb[139].mxu1 }
 0x5bd   : > { %2126 = vmax.xlane.f32.xlu1 %v5999_v43 }
 0x5bf   : > { %2128 = vmax.xlane.f32.xlu0 %v5992_v10 }
 0x5c1   : > { %2130 = vmax.xlane.f32.xlu1 %v5997_v21  ;;  %v6004_v5 = vpop.f32.mrb[140].mxu1 }
 0x5c2   : > { %v6006_v32 = vpop.f32.mrb[141].mxu1 }
 0x5c3   : > { %2132 = vmax.xlane.f32.xlu0 %v6006_v32  ;;  %v6009_v24 = vpop.f32.mrb[142].mxu1 }
 0x5c4   : > { %v6011_v59 = vpop.f32.mrb[143].mxu1 }
 0x5c5   : > { %2134 = vmax.xlane.f32.xlu1 %v6011_v59 }
 0x5c7   : > { %2136 = vmax.xlane.f32.xlu0 %v6004_v5 }
 0x5c9   : > { %2138 = vmax.xlane.f32.xlu1 %v6009_v24 }
 0x617   : > { %v2077_v9 = vpop.xlane.xlu0 %2076 }
 0x618   : > { %v2140_v48 = vsub.f32 %v5886_v46, %v2077_v9 }
 0x619   : > { %v2079_v23 = vpop.xlane.xlu1 %2078 }
 0x61a   : > { %v2172_v3 = vmul.f32 1.442695, %v2140_v48  ;;  %v2141_v49 = vsub.f32 %v5891_v1, %v2079_v23 }
 0x61b   : > { %v2081_v42 = vpop.xlane.xlu0 %2080 }
 0x61c   : > { %4146 = vpow2.f32 %v2172_v3  ;;  %v2174_v61 = vmul.f32 1.442695, %v2141_v49  ;;  %v2142_v19 = vsub.f32 %v5884_v50, %v2081_v42 }
 0x61d   : > { %v2083_v62 = vpop.xlane.xlu1 %2082 }
 0x61e   : > { %4148 = vpow2.f32 %v2174_v61  ;;  %v2176_v63 = vmul.f32 1.442695, %v2142_v19  ;;  %v2143_v53 = vsub.f32 %v5889_v56, %v2083_v62 }
 0x61f   : > { %v2085_v17 = vpop.xlane.xlu0 %2084 }
 0x620   : > { %4150 = vpow2.f32 %v2176_v63  ;;  %v2178_v14 = vmul.f32 1.442695, %v2143_v53  ;;  %v2144_v58 = vsub.f32 %v5910_v60, %v2085_v17 }
 0x621   : > { %v2087_v46 = vpop.xlane.xlu1 %2086 }
 0x622   : > { %4152 = vpow2.f32 %v2178_v14  ;;  %v2180_v9 = vmul.f32 1.442695, %v2144_v58  ;;  %v2145_v1 = vsub.f32 %v5915_v12, %v2087_v46 }
 0x623   : > { %v2089_v23 = vpop.xlane.xlu0 %2088 }
 0x624   : > { %4154 = vpow2.f32 %v2180_v9  ;;  %v2182_v49 = vmul.f32 1.442695, %v2145_v1  ;;  %v2146_v50 = vsub.f32 %v5908_v33, %v2089_v23 }
 0x625   : > { %v2091_v42 = vpop.xlane.xlu1 %2090 }
 0x626   : > { %v6023_v61 = vpop.eup %4146  ;;  %4156 = vpow2.f32 %v2182_v49  ;;  %v2184_v56 = vmul.f32 1.442695, %v2146_v50  ;;  %v2147_v62 = vsub.f32 %v5913_v30, %v2091_v42 }
 0x627   : > { %v2093_v53 = vpop.xlane.xlu0 %2092  ;;  %2236 = vadd.xlane.f32.xlu0 %v6023_v61 }
 0x628   : > { %v6027_v63 = vpop.eup %4148  ;;  %4158 = vpow2.f32 %v2184_v56  ;;  %v2186_v14 = vmul.f32 1.442695, %v2147_v62  ;;  %v2148_v58 = vsub.f32 %v5934_v26, %v2093_v53 }
 0x629   : > { %2238 = vadd.xlane.f32.xlu1 %v6027_v63  ;;  %v2095_v17 = vpop.xlane.xlu1 %2094 }
 0x62a   : > { %v6031_v33 = vpop.eup %4150  ;;  %4160 = vpow2.f32 %v2186_v14  ;;  %v2188_v60 = vmul.f32 1.442695, %v2148_v58  ;;  %v2149_v12 = vsub.f32 %v5939_v45, %v2095_v17 }
 0x62b   : > { %v2097_v19 = vpop.xlane.xlu0 %2096  ;;  %2240 = vadd.xlane.f32.xlu0 %v6031_v33 }
 0x62c   : > { %v6035_v30 = vpop.eup %4152  ;;  %4162 = vpow2.f32 %v2188_v60  ;;  %v2190_v48 = vmul.f32 1.442695, %v2149_v12  ;;  %v2150_v3 = vsub.f32 %v5932_v28, %v2097_v19 }
 0x62d   : > { %2242 = vadd.xlane.f32.xlu1 %v6035_v30  ;;  %v2099_v26 = vpop.xlane.xlu1 %2098 }
 0x62e   : > { %v6039_v46 = vpop.eup %4154  ;;  %4164 = vpow2.f32 %v2190_v48  ;;  %v2192_v9 = vmul.f32 1.442695, %v2150_v3  ;;  %v2151_v1 = vsub.f32 %v5937_v7, %v2099_v26 }
 0x62f   : > { %v2101_v23 = vpop.xlane.xlu0 %2100  ;;  %2244 = vadd.xlane.f32.xlu0 %v6039_v46 }
 0x630   : > { %v6043_v45 = vpop.eup %4156  ;;  %4166 = vpow2.f32 %v2192_v9  ;;  %v2194_v49 = vmul.f32 1.442695, %v2151_v1  ;;  %v2152_v50 = vsub.f32 %v5958_v35, %v2101_v23 }
 0x631   : > { %2246 = vadd.xlane.f32.xlu1 %v6043_v45  ;;  %v2103_v28 = vpop.xlane.xlu1 %2102 }
 0x632   : > { %v6047_v42 = vpop.eup %4158  ;;  %4168 = vpow2.f32 %v2194_v49  ;;  %v2196_v56 = vmul.f32 1.442695, %v2152_v50  ;;  %v2153_v62 = vsub.f32 %v5963_v41, %v2103_v28 }
 0x633   : > { %v2105_v53 = vpop.xlane.xlu0 %2104  ;;  %2248 = vadd.xlane.f32.xlu0 %v6047_v42 }
 0x634   : > { %v6051_v7 = vpop.eup %4160  ;;  %4170 = vpow2.f32 %v2196_v56  ;;  %v2198_v14 = vmul.f32 1.442695, %v2153_v62  ;;  %v2154_v58 = vsub.f32 %v5956_v27, %v2105_v53 }
 0x635   : > { %2250 = vadd.xlane.f32.xlu1 %v6051_v7  ;;  %v2107_v35 = vpop.xlane.xlu1 %2106 }
 0x636   : > { %v6055_v17 = vpop.eup %4162  ;;  %4172 = vpow2.f32 %v2198_v14  ;;  %v2200_v60 = vmul.f32 1.442695, %v2154_v58  ;;  %v2155_v12 = vsub.f32 %v5961_v31, %v2107_v35 }
 0x637   : > { %2252 = vadd.xlane.f32.xlu0 %v6055_v17 }
 0x638   : > { %v6059_v41 = vpop.eup %4164  ;;  %4174 = vpow2.f32 %v2200_v60  ;;  %v2202_v19 = vmul.f32 1.442695, %v2155_v12  ;;  %v2109_v48 = vpop.xlane.xlu0 %2108 }
 0x639   : > { %v2156_v3 = vsub.f32 %v5970_v16, %v2109_v48  ;;  %2254 = vadd.xlane.f32.xlu1 %v6059_v41 }
 0x63a   : > { %v6063_v27 = vpop.eup %4166  ;;  %4176 = vpow2.f32 %v2202_v19  ;;  %v2111_v26 = vpop.xlane.xlu1 %2110 }
 0x63b   : > { %v2204_v9 = vmul.f32 1.442695, %v2156_v3  ;;  %v2157_v1 = vsub.f32 %v5975_v39, %v2111_v26  ;;  %2256 = vadd.xlane.f32.xlu0 %v6063_v27 }
 0x63c   : > { %v6067_v31 = vpop.eup %4168  ;;  %v2113_v23 = vpop.xlane.xlu0 %2112 }
 0x63d   : > { %4178 = vpow2.f32 %v2204_v9  ;;  %v2206_v49 = vmul.f32 1.442695, %v2157_v1  ;;  %v2158_v50 = vsub.f32 %v5968_v47, %v2113_v23  ;;  %2258 = vadd.xlane.f32.xlu1 %v6067_v31 }
 0x63e   : > { %v6071_v16 = vpop.eup %4170  ;;  %v2115_v28 = vpop.xlane.xlu1 %2114 }
 0x63f   : > { %4180 = vpow2.f32 %v2206_v49  ;;  %v2208_v56 = vmul.f32 1.442695, %v2158_v50  ;;  %v2159_v62 = vsub.f32 %v5973_v0, %v2115_v28  ;;  %2260 = vadd.xlane.f32.xlu0 %v6071_v16 }
 0x640   : > { %v6075_v39 = vpop.eup %4172  ;;  %v2117_v53 = vpop.xlane.xlu0 %2116 }
 0x641   : > { %4182 = vpow2.f32 %v2208_v56  ;;  %v2210_v14 = vmul.f32 1.442695, %v2159_v62  ;;  %v2160_v58 = vsub.f32 %v5982_v51, %v2117_v53  ;;  %2262 = vadd.xlane.f32.xlu1 %v6075_v39 }
 0x642   : > { %v6079_v47 = vpop.eup %4174  ;;  %v2119_v35 = vpop.xlane.xlu1 %2118 }
 0x643   : > { %4184 = vpow2.f32 %v2210_v14  ;;  %v2212_v60 = vmul.f32 1.442695, %v2160_v58  ;;  %v2161_v12 = vsub.f32 %v5987_v44, %v2119_v35  ;;  %2264 = vadd.xlane.f32.xlu0 %v6079_v47 }
 0x644   : > { %v6083_v0 = vpop.eup %4176  ;;  %v2121_v19 = vpop.xlane.xlu0 %2120 }
 0x645   : > { %4186 = vpow2.f32 %v2212_v60  ;;  %v2214_v48 = vmul.f32 1.442695, %v2161_v12  ;;  %v2162_v3 = vsub.f32 %v5980_v40, %v2121_v19  ;;  %2266 = vadd.xlane.f32.xlu1 %v6083_v0 }
 0x646   : > { %v2123_v51 = vpop.xlane.xlu1 %2122 }
 0x647   : > { %v6087_v26 = vpop.eup %4178  ;;  %4188 = vpow2.f32 %v2214_v48  ;;  %v2216_v9 = vmul.f32 1.442695, %v2162_v3  ;;  %v2163_v1 = vsub.f32 %v5985_v18, %v2123_v51 }
 0x648   : > { %v2125_v23 = vpop.xlane.xlu0 %2124  ;;  %2268 = vadd.xlane.f32.xlu0 %v6087_v26 }
 0x649   : > { %v6091_v44 = vpop.eup %4180  ;;  %4190 = vpow2.f32 %v2216_v9  ;;  %v2218_v49 = vmul.f32 1.442695, %v2163_v1  ;;  %v2164_v50 = vsub.f32 %v5994_v29, %v2125_v23 }
 0x64a   : > { %2270 = vadd.xlane.f32.xlu1 %v6091_v44  ;;  %v2127_v40 = vpop.xlane.xlu1 %2126 }
 0x64b   : > { %v6095_v28 = vpop.eup %4182  ;;  %4192 = vpow2.f32 %v2218_v49  ;;  %v2220_v56 = vmul.f32 1.442695, %v2164_v50  ;;  %v2165_v62 = vsub.f32 %v5999_v43, %v2127_v40 }
 0x64c   : > { %v2129_v53 = vpop.xlane.xlu0 %2128  ;;  %2272 = vadd.xlane.f32.xlu0 %v6095_v28 }
 0x64d   : > { %v6099_v18 = vpop.eup %4184  ;;  %4194 = vpow2.f32 %v2220_v56  ;;  %v2222_v14 = vmul.f32 1.442695, %v2165_v62  ;;  %v2166_v58 = vsub.f32 %v5992_v10, %v2129_v53 }
 0x64e   : > { %2274 = vadd.xlane.f32.xlu1 %v6099_v18  ;;  %v2131_v29 = vpop.xlane.xlu1 %2130 }
 0x64f   : > { %v6103_v35 = vpop.eup %4186  ;;  %4196 = vpow2.f32 %v2222_v14  ;;  %v2224_v60 = vmul.f32 1.442695, %v2166_v58  ;;  %v2167_v12 = vsub.f32 %v5997_v21, %v2131_v29 }
 0x650   : > { %2276 = vadd.xlane.f32.xlu0 %v6103_v35  ;;  %v2133_v43 = vpop.xlane.xlu0 %2132 }
 0x651   : > { %v6107_v19 = vpop.eup %4188  ;;  %4198 = vpow2.f32 %v2224_v60  ;;  %v2226_v48 = vmul.f32 1.442695, %v2167_v12  ;;  %v2168_v3 = vsub.f32 %v6006_v32, %v2133_v43  ;;  %v2623_v12 = vld [vmem:[#allocation10 + $0x80] sm:$0xff]  ;;  %v2624_v43 = vld [vmem:[#allocation10 + $0x88] sm:$0xff] }
 0x652   : > { %2278 = vadd.xlane.f32.xlu1 %v6107_v19  ;;  %v2135_v10 = vpop.xlane.xlu1 %2134 }
 0x653   : > { %v6111_v51 = vpop.eup %4190  ;;  %4200 = vpow2.f32 %v2226_v48  ;;  %v2228_v9 = vmul.f32 1.442695, %v2168_v3  ;;  %v2169_v1 = vsub.f32 %v6011_v59, %v2135_v10  ;;  %v2639_v48 = vpack.c.bf16 %v2624_v43, %v2623_v12 }
 0x654   : > { %2280 = vadd.xlane.f32.xlu0 %v6111_v51  ;;  %v2137_v21 = vpop.xlane.xlu0 %2136 }
 0x655   : > { %v6115_v23 = vpop.eup %4192  ;;  %4202 = vpow2.f32 %v2228_v9  ;;  %v2230_v49 = vmul.f32 1.442695, %v2169_v1  ;;  %v2170_v50 = vsub.f32 %v6004_v5, %v2137_v21  ;;  %3767 = vmatprep.subr.bf16.mxu0 %v2639_v48 }
 0x656   : > { %2282 = vadd.xlane.f32.xlu1 %v6115_v23  ;;  %v2139_v32 = vpop.xlane.xlu1 %2138 }
 0x657   : > { %v6119_v40 = vpop.eup %4194  ;;  %4204 = vpow2.f32 %v2230_v49  ;;  %v2232_v56 = vmul.f32 1.442695, %v2170_v50  ;;  %v2171_v62 = vsub.f32 %v6009_v24, %v2139_v32 }
 0x658   : > { %2284 = vadd.xlane.f32.xlu0 %v6119_v40 }
 0x659   : > { %v6123_v59 = vpop.eup %4196  ;;  %4206 = vpow2.f32 %v2232_v56  ;;  %v2234_v53 = vmul.f32 1.442695, %v2171_v62 }
 0x65a   : > { %2286 = vadd.xlane.f32.xlu1 %v6123_v59 }
 0x65b   : > { %v6126_v14 = vpop.eup %4198  ;;  %4208 = vpow2.f32 %v2234_v53 }
 0x65c   : > { %2288 = vadd.xlane.f32.xlu0 %v6126_v14 }
 0x65d   : > { %v6129_v5 = vpop.eup %4200 }
 0x65e   : > { %2290 = vadd.xlane.f32.xlu1 %v6129_v5 }
 0x65f   : > { %v6132_v58 = vpop.eup %4202 }
 0x660   : > { %2292 = vadd.xlane.f32.xlu0 %v6132_v58 }
 0x661   : > { %v6135_v24 = vpop.eup %4204 }
 0x662   : > { %2294 = vadd.xlane.f32.xlu1 %v6135_v24 }
 0x663   : > { %v6138_v29 = vpop.eup %4206 }
 0x664   : > { %2296 = vadd.xlane.f32.xlu0 %v6138_v29 }
 0x665   : > { %v6141_v60 = vpop.eup %4208 }
 0x666   : > { %2298 = vadd.xlane.f32.xlu1 %v6141_v60 }
 0x6b4   : > { %v2237_v3 = vpop.xlane.xlu0 %2236 }
 0x6b5   : > { %4210 = vrcp.f32 %v2237_v3 }
 0x6b6   : > { %v2239_v10 = vpop.xlane.xlu1 %2238 }
 0x6b7   : > { %4212 = vrcp.f32 %v2239_v10 }
 0x6b8   : > { %v2241_v9 = vpop.xlane.xlu0 %2240 }
 0x6b9   : > { %4214 = vrcp.f32 %v2241_v9 }
 0x6ba   : > { %v2243_v1 = vpop.xlane.xlu1 %2242 }
 0x6bb   : > { %4216 = vrcp.f32 %v2243_v1 }
 0x6bc   : > { %v2245_v21 = vpop.xlane.xlu0 %2244 }
 0x6bd   : > { %4218 = vrcp.f32 %v2245_v21  ;;  %v2625_v21 = vld [vmem:[#allocation10 + $0x90] sm:$0xff] }
 0x6be   : > { %v2247_v49 = vpop.xlane.xlu1 %2246 }
 0x6bf   : > { %v4211_v50 = vpop.eup %4210  ;;  %4220 = vrcp.f32 %v2247_v49  ;;  %v2626_v49 = vld [vmem:[#allocation10 + $0x98] sm:$0xff] }
 0x6c0   : > { %v2249_v32 = vpop.xlane.xlu0 %2248  ;;  %v2332_v56 = vmul.f32 %v4211_v50, %v6023_v61 }
 0x6c1   : > { %v4213_v62 = vpop.eup %4212  ;;  %4222 = vrcp.f32 %v2249_v32 }
 0x6c2   : > { %v2251_v53 = vpop.xlane.xlu1 %2250  ;;  %v2333_v12 = vmul.f32 %v4213_v62, %v6027_v63  ;;  %3284 = vst [vmem:[%s5649_s28 + $0x100] sm:$0xff] %v2332_v56 }
 0x6c3   : > { %v4215_v43 = vpop.eup %4214  ;;  %4224 = vrcp.f32 %v2251_v53  ;;  %v2640_v53 = vpack.c.bf16 %v2626_v49, %v2625_v21  ;;  %v2629_v49 = vld [vmem:[#allocation10 + $0xb0] sm:$0xff] }
 0x6c4   : > { %v2334_v3 = vmul.f32 %v4215_v43, %v6031_v33  ;;  %v2253_v10 = vpop.xlane.xlu0 %2252  ;;  %3285 = vst [vmem:[%s5649_s28 + $0x108] sm:$0xff] %v2333_v12  ;;  %v2397_v9 = vpack.c.bf16 %v2333_v12, %v2332_v56  ;;  %v2627_v12 = vld [vmem:[#allocation10 + $0xa0] sm:$0xff]  ;;  %v2628_v43 = vld [vmem:[#allocation10 + $0xa8] sm:$0xff] }
 0x6c5   : > { %v4217_v1 = vpop.eup %4216  ;;  %4226 = vrcp.f32 %v2253_v10 }
 0x6c6   : > { %3286 = vst [vmem:[%s5649_s28 + $0x110] sm:$0xff] %v2334_v3  ;;  %v2335_v61 = vmul.f32 %v4217_v1, %v6035_v30  ;;  %3719 = vmatprep.mubr.bf16.mxu0 %v2397_v9  ;;  %v2255_v50 = vpop.xlane.xlu1 %2254 }
 0x6c7   : > { %v4219_v63 = vpop.eup %4218  ;;  %4228 = vrcp.f32 %v2255_v50 }
 0x6c8   : > { %3287 = vst [vmem:[%s5649_s28 + $0x118] sm:$0xff] %v2335_v61  ;;  %v2257_v32 = vpop.xlane.xlu0 %2256  ;;  %v2398_v62 = vpack.c.bf16 %v2335_v61, %v2334_v3  ;;  %v2336_v33 = vmul.f32 %v4219_v63, %v6039_v46  ;;  %v2641_v3 = vpack.c.bf16 %v2628_v43, %v2627_v12  ;;  %v2630_v61 = vld [vmem:[#allocation10 + $0xb8] sm:$0xff]  ;;  %v2631_v12 = vld [vmem:[#allocation10 + $0xc0] sm:$0xff]  ;;  %v2632_v43 = vld [vmem:[#allocation10 + $0xc8] sm:$0xff] }
 0x6c9   : > { %v4221_v56 = vpop.eup %4220  ;;  %4230 = vrcp.f32 %v2257_v32 }
 0x6ca   : > { %3720 = vmatmul.mubr.bf16.vlgmr.msra.gmra.mrb[80].mxu0 %v2398_v62  ;;  %v2259_v10 = vpop.xlane.xlu1 %2258  ;;  %v2337_v30 = vmul.f32 %v4221_v56, %v6043_v45  ;;  %3288 = vst [vmem:[%s5649_s28 + $0x120] sm:$0xff] %v2336_v33 }
 0x6cb   : > { %v4223_v9 = vpop.eup %4222  ;;  %4232 = vrcp.f32 %v2259_v10  ;;  %3768 = vmatpush3.bf16.msra.mxu0 %v2639_v48 }
 0x6cc   : > { %v2261_v1 = vpop.xlane.xlu0 %2260  ;;  %3289 = vst [vmem:[%s5649_s28 + $0x128] sm:$0xff] %v2337_v30  ;;  %v2399_v50 = vpack.c.bf16 %v2337_v30, %v2336_v33  ;;  %v2338_v46 = vmul.f32 %v4223_v9, %v6047_v42  ;;  %3769 = vmatprep.subr.bf16.mxu0 %v2640_v53  ;;  %v2642_v33 = vpack.c.bf16 %v2630_v61, %v2629_v49 }
 0x6cd   : > { %v4225_v21 = vpop.eup %4224  ;;  %4234 = vrcp.f32 %v2261_v1  ;;  %v2643_v9 = vpack.c.bf16 %v2632_v43, %v2631_v12 }
 0x6ce   : > { %3723 = vmatprep.mubr.bf16.mxu0 %v2399_v50  ;;  %v2263_v63 = vpop.xlane.xlu1 %2262  ;;  %v2339_v45 = vmul.f32 %v4225_v21, %v6051_v7  ;;  %3290 = vst [vmem:[%s5649_s28 + $0x130] sm:$0xff] %v2338_v46  ;;  %v2634_v21 = vld [vmem:[#allocation10 + $0xd8] sm:$0xff] }
 0x6cf   : > { %v4227_v32 = vpop.eup %4226  ;;  %4236 = vrcp.f32 %v2263_v63  ;;  %3770 = vmatpush3.bf16.msra.mxu0 %v2640_v53 }
 0x6d0   : > { %v2265_v48 = vpop.xlane.xlu0 %2264  ;;  %3291 = vst [vmem:[%s5649_s28 + $0x138] sm:$0xff] %v2339_v45  ;;  %v2400_v62 = vpack.c.bf16 %v2339_v45, %v2338_v46  ;;  %v2340_v42 = vmul.f32 %v4227_v32, %v6055_v17  ;;  %3771 = vmatprep.subr.bf16.mxu0 %v2641_v3  ;;  %v2633_v46 = vld [vmem:[#allocation10 + $0xd0] sm:$0xff] }
 0x6d1   : > { %v4229_v56 = vpop.eup %4228  ;;  %4238 = vrcp.f32 %v2265_v48  ;;  %v2644_v63 = vpack.c.bf16 %v2634_v21, %v2633_v46  ;;  %v2635_v48 = vld [vmem:[#allocation10 + $0xe0] sm:$0xff] }
 0x6d2   : > { %3724 = vmatmul.mubr.bf16.gmra.mrb[84].mxu0 %v2400_v62  ;;  %v2267_v10 = vpop.xlane.xlu1 %2266  ;;  %v2341_v7 = vmul.f32 %v4229_v56, %v6059_v41  ;;  %3292 = vst [vmem:[%s5649_s28 + $0x140] sm:$0xff] %v2340_v42  ;;  %v2636_v62 = vld [vmem:[#allocation10 + $0xe8] sm:$0xff] }
 0x6d3   : > { %v4231_v30 = vpop.eup %4230  ;;  %4240 = vrcp.f32 %v2267_v10  ;;  %3772 = vmatpush3.bf16.msra.mxu0 %v2641_v3  ;;  %v2645_v12 = vpack.c.bf16 %v2636_v62, %v2635_v48 }
 0x6d4   : > { %3293 = vst [vmem:[%s5649_s28 + $0x148] sm:$0xff] %v2341_v7  ;;  %v2401_v53 = vpack.c.bf16 %v2341_v7, %v2340_v42  ;;  %v2342_v17 = vmul.f32 %v4231_v30, %v6063_v27  ;;  %3773 = vmatprep.subr.bf16.mxu0 %v2642_v33 }
 0x6d5   : > { %v4233_v1 = vpop.eup %4232  ;;  %v2269_v50 = vpop.xlane.xlu0 %2268 }
 0x6d6   : > { %4242 = vrcp.f32 %v2269_v50  ;;  %3727 = vmatprep.mubr.bf16.mxu0 %v2401_v53  ;;  %v2343_v41 = vmul.f32 %v4233_v1, %v6067_v31  ;;  %3294 = vst [vmem:[%s5649_s28 + $0x150] sm:$0xff] %v2342_v17 }
 0x6d7   : > { %v4235_v49 = vpop.eup %4234  ;;  %v2271_v61 = vpop.xlane.xlu1 %2270  ;;  %3774 = vmatpush3.bf16.msra.mxu0 %v2642_v33 }
 0x6d8   : > { %4244 = vrcp.f32 %v2271_v61  ;;  %3295 = vst [vmem:[%s5649_s28 + $0x158] sm:$0xff] %v2343_v41  ;;  %v2402_v3 = vpack.c.bf16 %v2343_v41, %v2342_v17  ;;  %v2344_v27 = vmul.f32 %v4235_v49, %v6071_v16  ;;  %3775 = vmatprep.subr.bf16.mxu0 %v2643_v9 }
 0x6d9   : > { %v4237_v45 = vpop.eup %4236  ;;  %v2273_v32 = vpop.xlane.xlu0 %2272 }
 0x6da   : > { %4246 = vrcp.f32 %v2273_v32  ;;  %3728 = vmatmul.mubr.bf16.gmra.mrb[88].mxu0 %v2402_v3  ;;  %v2345_v31 = vmul.f32 %v4237_v45, %v6075_v39  ;;  %3296 = vst [vmem:[%s5649_s28 + $0x160] sm:$0xff] %v2344_v27 }
 0x6db   : > { %v4239_v42 = vpop.eup %4238  ;;  %v2275_v33 = vpop.xlane.xlu1 %2274  ;;  %3776 = vmatpush3.bf16.msra.mxu0 %v2643_v9 }
 0x6dc   : > { %4248 = vrcp.f32 %v2275_v33  ;;  %3297 = vst [vmem:[%s5649_s28 + $0x168] sm:$0xff] %v2345_v31  ;;  %v2403_v56 = vpack.c.bf16 %v2345_v31, %v2344_v27  ;;  %v2346_v16 = vmul.f32 %v4239_v42, %v6079_v47  ;;  %3777 = vmatprep.subr.bf16.mxu0 %v2644_v63 }
 0x6dd   : > { %v4241_v43 = vpop.eup %4240  ;;  %v2277_v10 = vpop.xlane.xlu0 %2276 }
 0x6de   : > { %4250 = vrcp.f32 %v2277_v10  ;;  %3731 = vmatprep.mubr.bf16.mxu0 %v2403_v56  ;;  %v2347_v7 = vmul.f32 %v4241_v43, %v6083_v0  ;;  %3298 = vst [vmem:[%s5649_s28 + $0x170] sm:$0xff] %v2346_v16 }
 0x6df   : > { %v2279_v39 = vpop.xlane.xlu1 %2278  ;;  %3778 = vmatpush3.bf16.msra.mxu0 %v2644_v63 }
 0x6e0   : > { %v4243_v30 = vpop.eup %4242  ;;  %4252 = vrcp.f32 %v2279_v39  ;;  %3299 = vst [vmem:[%s5649_s28 + $0x178] sm:$0xff] %v2347_v7  ;;  %v2404_v53 = vpack.c.bf16 %v2347_v7, %v2346_v16  ;;  %3779 = vmatprep.subr.bf16.mxu0 %v2645_v12 }
 0x6e1   : > { %v2281_v17 = vpop.xlane.xlu0 %2280  ;;  %v2348_v47 = vmul.f32 %v4243_v30, %v6087_v26 }
 0x6e2   : > { %v4245_v9 = vpop.eup %4244  ;;  %4254 = vrcp.f32 %v2281_v17  ;;  %3732 = vmatmul.mubr.bf16.gmra.mrb[92].mxu0 %v2404_v53 }
 0x6e3   : > { %v2283_v1 = vpop.xlane.xlu1 %2282  ;;  %v2349_v0 = vmul.f32 %v4245_v9, %v6091_v44  ;;  %3300 = vst [vmem:[%s5649_s28 + $0x180] sm:$0xff] %v2348_v47  ;;  %3780 = vmatpush3.bf16.msra.mxu0 %v2645_v12 }
 0x6e4   : > { %v4247_v50 = vpop.eup %4246  ;;  %4256 = vrcp.f32 %v2283_v1 }
 0x6e5   : > { %v2350_v46 = vmul.f32 %v4247_v50, %v6095_v28  ;;  %v2285_v21 = vpop.xlane.xlu0 %2284  ;;  %3301 = vst [vmem:[%s5649_s28 + $0x188] sm:$0xff] %v2349_v0  ;;  %v2405_v41 = vpack.c.bf16 %v2349_v0, %v2348_v47 }
 0x6e6   : > { %v4249_v49 = vpop.eup %4248  ;;  %4258 = vrcp.f32 %v2285_v21  ;;  %v2637_v21 = vld [vmem:[#allocation10 + $0xf0] sm:$0xff] }
 0x6e7   : > { %3302 = vst [vmem:[%s5649_s28 + $0x190] sm:$0xff] %v2350_v46  ;;  %v2351_v26 = vmul.f32 %v4249_v49, %v6099_v18  ;;  %3751 = vmatprep.mubr.bf16.mxu1 %v2405_v41  ;;  %v2287_v61 = vpop.xlane.xlu1 %2286  ;;  %v1827_v49 = vld [vmem:[#allocation10 + $0x8] sm:$0xff] }
 0x6e8   : > { %v4251_v44 = vpop.eup %4250  ;;  %4260 = vrcp.f32 %v2287_v61 }
 0x6e9   : > { %3303 = vst [vmem:[%s5649_s28 + $0x198] sm:$0xff] %v2351_v26  ;;  %v2289_v3 = vpop.xlane.xlu0 %2288  ;;  %v2406_v27 = vpack.c.bf16 %v2351_v26, %v2350_v46  ;;  %v2352_v63 = vmul.f32 %v4251_v44, %v6103_v35 }
 0x6ea   : > { %v4253_v28 = vpop.eup %4252  ;;  %4262 = vrcp.f32 %v2289_v3  ;;  %v1828_v3 = vld [vmem:[#allocation10 + $0x10] sm:$0xff] }
 0x6eb   : > { %3752 = vmatmul.mubr.bf16.vlgmr.msra.gmra.mrb[144].mxu1 %v2406_v27  ;;  %v2291_v45 = vpop.xlane.xlu1 %2290  ;;  %v2353_v32 = vmul.f32 %v4253_v28, %v6107_v19  ;;  %3304 = vst [vmem:[%s5649_s28 + $0x1a0] sm:$0xff] %v2352_v63  ;;  %v1829_v27 = vld [vmem:[#allocation10 + $0x18] sm:$0xff] }
 0x6ec   : > { %v4255_v18 = vpop.eup %4254  ;;  %4264 = vrcp.f32 %v2291_v45  ;;  %v1843_v45 = vpack.c.bf16 %v1829_v27, %v1828_v3 }
 0x6ed   : > { %v2293_v48 = vpop.xlane.xlu0 %2292  ;;  %3305 = vst [vmem:[%s5649_s28 + $0x1a8] sm:$0xff] %v2353_v32  ;;  %v2407_v62 = vpack.c.bf16 %v2353_v32, %v2352_v63  ;;  %v2354_v31 = vmul.f32 %v4255_v18, %v6111_v51  ;;  %v1830_v32 = vld [vmem:[#allocation10 + $0x20] sm:$0xff]  ;;  %v1831_v18 = vld [vmem:[#allocation10 + $0x28] sm:$0xff] }
 0x6ee   : > { %v4257_v42 = vpop.eup %4256  ;;  %4266 = vrcp.f32 %v2293_v48 }
 0x6ef   : > { %3755 = vmatprep.mubr.bf16.mxu1 %v2407_v62  ;;  %v2295_v35 = vpop.xlane.xlu1 %2294  ;;  %v2355_v33 = vmul.f32 %v4257_v42, %v6115_v23  ;;  %3306 = vst [vmem:[%s5649_s28 + $0x1b0] sm:$0xff] %v2354_v31 }
 0x6f0   : > { %v4259_v56 = vpop.eup %4258  ;;  %4268 = vrcp.f32 %v2295_v35  ;;  %v1832_v35 = vld [vmem:[#allocation10 + $0x30] sm:$0xff] }
 0x6f1   : > { %v2297_v19 = vpop.xlane.xlu0 %2296  ;;  %3307 = vst [vmem:[%s5649_s28 + $0x1b8] sm:$0xff] %v2355_v33  ;;  %v2408_v16 = vpack.c.bf16 %v2355_v33, %v2354_v31  ;;  %v2356_v12 = vmul.f32 %v4259_v56, %v6119_v40  ;;  %v1844_v31 = vpack.c.bf16 %v1831_v18, %v1830_v32  ;;  %v1833_v33 = vld [vmem:[#allocation10 + $0x38] sm:$0xff] }
 0x6f2   : > { %v4261_v43 = vpop.eup %4260  ;;  %4270 = vrcp.f32 %v2297_v19 }
 0x6f3   : > { %3756 = vmatmul.mubr.bf16.gmra.mrb[148].mxu1 %v2408_v16  ;;  %v2299_v51 = vpop.xlane.xlu1 %2298  ;;  %v2357_v10 = vmul.f32 %v4261_v43, %v6123_v59  ;;  %3308 = vst [vmem:[%s5649_s28 + $0x1c0] sm:$0xff] %v2356_v12  ;;  %v1834_v43 = vld [vmem:[#allocation10 + $0x40] sm:$0xff] }
 0x6f4   : > { %v4263_v7 = vpop.eup %4262  ;;  %4272 = vrcp.f32 %v2299_v51  ;;  %v1835_v51 = vld [vmem:[#allocation10 + $0x48] sm:$0xff] }
 0x6f5   : > { %3309 = vst [vmem:[%s5649_s28 + $0x1c8] sm:$0xff] %v2357_v10  ;;  %v2409_v23 = vpack.c.bf16 %v2357_v10, %v2356_v12  ;;  %v2358_v39 = vmul.f32 %v4263_v7, %v6126_v14  ;;  %v1845_v12 = vpack.c.bf16 %v1833_v33, %v1832_v35 }
 0x6f6   : > { %v4265_v30 = vpop.eup %4264 }
 0x6f7   : > { %3759 = vmatprep.mubr.bf16.mxu1 %v2409_v23  ;;  %v2359_v40 = vmul.f32 %v4265_v30, %v6129_v5  ;;  %3310 = vst [vmem:[%s5649_s28 + $0x1d0] sm:$0xff] %v2358_v39  ;;  %v1846_v23 = vpack.c.bf16 %v1835_v51, %v1834_v43  ;;  %v1836_v30 = vld [vmem:[#allocation10 + $0x50] sm:$0xff] }
 0x6f8   : > { %v4267_v53 = vpop.eup %4266 }
 0x6f9   : > { %3311 = vst [vmem:[%s5649_s28 + $0x1d8] sm:$0xff] %v2359_v40  ;;  %v2410_v17 = vpack.c.bf16 %v2359_v40, %v2358_v39  ;;  %v2360_v59 = vmul.f32 %v4267_v53, %v6132_v58  ;;  %v2638_v58 = vld [vmem:[#allocation10 + $0xf8] sm:$0xff] }
 0x6fa   : > { %v4269_v47 = vpop.eup %4268  ;;  %v2646_v41 = vpack.c.bf16 %v2638_v58, %v2637_v21  ;;  %v1837_v40 = vld [vmem:[#allocation10 + $0x58] sm:$0xff] }
 0x6fb   : > { %3760 = vmatmul.mubr.bf16.gmra.mrb[152].mxu1 %v2410_v17  ;;  %v2361_v9 = vmul.f32 %v4269_v47, %v6135_v24  ;;  %3312 = vst [vmem:[%s5649_s28 + $0x1e0] sm:$0xff] %v2360_v59  ;;  %v1826_v24 = vld [vmem:[#allocation10] sm:$0xff]  ;;  %v1847_v47 = vpack.c.bf16 %v1837_v40, %v1836_v30  ;;  %v1841_v21 = vld [vmem:[#allocation10 + $0x78] sm:$0xff]  ;;  %v6601_v30 = vpack.c.bf16 %v5868_v52, %v5862_v34  ;;  %v6618_v40 = vld [vmem:[#allocation46_spill] sm:$0xff] }
 0x6fc   : > { %v4271_v1 = vpop.eup %4270  ;;  %3781 = vmatprep.subr.bf16.mxu0 %v2646_v41  ;;  %v1842_v26 = vpack.c.bf16 %v1827_v49, %v1826_v24  ;;  %v6613_v52 = vld [vmem:[#allocation41_spill] sm:$0xff] }
 0x6fd   : > { %3313 = vst [vmem:[%s5649_s28 + $0x1e8] sm:$0xff] %v2361_v9  ;;  %v2411_v14 = vpack.c.bf16 %v2361_v9, %v2360_v59  ;;  %v2362_v0 = vmul.f32 %v4271_v1, %v6138_v29  ;;  %3782 = vmatpush3.bf16.msra.mxu0 %v2646_v41  ;;  %v1838_v9 = vld [vmem:[#allocation10 + $0x60] sm:$0xff]  ;;  %v1839_v1 = vld [vmem:[#allocation10 + $0x68] sm:$0xff] }
 0x6fe   : > { %v4273_v50 = vpop.eup %4272  ;;  %3815 = vmatprep.subr.bf16.mxu0 %v1842_v26 }
 0x6ff   : > { %3763 = vmatprep.mubr.bf16.mxu1 %v2411_v14  ;;  %v2363_v5 = vmul.f32 %v4273_v50, %v6141_v60  ;;  %3314 = vst [vmem:[%s5649_s28 + $0x1f0] sm:$0xff] %v2362_v0  ;;  %v1848_v50 = vpack.c.bf16 %v1839_v1, %v1838_v9  ;;  %v6625_v9 = vld [vmem:[#allocation48_spill] sm:$0xff] }
 0x701   : > { %3315 = vst [vmem:[%s5649_s28 + $0x1f8] sm:$0xff] %v2363_v5  ;;  %v2412_v46 = vpack.c.bf16 %v2363_v5, %v2362_v0 }
 0x703   : > { %3764 = vmatmul.mubr.bf16.gmra.mrb[156].mxu1 %v2412_v46  ;;  %v1840_v46 = vld [vmem:[#allocation10 + $0x70] sm:$0xff] }
 0x704   : > { %v1849_v49 = vpack.c.bf16 %v1841_v21, %v1840_v46 }
 0x79d   : > { %v3721_v61 = vpop.f32.mrb[80].mxu0 }
 0x79e   : > { %v2447_v44 = vpop.f32.mrb[81].mxu0 }
 0x79f   : > { %v3722_v29 = vpop.f32.mrb[82].mxu0 }
 0x7a0   : > { %v2608_v63 = vpack.c.bf16 %v3722_v29, %v3721_v61  ;;  %v2450_v60 = vpop.f32.mrb[83].mxu0 }
 0x7a1   : > { %v2607_v28 = vpack.c.bf16 %v2450_v60, %v2447_v44 }
 0x7a3   : > { %3783 = vmatprep.mubr.bf16.mxu0 %v2607_v28 }
 0x7a4   : > { %3784 = vmatmul.mubr.bf16.vlgmr.msra.gmra.mrb[96].mxu0 %v2608_v63 }
 0x7a5   : > { %v3725_v48 = vpop.f32.mrb[84].mxu0  ;;  %3816 = vmatpush3.bf16.msra.mxu0 %v1842_v26 }
 0x7a6   : > { %v2463_v62 = vpop.f32.mrb[85].mxu0  ;;  %3817 = vmatprep.subr.bf16.mxu0 %v1843_v45 }
 0x7a7   : > { %v3726_v42 = vpop.f32.mrb[86].mxu0 }
 0x7a8   : > { %v2610_v56 = vpack.c.bf16 %v3726_v42, %v3725_v48  ;;  %v2466_v19 = vpop.f32.mrb[87].mxu0 }
 0x7a9   : > { %v2609_v16 = vpack.c.bf16 %v2466_v19, %v2463_v62  ;;  %3818 = vmatpush3.bf16.msra.mxu0 %v1843_v45 }
 0x7aa   : > { %3819 = vmatprep.subr.bf16.mxu0 %v1844_v31 }
 0x7ab   : > { %3787 = vmatprep.mubr.bf16.mxu0 %v2609_v16 }
 0x7ac   : > { %3788 = vmatmul.mubr.bf16.gmra.mrb[100].mxu0 %v2610_v56 }
 0x7ad   : > { %v3729_v10 = vpop.f32.mrb[88].mxu0  ;;  %3820 = vmatpush3.bf16.msra.mxu0 %v1844_v31 }
 0x7ae   : > { %v2479_v7 = vpop.f32.mrb[89].mxu0  ;;  %3821 = vmatprep.subr.bf16.mxu0 %v1845_v12 }
 0x7af   : > { %v3730_v39 = vpop.f32.mrb[90].mxu0 }
 0x7b0   : > { %v2612_v53 = vpack.c.bf16 %v3730_v39, %v3729_v10  ;;  %v2482_v17 = vpop.f32.mrb[91].mxu0  ;;  %v6597_v10 = vpack.c.bf16 %v5832_v25, %v5826_v6  ;;  %v6600_v39 = vpack.c.bf16 %v5852_v8, %v5848_v36  ;;  %v6602_v6 = vpack.c.bf16 %v5864_v20, %v5860_v57  ;;  %v6606_v36 = vld [vmem:[#allocation52_spill] sm:$0xff]  ;;  %v6612_v20 = vld [vmem:[#allocation45_spill] sm:$0xff] }
 0x7b1   : > { %v2611_v59 = vpack.c.bf16 %v2482_v17, %v2479_v7  ;;  %3822 = vmatpush3.bf16.msra.mxu0 %v1845_v12  ;;  %v6598_v7 = vpack.c.bf16 %v5828_v2, %v5824_v13  ;;  %v6603_v13 = vpack.c.bf16 %v5880_v55, %v5874_v54  ;;  %v6604_v2 = vpack.c.bf16 %v5876_v38, %v5872_v15  ;;  %v6610_v57 = vld [vmem:[#allocation40_spill] sm:$0xff]  ;;  %v6615_v55 = vld [vmem:[#allocation49_spill] sm:$0xff]  ;;  %v6616_v15 = vld [vmem:[#allocation47_spill] sm:$0xff] }
 0x7b2   : > { %3823 = vmatprep.subr.bf16.mxu0 %v1846_v23  ;;  %v6605_v25 = vpack.c.bf16 %v5844_v37, %v5838_v11  ;;  %v6614_v54 = vpack.c.bf16 %v6612_v20, %v6613_v52  ;;  %v6617_v38 = vpack.c.bf16 %v6615_v55, %v6616_v15  ;;  %v6621_v37 = vld [vmem:[#allocation25_spill] sm:$0xff]  ;;  %v6622_v17 = vld [vmem:[#allocation54_spill] sm:$0xff] }
 0x7b3   : > { %3791 = vmatprep.mubr.bf16.mxu0 %v2611_v59  ;;  %v6623_v59 = vpack.c.bf16 %v6621_v37, %v6622_v17 }
 0x7b4   : > { %3792 = vmatmul.mubr.bf16.gmra.mrb[104].mxu0 %v2612_v53  ;;  %v6619_v53 = vld [vmem:[#allocation53_spill] sm:$0xff] }
 0x7b5   : > { %v3733_v14 = vpop.f32.mrb[92].mxu0  ;;  %3824 = vmatpush3.bf16.msra.mxu0 %v1846_v23  ;;  %v6599_v23 = vpack.c.bf16 %v5856_v22, %v5850_v4  ;;  %v6607_v4 = vld [vmem:[#allocation37_spill] sm:$0xff]  ;;  %v6609_v22 = vld [vmem:[#allocation44_spill] sm:$0xff]  ;;  %v6620_v11 = vpack.c.bf16 %v6618_v40, %v6619_v53 }
 0x7b6   : > { %v2495_v0 = vpop.f32.mrb[93].mxu0  ;;  %3825 = vmatprep.subr.bf16.mxu0 %v1847_v47  ;;  %v6608_v8 = vpack.c.bf16 %v6606_v36, %v6607_v4  ;;  %v6611_v34 = vpack.c.bf16 %v6609_v22, %v6610_v57 }
 0x7b7   : > { %v3734_v5 = vpop.f32.mrb[94].mxu0 }
 0x7b8   : > { %v2614_v58 = vpack.c.bf16 %v3734_v5, %v3733_v14  ;;  %v2498_v41 = vpop.f32.mrb[95].mxu0  ;;  %v6259_v14 = vld [vmem:[%s6409_s7] ss:$0 sm:$0xff] }
 0x7b9   : > { %v2613_v24 = vpack.c.bf16 %v2498_v41, %v2495_v0  ;;  %3826 = vmatpush3.bf16.msra.mxu0 %v1847_v47  ;;  %v6624_v47 = vld [vmem:[#allocation26_spill] sm:$0xff] }
 0x7ba   : > { %3827 = vmatprep.subr.bf16.mxu0 %v1848_v50  ;;  %v6626_v1 = vpack.c.bf16 %v6624_v47, %v6625_v9 }
 0x7bb   : > { %3795 = vmatprep.mubr.bf16.mxu0 %v2613_v24 }
 0x7bc   : > { %3796 = vmatmul.mubr.bf16.gmra.mrb[108].mxu0 %v2614_v58 }
 0x7bd   : > { %3828 = vmatpush3.bf16.msra.mxu0 %v1848_v50 }
 0x7be   : > { %v3753_v26 = vpop.f32.mrb[144].mxu1  ;;  %3829 = vmatprep.subr.bf16.mxu0 %v1849_v49 }
 0x7bf   : > { %v2544_v61 = vpop.f32.mrb[145].mxu1 }
 0x7c0   : > { %v3754_v44 = vpop.f32.mrb[146].mxu1 }
 0x7c1   : > { %v2616_v29 = vpack.c.bf16 %v3754_v44, %v3753_v26  ;;  %v2547_v3 = vpop.f32.mrb[147].mxu1  ;;  %3830 = vmatpush3.bf16.msra.mxu0 %v1849_v49 }
 0x7c2   : > { %v2615_v27 = vpack.c.bf16 %v2547_v3, %v2544_v61 }
 0x7c4   : > { %3799 = vmatprep.mubr.bf16.mxu0 %v2615_v27 }
 0x7c5   : > { %3800 = vmatmul.mubr.bf16.gmra.mrb[112].mxu0 %v2616_v29 }
 0x7c6   : > { %v3757_v63 = vpop.f32.mrb[148].mxu1 }
 0x7c7   : > { %v2560_v60 = vpop.f32.mrb[149].mxu1 }
 0x7c8   : > { %v3758_v28 = vpop.f32.mrb[150].mxu1 }
 0x7c9   : > { %v2618_v45 = vpack.c.bf16 %v3758_v28, %v3757_v63  ;;  %v2563_v32 = vpop.f32.mrb[151].mxu1 }
 0x7ca   : > { %v2617_v18 = vpack.c.bf16 %v2563_v32, %v2560_v60 }
 0x7cc   : > { %3803 = vmatprep.mubr.bf16.mxu0 %v2617_v18 }
 0x7cd   : > { %3804 = vmatmul.mubr.bf16.gmra.mrb[116].mxu0 %v2618_v45 }
 0x7ce   : > { %v3761_v48 = vpop.f32.mrb[152].mxu1 }
 0x7cf   : > { %v2576_v62 = vpop.f32.mrb[153].mxu1 }
 0x7d0   : > { %v3762_v31 = vpop.f32.mrb[154].mxu1 }
 0x7d1   : > { %v2620_v42 = vpack.c.bf16 %v3762_v31, %v3761_v48  ;;  %v2579_v35 = vpop.f32.mrb[155].mxu1 }
 0x7d2   : > { %v2619_v33 = vpack.c.bf16 %v2579_v35, %v2576_v62 }
 0x7d4   : > { %3807 = vmatprep.mubr.bf16.mxu0 %v2619_v33 }
 0x7d5   : > { %3808 = vmatmul.mubr.bf16.gmra.mrb[120].mxu0 %v2620_v42 }
 0x7d6   : > { %v3765_v56 = vpop.f32.mrb[156].mxu1 }
 0x7d7   : > { %v2592_v19 = vpop.f32.mrb[157].mxu1 }
 0x7d8   : > { %v3766_v16 = vpop.f32.mrb[158].mxu1 }
 0x7d9   : > { %v2622_v12 = vpack.c.bf16 %v3766_v16, %v3765_v56  ;;  %v2595_v43 = vpop.f32.mrb[159].mxu1 }
 0x7da   : > { %v2621_v51 = vpack.c.bf16 %v2595_v43, %v2592_v19 }
 0x7dc   : > { %3811 = vmatprep.mubr.bf16.mxu0 %v2621_v51 }
 0x7dd   : > { %3812 = vmatmul.mubr.bf16.gmra.mrb[124].mxu0 %v2622_v12 }
 0x7de   : > { %3831 = vmatprep.mubr.bf16.mxu0 %v6597_v10 }
 0x7e5   : > { %3832 = vmatmul.mubr.bf16.vlgmr.msra.gmra.mrb[96].mxu0 %v6598_v7 }
 0x7e6   : > { %3835 = vmatprep.mubr.bf16.mxu0 %v6599_v23 }
 0x7ed   : > { %3836 = vmatmul.mubr.bf16.gmra.mrb[100].mxu0 %v6600_v39 }
 0x7ee   : > { %3839 = vmatprep.mubr.bf16.mxu0 %v6601_v30 }
 0x7f5   : > { %3840 = vmatmul.mubr.bf16.gmra.mrb[104].mxu0 %v6602_v6 }
 0x7f6   : > { %3843 = vmatprep.mubr.bf16.mxu0 %v6603_v13 }
 0x7fd   : > { %3844 = vmatmul.mubr.bf16.gmra.mrb[108].mxu0 %v6604_v2 }
 0x7fe   : > { %3847 = vmatprep.mubr.bf16.mxu0 %v6605_v25 }
 0x805   : > { %3848 = vmatmul.mubr.bf16.gmra.mrb[112].mxu0 %v6608_v8 }
 0x806   : > { %3851 = vmatprep.mubr.bf16.mxu0 %v6611_v34 }
 0x80d   : > { %3852 = vmatmul.mubr.bf16.gmra.mrb[116].mxu0 %v6614_v54 }
 0x80e   : > { %3855 = vmatprep.mubr.bf16.mxu0 %v6617_v38 }
 0x815   : > { %3856 = vmatmul.mubr.bf16.gmra.mrb[120].mxu0 %v6620_v11 }
 0x816   : > { %3859 = vmatprep.mubr.bf16.mxu0 %v6623_v59 }
 0x81d   : > { %3860 = vmatmul.mubr.bf16.gmra.mrb[124].mxu0 %v6626_v1 }
 0x8b8   : > { %v3833_v0 = vpop.f32.mrb[96].mxu0 }
 0x8b9   : > { %v2978_v50 = vadd.f32 %v3833_v0, %v6259_v14  ;;  %v2842_v5 = vpop.f32.mrb[97].mxu0 }
 0x8ba   : > { %v2976_v46 = vadd.f32 %v6259_v14, %v2842_v5  ;;  %v3834_v21 = vpop.f32.mrb[98].mxu0 }
 0x8bb   : > { %3010 = vst [vmem:[%s6264_s4 + $0x10] sm:$0xff] %v2978_v50  ;;  %v2979_v58 = vadd.f32 %v3834_v21, %v6259_v14  ;;  %v2845_v41 = vpop.f32.mrb[99].mxu0 }
 0x8bc   : > { %3008 = vst [vmem:[%s6264_s4] sm:$0xff] %v2976_v46  ;;  %v2977_v24 = vadd.f32 %v6259_v14, %v2845_v41 }
 0x8bd   : > { %3011 = vst [vmem:[%s6264_s4 + $0x18] sm:$0xff] %v2979_v58 }
 0x8be   : > { %3009 = vst [vmem:[%s6264_s4 + $0x8] sm:$0xff] %v2977_v24 }
 0x8c0   : > { %v3837_v49 = vpop.f32.mrb[100].mxu0 }
 0x8c1   : > { %v2982_v26 = vadd.f32 %v3837_v49, %v6259_v14  ;;  %v2858_v61 = vpop.f32.mrb[101].mxu0 }
 0x8c2   : > { %v2980_v44 = vadd.f32 %v6259_v14, %v2858_v61  ;;  %v3838_v29 = vpop.f32.mrb[102].mxu0 }
 0x8c3   : > { %3014 = vst [vmem:[%s6264_s4 + $0x30] sm:$0xff] %v2982_v26  ;;  %v2983_v3 = vadd.f32 %v3838_v29, %v6259_v14  ;;  %v2861_v27 = vpop.f32.mrb[103].mxu0 }
 0x8c4   : > { %3012 = vst [vmem:[%s6264_s4 + $0x20] sm:$0xff] %v2980_v44  ;;  %v2981_v63 = vadd.f32 %v6259_v14, %v2861_v27 }
 0x8c5   : > { %3015 = vst [vmem:[%s6264_s4 + $0x38] sm:$0xff] %v2983_v3 }
 0x8c6   : > { %3013 = vst [vmem:[%s6264_s4 + $0x28] sm:$0xff] %v2981_v63 }
 0x8c8   : > { %v3841_v60 = vpop.f32.mrb[104].mxu0 }
 0x8c9   : > { %v2986_v28 = vadd.f32 %v3841_v60, %v6259_v14  ;;  %v2874_v45 = vpop.f32.mrb[105].mxu0 }
 0x8ca   : > { %v2984_v32 = vadd.f32 %v6259_v14, %v2874_v45  ;;  %v3842_v18 = vpop.f32.mrb[106].mxu0 }
 0x8cb   : > { %3018 = vst [vmem:[%s6264_s4 + $0x50] sm:$0xff] %v2986_v28  ;;  %v2987_v48 = vadd.f32 %v3842_v18, %v6259_v14  ;;  %v2877_v62 = vpop.f32.mrb[107].mxu0 }
 0x8cc   : > { %3016 = vst [vmem:[%s6264_s4 + $0x40] sm:$0xff] %v2984_v32  ;;  %v2985_v31 = vadd.f32 %v6259_v14, %v2877_v62 }
 0x8cd   : > { %3019 = vst [vmem:[%s6264_s4 + $0x58] sm:$0xff] %v2987_v48 }
 0x8ce   : > { %3017 = vst [vmem:[%s6264_s4 + $0x48] sm:$0xff] %v2985_v31 }
 0x8d0   : > { %v3845_v42 = vpop.f32.mrb[108].mxu0 }
 0x8d1   : > { %v2990_v35 = vadd.f32 %v3845_v42, %v6259_v14  ;;  %v2890_v33 = vpop.f32.mrb[109].mxu0 }
 0x8d2   : > { %v2988_v56 = vadd.f32 %v6259_v14, %v2890_v33  ;;  %v3846_v19 = vpop.f32.mrb[110].mxu0 }
 0x8d3   : > { %3022 = vst [vmem:[%s6264_s4 + $0x70] sm:$0xff] %v2990_v35  ;;  %v2991_v16 = vadd.f32 %v3846_v19, %v6259_v14  ;;  %v2893_v12 = vpop.f32.mrb[111].mxu0 }
 0x8d4   : > { %3020 = vst [vmem:[%s6264_s4 + $0x60] sm:$0xff] %v2988_v56  ;;  %v2989_v43 = vadd.f32 %v6259_v14, %v2893_v12 }
 0x8d5   : > { %3023 = vst [vmem:[%s6264_s4 + $0x78] sm:$0xff] %v2991_v16 }
 0x8d6   : > { %3021 = vst [vmem:[%s6264_s4 + $0x68] sm:$0xff] %v2989_v43 }
 0x8d8   : > { %v3849_v51 = vpop.f32.mrb[112].mxu0 }
 0x8d9   : > { %v2994_v10 = vadd.f32 %v3849_v51, %v6259_v14  ;;  %v2906_v7 = vpop.f32.mrb[113].mxu0 }
 0x8da   : > { %v2992_v23 = vadd.f32 %v6259_v14, %v2906_v7  ;;  %v3850_v39 = vpop.f32.mrb[114].mxu0 }
 0x8db   : > { %3026 = vst [vmem:[%s6264_s4 + $0x90] sm:$0xff] %v2994_v10  ;;  %v2995_v30 = vadd.f32 %v3850_v39, %v6259_v14  ;;  %v2909_v6 = vpop.f32.mrb[115].mxu0 }
 0x8dc   : > { %3024 = vst [vmem:[%s6264_s4 + $0x80] sm:$0xff] %v2992_v23  ;;  %v2993_v13 = vadd.f32 %v6259_v14, %v2909_v6 }
 0x8dd   : > { %3027 = vst [vmem:[%s6264_s4 + $0x98] sm:$0xff] %v2995_v30 }
 0x8de   : > { %3025 = vst [vmem:[%s6264_s4 + $0x88] sm:$0xff] %v2993_v13 }
 0x8e0   : > { %v3853_v2 = vpop.f32.mrb[116].mxu0 }
 0x8e1   : > { %v2998_v25 = vadd.f32 %v3853_v2, %v6259_v14  ;;  %v2922_v36 = vpop.f32.mrb[117].mxu0 }
 0x8e2   : > { %v2996_v4 = vadd.f32 %v6259_v14, %v2922_v36  ;;  %v3854_v8 = vpop.f32.mrb[118].mxu0 }
 0x8e3   : > { %3030 = vst [vmem:[%s6264_s4 + $0xb0] sm:$0xff] %v2998_v25  ;;  %v2999_v22 = vadd.f32 %v3854_v8, %v6259_v14  ;;  %v2925_v57 = vpop.f32.mrb[119].mxu0 }
 0x8e4   : > { %3028 = vst [vmem:[%s6264_s4 + $0xa0] sm:$0xff] %v2996_v4  ;;  %v2997_v34 = vadd.f32 %v6259_v14, %v2925_v57 }
 0x8e5   : > { %3031 = vst [vmem:[%s6264_s4 + $0xb8] sm:$0xff] %v2999_v22 }
 0x8e6   : > { %3029 = vst [vmem:[%s6264_s4 + $0xa8] sm:$0xff] %v2997_v34 }
 0x8e8   : > { %v3857_v20 = vpop.f32.mrb[120].mxu0 }
 0x8e9   : > { %v3002_v52 = vadd.f32 %v3857_v20, %v6259_v14  ;;  %v2938_v54 = vpop.f32.mrb[121].mxu0 }
 0x8ea   : > { %v3000_v55 = vadd.f32 %v6259_v14, %v2938_v54  ;;  %v3858_v15 = vpop.f32.mrb[122].mxu0 }
 0x8eb   : > { %3034 = vst [vmem:[%s6264_s4 + $0xd0] sm:$0xff] %v3002_v52  ;;  %v3003_v38 = vadd.f32 %v3858_v15, %v6259_v14  ;;  %v2941_v40 = vpop.f32.mrb[123].mxu0 }
 0x8ec   : > { %3032 = vst [vmem:[%s6264_s4 + $0xc0] sm:$0xff] %v3000_v55  ;;  %v3001_v53 = vadd.f32 %v6259_v14, %v2941_v40 }
 0x8ed   : > { %3035 = vst [vmem:[%s6264_s4 + $0xd8] sm:$0xff] %v3003_v38 }
 0x8ee   : > { %3033 = vst [vmem:[%s6264_s4 + $0xc8] sm:$0xff] %v3001_v53 }
 0x8f0   : > { %v3861_v11 = vpop.f32.mrb[124].mxu0 }
 0x8f1   : > { %v3006_v37 = vadd.f32 %v3861_v11, %v6259_v14  ;;  %v2954_v17 = vpop.f32.mrb[125].mxu0 }
 0x8f2   : > { %v3004_v59 = vadd.f32 %v6259_v14, %v2954_v17  ;;  %v3862_v47 = vpop.f32.mrb[126].mxu0 }
 0x8f3   : > { %3038 = vst [vmem:[%s6264_s4 + $0xf0] sm:$0xff] %v3006_v37  ;;  %v3007_v9 = vadd.f32 %v3862_v47, %v6259_v14  ;;  %v2957_v1 = vpop.f32.mrb[127].mxu0 }
 0x8f4   : > { %3036 = vst [vmem:[%s6264_s4 + $0xe0] sm:$0xff] %v3004_v59  ;;  %v3005_v0 = vadd.f32 %v6259_v14, %v2957_v1 }
 0x8f5   : > { %3039 = vst [vmem:[%s6264_s4 + $0xf8] sm:$0xff] %v3007_v9 }
 0x8f6   : > { %3037 = vst [vmem:[%s6264_s4 + $0xe8] sm:$0xff] %v3005_v0 }
 0x8f7   : > { %4431 = shalt.err (!%p4428_p3)
}
 0x8f8   : > { %s4432_s15 = scalar_lea.hbm %s6331_s21, 4096  ;;  %s4436_s16 = scalar_lea.hbm %s6410_s8, 8192 }
 0x8f9   : > { %p4433_p9 = scmp.ne.s32.totalorder %s6331_s21, %s4432_s15  ;;  %p4437_p7 = scmp.lt.u32.totalorder %s6331_s21, %s6410_s8 }
 0x8fa   : > { %p4438_p12 = scmp.lt.u32.totalorder %s4436_s16, %s4432_s15  ;;  %p4440_p1 = scmp.lt.u32.totalorder %s4432_s15, %s6331_s21 }
 0x8fb   : > { %p4434_p13 = pnand %p4433_p9, %p4720_p5 }
 0x8fc   : > { %p4439_p2 = por %p4438_p12, %p4437_p7 }
 0x8fd   : > { %p4435_p11 = pneg %p4434_p13 }
 0x8fe   : > { %p4441_p4 = por %p4440_p1, %p4439_p2 }
 0x900   : > { %p4442_p0 = pnand %p4441_p4, %p4435_p11 }
 0x902   : > { %4445 = shalt.err (!%p4442_p0)
}
 0x903   : > { %s4513_s29 = smov 128   ;;  %s4514_s4 = smov 8  }
 0x904   : > { %3927 = dma.vmem_to_hbm [thread:$0]  (%p4720_p5), %s6333_s23, 4096, %s6331_s21, %s3041_s26, %s4513_s29, %s4513_s29, %s4514_s4  }
 0x905   : > { %s3046_s25 = scalar_lea.sflag [#allocation13], %s4812_s27 }
 0x906   : > { %s6627_s17 = sld [smem:[#allocation59_spill]]  ;;  %s3093_s2 = sshll.u32 %s5649_s28, 4  ;;  %s3094_s2 = int_to_ptr.vmem [resolvable:$true] %s3093_s2 }
 0x907   : > { %s4515_s15 = smov 4096   ;;  %s4516_s27 = smov 8192  }
 0x908   : > { %3928 = sst [smem:[#allocation15]] (%p4720_p5), %s4515_s15  ;;  %s4517_s13 = smov 32  }
 0x909   : > { %3929 = sst [smem:[#allocation15 + $0x1]] (%p4720_p5), %s4516_s27  ;;  %s4518_s23 = smov 128  }
 0x90a   : > { %3930 = sst [smem:[#allocation15 + $0x2]] (%p4720_p5), %s4517_s13  ;;  %s4519_s21 = smov 8  }
 0x90b   : > { %3931 = sst [smem:[#allocation15 + $0x3]] (%p4720_p5), %s4518_s23  ;;  %s4521_s28 = smov 0  }
 0x90c   : > { %s3076_s18 = scalar_lea.hbm %s6627_s17, %s3332_s24  ;;  %3932 = sst [smem:[#allocation15 + $0x4]] (%p4720_p5), %s4518_s23 }
 0x90d   : > { %3933 = sst [smem:[#allocation15 + $0x5]] (%p4720_p5), %s4519_s21  ;;  %s4520_s24 = smov [#allocation14]  }
 0x90e   : > { %3934 = dma.general (%p4720_p5), %s3094_s2, 8192, %s3076_s18, %s3046_s25, %s4520_s24, [#allocation15], %s4521_s28, 0  }
 0x90f PF: > { %s6628_s26 = sld [smem:[#allocation22_spill]]  ;;  %s6629_s6 = sld [smem:[#allocation23_spill]] }
 0x910   : > { %p6631_p6 = scmp.ge.s32.totalorder %s4500_s12, 2 }
 0x915   : > { %s3121_s30 = sand.u32 1, %s6628_s26   ;;  %p6630_p8 = scmp.ne.s32.totalorder %s6629_s6, 0 }
 0x916   : > { %s3122_s16 = scalar_lea.sflag [#allocation4], %s3121_s30 }
 0x917   : > { %p3955_p10 = pnand %p6631_p6, %p6630_p8 }
 0x919   : > { %4479 = dma.done.wait (!%p3955_p10), %s3122_s16, 4096  }
 0x91a   : > { %4481 = vsyncadd (!%p3955_p10), %s3122_s16, 4294963200  ;;  %s3131_s19 = scalar_lea.sflag [#allocation13], %s3121_s30 }
 0x91b   : > { %4483 = dma.done.wait (!%p3955_p10), %s3131_s19, 8192  }
 0x91c   : > { %4485 = vsyncadd (!%p3955_p10), %s3131_s19, 4294959104  ;;  %s6632_s14 = sld [smem:[#allocation24_spill]]  ;;  %p30_p5 = scmp.ge.s32.totalorder %s4706_s9, 4  }
 0x91d   : > { %s6633_s30 = smov %s4492_s10  ;;  %s6634_s10 = smov %s4496_s11 }
 0x91e   : > { %s6636_s12 = smov %s4706_s9  ;;  %32 = sbr.rel (!%p30_p5) target bundleno = 16 (0x10), region = 145 }
 0x922   : > { %s6635_s11 = smov %s6632_s14 }
 0x925   :  { %3136 = vsyncpa [#allocation3], 1 }
 0x926   :  { %3138 = vsyncpa [#allocation3 + $0x1], 1 }
 0x927   :  { %3139 = vsyncpa [#allocation6], 1 }
 0x928   :  { %3141 = vsyncpa [#allocation6 + $0x1], 1 }
 0x929   :  { %3142 = vsyncpa [#allocation9], 1 }
 0x92a   :  { %3143 = vsyncpa [#allocation4], 1 }
 0x92b   :  { %3145 = vsyncpa [#allocation4 + $0x1], 1 }
 0x92c   :  { %3146 = vsyncpa [#allocation13], 1 }
 0x92d   :  { %3148 = vsyncpa [#allocation13 + $0x1], 1 }

</bundles_post_ra>
